<compile_context>
chip_gen: v5e
topology: v5e:2x2
jax: 0.10.0
libtpu: 0.0.40
codegen_flags: <defaults>
</compile_context>

<pallas_src>
import functools

import jax
import jax.numpy as jnp
from jax.experimental import pallas as pl
from jax.experimental.pallas import tpu as pltpu

NEG_SLOPE = 0.01            # default negative_slope of F.leaky_relu_
BF16 = jnp.bfloat16         # MXU operand dtype; accumulation stays float32


def _leaky_relu(x):
    return jnp.where(x > 0, x, NEG_SLOPE * x)


# ----------------------------- fused kernel -----------------------------

def msci11_kernel(win_ref, id_ref, ui_ref, pol_ref,
                  w2d_ref, cnn_b_ref, band_ref, band_b_ref,
                  comb_ui_ref, ui_b_ref, fold_w_ref, fold_b_ref,
                  doc_w_ref, doc_b_ref, out_ref,
                  *, bs, r_num, l_rev, l_doc):
    F = cnn_b_ref.shape[-1]
    E = id_ref.shape[-1]
    rev_rows = bs * r_num * l_rev
    doc_rows = bs * l_doc

    for g in range(2):                         # g=0: user net, g=1: item net (static unroll)
        # ---- shared text CNN: review + doc windows in ONE im2col matmul
        conv = jnp.dot(win_ref[g], w2d_ref[g], preferred_element_type=jnp.float32)
        conv = _leaky_relu(conv + cnn_b_ref[g])                                   # (rows_pad, F)

        fea = jnp.mean(conv[0:rev_rows].reshape(bs * r_num, l_rev, F), axis=1)    # avg pool
        doc_pool = jnp.max(conv[rev_rows:rev_rows + doc_rows].reshape(bs, l_doc, F),
                           axis=1)                                                # max pool

        # ---- neighbor-id Conv1d as banded matmul; [avg-pool o ui_linear] folded
        y = jnp.dot(ui_ref[g], band_ref[g], preferred_element_type=jnp.float32)
        y = _leaky_relu(y + band_b_ref[g])                                        # (bs*r_num, Wp)
        ui = jnp.dot(y.astype(BF16), comb_ui_ref[g], preferred_element_type=jnp.float32)
        ui = _leaky_relu(ui + ui_b_ref[g])                                        # (bs*r_num, E)

        # ---- sentiment softmax over reviews; weighted sum of relu(features)
        p = pol_ref[g] * (1.0 / 10000.0)                                          # (bs, r_num, 1)
        p = p - jnp.max(p, axis=1, keepdims=True)
        ew = jnp.exp(p)
        wgt = ew / jnp.sum(ew, axis=1, keepdims=True)                             # softmax over r_num
        rA = jnp.sum(jnp.maximum(fea.reshape(bs, r_num, F), 0.0) * wgt, axis=1)   # (bs, F)
        rB = jnp.sum(jnp.maximum(ui.reshape(bs, r_num, E), 0.0) * wgt, axis=1)    # (bs, E)

        # ---- mix_layer o (dropout = identity) o fc_layer folded into one matmul
        rfe = jnp.concatenate([rA, rB], axis=-1).astype(BF16)                     # (bs, F+E)
        out_b = jnp.dot(rfe, fold_w_ref[g],
                        preferred_element_type=jnp.float32) + fold_b_ref[g]       # (bs, 2E)

        # ---- doc_linear
        doc_fea = jnp.dot(doc_pool.astype(BF16), doc_w_ref[g],
                          preferred_element_type=jnp.float32) + doc_b_ref[g]      # (bs, E)

        # ---- one lane-dense (bs, 4E) store: [id_emb | doc_fea | fc(mix(r_fea))]
        out_ref[g] = jnp.concatenate([id_ref[g], doc_fea, out_b], axis=-1)


# ----------------------------- host-side glue -----------------------------

def _im2col(x, k):
    """(N, seq, wd) -> (N*(seq-k+1), k*wd) windowed rows."""
    N, seq, wd = x.shape
    L = seq - k + 1
    cols = jnp.concatenate([x[:, j:j + L, :] for j in range(k)], axis=-1)   # (N, L, k*wd)
    return cols.reshape(N * L, k * wd)


def _conv1d_band(w_id, E):
    """Conv1d weight (k, F) -> banded matrix (E, L*F) so conv1d == x @ band."""
    k, F = w_id.shape
    L = E - k + 1
    e = jnp.arange(E)[:, None]
    t = jnp.arange(L)[None, :]
    j = e - t
    valid = (j >= 0) & (j < k)
    band = jnp.where(valid[:, :, None], w_id[jnp.clip(j, 0, k - 1)], 0.0)   # (E, L, F)
    return band.reshape(E, L * F)


def _round_up(n, m):
    return ((n + m - 1) // m) * m


def _net_inputs(p, doc, reviews, ids, ids_list, sentiments, opt):
    """Per-net kernel inputs: gathers, im2col, folded/padded bf16 weights."""
    E, F, k = opt["id_emb_size"], opt["filters_num"], opt["kernel_size"]
    wd = opt["word_dim"]
    bs, r_num, r_len = reviews.shape
    Lid = E - k + 1

    # embedding gathers + host-side im2col (review windows first, then doc windows)
    rev_emb = jnp.take(p["word_embs"], reviews.reshape(bs * r_num, r_len), axis=0)
    doc_emb = jnp.take(p["word_embs"], doc, axis=0)
    win = jnp.concatenate([_im2col(rev_emb, k), _im2col(doc_emb, k)], axis=0)
    pad = (-win.shape[0]) % 8
    if pad:
        win = jnp.pad(win, ((0, pad), (0, 0)))
    win = win.astype(BF16)

    id_emb = jnp.take(p["id_embedding"], ids, axis=0)                         # f32 (copied to out)
    ui_emb = jnp.take(p["ui_id_embedding"], ids_list.reshape(bs * r_num), axis=0).astype(BF16)
    pol = sentiments[:, :, 0:1]                                               # (bs, r_num, 1) f32

    # text-CNN weight as (k*wd, F)
    w2d = p["cnn_w"].reshape(k * wd, F).astype(BF16)

    # id-Conv1d banded matmul; avg-pool folded into ui_linear; lane axis padded to x128
    band = _conv1d_band(p["cnn_id_w"], E)                                     # (E, Lid*F)
    band_b = jnp.tile(p["cnn_id_b"], (1, Lid))                                # (1, Lid*F)
    comb_ui = jnp.tile(p["ui_linear_w"], (Lid, 1)) / float(Lid)               # (Lid*F, E)
    W = Lid * F
    Wp = _round_up(W, 128)
    band = jnp.pad(band, ((0, 0), (0, Wp - W))).astype(BF16)
    band_b = jnp.pad(band_b, ((0, 0), (0, Wp - W)))
    comb_ui = jnp.pad(comb_ui, ((0, Wp - W), (0, 0))).astype(BF16)

    # mix_layer o fc_layer folded (dropout = identity at inference)
    fold_w = (p["mix_w"] @ p["fc_w"]).astype(BF16)                            # (F+E, 2E)
    fold_b = p["mix_b"] @ p["fc_w"] + p["fc_b"]                               # (1, 2E)

    return (win, id_emb, ui_emb, pol,
            w2d, p["cnn_b"], band, band_b,
            comb_ui, p["ui_linear_b"], fold_w, fold_b,
            p["doc_w"].astype(BF16), p["doc_b"])


def msci11_forward(user_params, item_params, datas, opt):
    (user_reviews, item_reviews, uids, iids, user_item2id, item_user2id,
     user_doc, item_doc, user_sentiments, item_sentiments) = datas

    E, F, k = opt["id_emb_size"], opt["filters_num"], opt["kernel_size"]
    bs, r_num, r_len = user_reviews.shape
    doc_len = user_doc.shape[1]
    l_rev = r_len - k + 1
    l_doc = doc_len - k + 1

    u_in = _net_inputs(user_params, user_doc, user_reviews, uids,
                       user_item2id, user_sentiments, opt)
    i_in = _net_inputs(item_params, item_doc, item_reviews, iids,
                       item_user2id, item_sentiments, opt)
    stacked = [jnp.stack([u, i], axis=0) for u, i in zip(u_in, i_in)]

    def full_spec(shape):
        nd = len(shape)
        return pl.BlockSpec(shape, lambda i, _nd=nd: (0,) * _nd)

    # Single grid step: both nets in one kernel body (no per-step overhead on 1-TC chips).
    # TODO(synk): on v7x use pltpu.CORE_PARALLEL / pl.core_map to put one net per TensorCore.
    out = pl.pallas_call(
        functools.partial(msci11_kernel, bs=bs, r_num=r_num, l_rev=l_rev, l_doc=l_doc),
        out_shape=jax.ShapeDtypeStruct((2, bs, 4 * E), jnp.float32),
        grid=(1,),
        in_specs=[full_spec(x.shape) for x in stacked],
        out_specs=full_spec((2, bs, 4 * E)),
        compiler_params=pltpu.CompilerParams(dimension_semantics=("arbitrary",)),
    )(*stacked)

    out = out.reshape(2, bs, 2, 2 * E)   # row 0: [id_emb | doc_fea], row 1: fc(mix(r_fea))
    return out[0], out[1]


# ----------------------------- parameters -----------------------------

def init_net_params(key, opt, uori):
    if uori == "user":
        id_num, ui_id_num = opt["user_num"], opt["item_num"]
    else:
        id_num, ui_id_num = opt["item_num"], opt["user_num"]
    E, F, k = opt["id_emb_size"], opt["filters_num"], opt["kernel_size"]
    wd, V = opt["word_dim"], opt["vocab_size"]
    ks = jax.random.split(key, 9)

    def uni(k_, shape):
        return jax.random.uniform(k_, shape, jnp.float32, -0.1, 0.1)

    def xav(k_, shape, fan_in, fan_out):
        std = (2.0 / (fan_in + fan_out)) ** 0.5
        return std * jax.random.normal(k_, shape, jnp.float32)

    p = {}
    p["id_embedding"] = uni(ks[0], (id_num, E))
    p["ui_id_embedding"] = uni(ks[1], (ui_id_num, E))
    p["word_embs"] = xav(ks[2], (V, wd), V, wd)
    p["cnn_w"] = xav(ks[3], (k, wd, F), k * wd, F)          # torch (F,1,k,wd)
    p["cnn_b"] = jnp.full((1, F), 0.1, jnp.float32)
    p["cnn_id_w"] = xav(ks[4], (k, F), k, F)                # torch (F,1,k)
    p["cnn_id_b"] = jnp.full((1, F), 0.1, jnp.float32)
    p["ui_linear_w"] = uni(ks[5], (F, E))
    p["ui_linear_b"] = jnp.full((1, E), 0.1, jnp.float32)
    p["mix_w"] = uni(ks[6], (F + E, F))
    p["mix_b"] = jnp.full((1, F), 0.1, jnp.float32)
    p["doc_w"] = uni(ks[7], (F, E))
    p["doc_b"] = jnp.full((1, E), 0.1, jnp.float32)
    p["fc_w"] = uni(ks[8], (F, 2 * E))
    p["fc_b"] = jnp.full((1, 2 * E), 0.1, jnp.float32)
    return p


# ----------------------------- main -----------------------------

if __name__ == "__main__":
    opt = dict(user_num=20, item_num=24, vocab_size=100, word_dim=32,
               id_emb_size=32, filters_num=32, kernel_size=3)
    bs, r_num, r_len, doc_len = 2, 4, 16, 24

    key = jax.random.PRNGKey(0)
    k_user, k_item, k_data = jax.random.split(key, 3)
    user_params = init_net_params(k_user, opt, "user")
    item_params = init_net_params(k_item, opt, "item")

    dks = jax.random.split(k_data, 10)
    user_reviews = jax.random.randint(dks[0], (bs, r_num, r_len), 0, opt["vocab_size"])
    item_reviews = jax.random.randint(dks[1], (bs, r_num, r_len), 0, opt["vocab_size"])
    uids = jax.random.randint(dks[2], (bs,), 0, opt["user_num"])
    iids = jax.random.randint(dks[3], (bs,), 0, opt["item_num"])
    user_item2id = jax.random.randint(dks[4], (bs, r_num), 0, opt["item_num"])
    item_user2id = jax.random.randint(dks[5], (bs, r_num), 0, opt["user_num"])
    user_doc = jax.random.randint(dks[6], (bs, doc_len), 0, opt["vocab_size"])
    item_doc = jax.random.randint(dks[7], (bs, doc_len), 0, opt["vocab_size"])
    user_sentiments = jax.random.uniform(dks[8], (bs, r_num, 3), jnp.float32, -1.0, 1.0)
    item_sentiments = jax.random.uniform(dks[9], (bs, r_num, 3), jnp.float32, -1.0, 1.0)

    datas = (user_reviews, item_reviews, uids, iids, user_item2id, item_user2id,
             user_doc, item_doc, user_sentiments, item_sentiments)

    u_fea, i_fea = msci11_forward(user_params, item_params, datas, opt)
    jax.block_until_ready((u_fea, i_fea))

    assert u_fea.shape == (bs, 2, 2 * opt["id_emb_size"]), u_fea.shape
    assert i_fea.shape == (bs, 2, 2 * opt["id_emb_size"]), i_fea.shape
    assert bool(jnp.isfinite(u_fea).all()) and bool(jnp.isfinite(i_fea).all())
    print("KERNEL_OK")
</pallas_src>

<mosaic_0001>
module attributes {stable_mosaic.version = 11 : i64} {
  func.func @msci11_kernel(%arg0: i32, %arg1: memref<2x160x96xbf16, #tpu.memory_space<vmem>>, %arg2: memref<2x2x32xf32, #tpu.memory_space<vmem>>, %arg3: memref<2x8x32xbf16, #tpu.memory_space<vmem>>, %arg4: memref<2x2x4x1xf32, #tpu.memory_space<vmem>>, %arg5: memref<2x96x32xbf16, #tpu.memory_space<vmem>>, %arg6: memref<2x1x32xf32, #tpu.memory_space<vmem>>, %arg7: memref<2x32x1024xbf16, #tpu.memory_space<vmem>>, %arg8: memref<2x1x1024xf32, #tpu.memory_space<vmem>>, %arg9: memref<2x1024x32xbf16, #tpu.memory_space<vmem>>, %arg10: memref<2x1x32xf32, #tpu.memory_space<vmem>>, %arg11: memref<2x64x64xbf16, #tpu.memory_space<vmem>>, %arg12: memref<2x1x64xf32, #tpu.memory_space<vmem>>, %arg13: memref<2x32x32xbf16, #tpu.memory_space<vmem>>, %arg14: memref<2x1x32xf32, #tpu.memory_space<vmem>>, %arg15: memref<2x2x128xf32, #tpu.memory_space<vmem>>) attributes {dimension_semantics = [#tpu.dimension_semantics<arbitrary>], iteration_bounds = array<i64: 1>, scalar_prefetch = 0 : i64, scratch_operands = 0 : i64, tpu.core_type = #tpu.core_type<tc>, window_params = [{pipeline_mode = #tpu.pipeline_mode<synchronous>, transform_indices = @transform_0, window_bounds = array<i64: 2, 160, 96>}, {pipeline_mode = #tpu.pipeline_mode<synchronous>, transform_indices = @transform_1, window_bounds = array<i64: 2, 2, 32>}, {pipeline_mode = #tpu.pipeline_mode<synchronous>, transform_indices = @transform_2, window_bounds = array<i64: 2, 8, 32>}, {pipeline_mode = #tpu.pipeline_mode<synchronous>, transform_indices = @transform_3, window_bounds = array<i64: 2, 2, 4, 1>}, {pipeline_mode = #tpu.pipeline_mode<synchronous>, transform_indices = @transform_4, window_bounds = array<i64: 2, 96, 32>}, {pipeline_mode = #tpu.pipeline_mode<synchronous>, transform_indices = @transform_5, window_bounds = array<i64: 2, 1, 32>}, {pipeline_mode = #tpu.pipeline_mode<synchronous>, transform_indices = @transform_6, window_bounds = array<i64: 2, 32, 1024>}, {pipeline_mode = #tpu.pipeline_mode<synchronous>, transform_indices = @transform_7, window_bounds = array<i64: 2, 1, 1024>}, {pipeline_mode = #tpu.pipeline_mode<synchronous>, transform_indices = @transform_8, window_bounds = array<i64: 2, 1024, 32>}, {pipeline_mode = #tpu.pipeline_mode<synchronous>, transform_indices = @transform_9, window_bounds = array<i64: 2, 1, 32>}, {pipeline_mode = #tpu.pipeline_mode<synchronous>, transform_indices = @transform_10, window_bounds = array<i64: 2, 64, 64>}, {pipeline_mode = #tpu.pipeline_mode<synchronous>, transform_indices = @transform_11, window_bounds = array<i64: 2, 1, 64>}, {pipeline_mode = #tpu.pipeline_mode<synchronous>, transform_indices = @transform_12, window_bounds = array<i64: 2, 32, 32>}, {pipeline_mode = #tpu.pipeline_mode<synchronous>, transform_indices = @transform_13, window_bounds = array<i64: 2, 1, 32>}, {pipeline_mode = #tpu.pipeline_mode<synchronous>, transform_indices = @transform_14, window_bounds = array<i64: 2, 2, 128>}]} {
    %c0 = arith.constant 0 : index
    %c0_0 = arith.constant 0 : index
    %c0_1 = arith.constant 0 : index
    %0 = vector.load %arg1[%c0, %c0_0, %c0_1] : memref<2x160x96xbf16, #tpu.memory_space<vmem>>, vector<1x160x96xbf16>
    %1 = vector.shape_cast %0 : vector<1x160x96xbf16> to vector<160x96xbf16>
    %c0_2 = arith.constant 0 : index
    %c0_3 = arith.constant 0 : index
    %c0_4 = arith.constant 0 : index
    %2 = vector.load %arg5[%c0_2, %c0_3, %c0_4] : memref<2x96x32xbf16, #tpu.memory_space<vmem>>, vector<1x96x32xbf16>
    %3 = vector.shape_cast %2 : vector<1x96x32xbf16> to vector<96x32xbf16>
    %cst = arith.constant dense<0.000000e+00> : vector<160x32xf32>
    %4 = tpu.matmul %1, %3, %cst {dimension_numbers = #tpu.dot_dimension_numbers<[1], [0], [0], [1], [0, 0, 1, 1], [], []>} : vector<160x96xbf16>, vector<96x32xbf16>, vector<160x32xf32> -> vector<160x32xf32>
    %c0_5 = arith.constant 0 : index
    %c0_6 = arith.constant 0 : index
    %c0_7 = arith.constant 0 : index
    %5 = vector.load %arg6[%c0_5, %c0_6, %c0_7] : memref<2x1x32xf32, #tpu.memory_space<vmem>>, vector<1x1x32xf32>
    %6 = vector.shape_cast %5 : vector<1x1x32xf32> to vector<1x32xf32>
    %7 = vector.broadcast %6 : vector<1x32xf32> to vector<160x32xf32>
    %8 = arith.addf %4, %7 : vector<160x32xf32>
    %cst_8 = arith.constant 0.000000e+00 : f32
    %9 = vector.broadcast %cst_8 : f32 to vector<160x32xf32>
    %10 = arith.cmpf ogt, %8, %9 : vector<160x32xf32>
    %cst_9 = arith.constant 0.00999999977 : f32
    %11 = vector.broadcast %cst_9 : f32 to vector<160x32xf32>
    %12 = arith.mulf %11, %8 : vector<160x32xf32>
    %13 = arith.select %10, %8, %12 : vector<160x32xi1>, vector<160x32xf32>
    %14 = vector.extract_strided_slice %13 {offsets = [0, 0], sizes = [112, 32], strides = [1, 1]} : vector<160x32xf32> to vector<112x32xf32>
    %15 = vector.shape_cast %14 : vector<112x32xf32> to vector<8x14x32xf32>
    %cst_10 = arith.constant dense<0.000000e+00> : vector<8x32xf32>
    %16 = vector.multi_reduction <add>, %15, %cst_10 [1] : vector<8x14x32xf32> to vector<8x32xf32>
    %cst_11 = arith.constant 1.400000e+01 : f32
    %17 = vector.broadcast %cst_11 : f32 to vector<8x32xf32>
    %18 = arith.divf %16, %17 : vector<8x32xf32>
    %19 = vector.extract_strided_slice %13 {offsets = [112, 0], sizes = [44, 32], strides = [1, 1]} : vector<160x32xf32> to vector<44x32xf32>
    %20 = vector.shape_cast %19 : vector<44x32xf32> to vector<2x22x32xf32>
    %cst_12 = arith.constant dense<0xFF800000> : vector<2x32xf32>
    %21 = vector.multi_reduction <maximumf>, %20, %cst_12 [1] : vector<2x22x32xf32> to vector<2x32xf32>
    %c0_13 = arith.constant 0 : index
    %c0_14 = arith.constant 0 : index
    %c0_15 = arith.constant 0 : index
    %22 = vector.load %arg3[%c0_13, %c0_14, %c0_15] : memref<2x8x32xbf16, #tpu.memory_space<vmem>>, vector<1x8x32xbf16>
    %23 = vector.shape_cast %22 : vector<1x8x32xbf16> to vector<8x32xbf16>
    %c0_16 = arith.constant 0 : index
    %c0_17 = arith.constant 0 : index
    %c0_18 = arith.constant 0 : index
    %24 = vector.load %arg7[%c0_16, %c0_17, %c0_18] : memref<2x32x1024xbf16, #tpu.memory_space<vmem>>, vector<1x32x1024xbf16>
    %25 = vector.shape_cast %24 : vector<1x32x1024xbf16> to vector<32x1024xbf16>
    %cst_19 = arith.constant dense<0.000000e+00> : vector<8x1024xf32>
    %26 = tpu.matmul %23, %25, %cst_19 {dimension_numbers = #tpu.dot_dimension_numbers<[1], [0], [0], [1], [0, 0, 1, 1], [], []>} : vector<8x32xbf16>, vector<32x1024xbf16>, vector<8x1024xf32> -> vector<8x1024xf32>
    %c0_20 = arith.constant 0 : index
    %c0_21 = arith.constant 0 : index
    %c0_22 = arith.constant 0 : index
    %27 = vector.load %arg8[%c0_20, %c0_21, %c0_22] : memref<2x1x1024xf32, #tpu.memory_space<vmem>>, vector<1x1x1024xf32>
    %28 = vector.shape_cast %27 : vector<1x1x1024xf32> to vector<1x1024xf32>
    %29 = vector.broadcast %28 : vector<1x1024xf32> to vector<8x1024xf32>
    %30 = arith.addf %26, %29 : vector<8x1024xf32>
    %cst_23 = arith.constant 0.000000e+00 : f32
    %31 = vector.broadcast %cst_23 : f32 to vector<8x1024xf32>
    %32 = arith.cmpf ogt, %30, %31 : vector<8x1024xf32>
    %cst_24 = arith.constant 0.00999999977 : f32
    %33 = vector.broadcast %cst_24 : f32 to vector<8x1024xf32>
    %34 = arith.mulf %33, %30 : vector<8x1024xf32>
    %35 = arith.select %32, %30, %34 : vector<8x1024xi1>, vector<8x1024xf32>
    %36 = arith.truncf %35 : vector<8x1024xf32> to vector<8x1024xbf16>
    %c0_25 = arith.constant 0 : index
    %c0_26 = arith.constant 0 : index
    %c0_27 = arith.constant 0 : index
    %37 = vector.load %arg9[%c0_25, %c0_26, %c0_27] : memref<2x1024x32xbf16, #tpu.memory_space<vmem>>, vector<1x1024x32xbf16>
    %38 = vector.shape_cast %37 : vector<1x1024x32xbf16> to vector<1024x32xbf16>
    %cst_28 = arith.constant dense<0.000000e+00> : vector<8x32xf32>
    %39 = tpu.matmul %36, %38, %cst_28 {dimension_numbers = #tpu.dot_dimension_numbers<[1], [0], [0], [1], [0, 0, 1, 1], [], []>} : vector<8x1024xbf16>, vector<1024x32xbf16>, vector<8x32xf32> -> vector<8x32xf32>
    %c0_29 = arith.constant 0 : index
    %c0_30 = arith.constant 0 : index
    %c0_31 = arith.constant 0 : index
    %40 = vector.load %arg10[%c0_29, %c0_30, %c0_31] : memref<2x1x32xf32, #tpu.memory_space<vmem>>, vector<1x1x32xf32>
    %41 = vector.shape_cast %40 : vector<1x1x32xf32> to vector<1x32xf32>
    %42 = vector.broadcast %41 : vector<1x32xf32> to vector<8x32xf32>
    %43 = arith.addf %39, %42 : vector<8x32xf32>
    %cst_32 = arith.constant 0.000000e+00 : f32
    %44 = vector.broadcast %cst_32 : f32 to vector<8x32xf32>
    %45 = arith.cmpf ogt, %43, %44 : vector<8x32xf32>
    %cst_33 = arith.constant 0.00999999977 : f32
    %46 = vector.broadcast %cst_33 : f32 to vector<8x32xf32>
    %47 = arith.mulf %46, %43 : vector<8x32xf32>
    %48 = arith.select %45, %43, %47 : vector<8x32xi1>, vector<8x32xf32>
    %c0_34 = arith.constant 0 : index
    %c0_35 = arith.constant 0 : index
    %c0_36 = arith.constant 0 : index
    %c0_37 = arith.constant 0 : index
    %49 = vector.load %arg4[%c0_34, %c0_35, %c0_36, %c0_37] : memref<2x2x4x1xf32, #tpu.memory_space<vmem>>, vector<1x2x4x1xf32>
    %50 = vector.shape_cast %49 : vector<1x2x4x1xf32> to vector<2x4x1xf32>
    %cst_38 = arith.constant 9.99999974E-5 : f32
    %51 = vector.broadcast %cst_38 : f32 to vector<2x4x1xf32>
    %52 = arith.mulf %50, %51 : vector<2x4x1xf32>
    %cst_39 = arith.constant dense<0xFF800000> : vector<2x1xf32>
    %53 = vector.multi_reduction <maximumf>, %52, %cst_39 [1] : vector<2x4x1xf32> to vector<2x1xf32>
    %54 = vector.shape_cast %53 : vector<2x1xf32> to vector<2x1x1xf32>
    %55 = vector.broadcast %54 : vector<2x1x1xf32> to vector<2x4x1xf32>
    %56 = arith.subf %52, %55 : vector<2x4x1xf32>
    %57 = math.exp %56 : vector<2x4x1xf32>
    %cst_40 = arith.constant dense<0.000000e+00> : vector<2x1xf32>
    %58 = vector.multi_reduction <add>, %57, %cst_40 [1] : vector<2x4x1xf32> to vector<2x1xf32>
    %59 = vector.shape_cast %58 : vector<2x1xf32> to vector<2x1x1xf32>
    %60 = vector.broadcast %59 : vector<2x1x1xf32> to vector<2x4x1xf32>
    %61 = arith.divf %57, %60 : vector<2x4x1xf32>
    %62 = vector.shape_cast %18 : vector<8x32xf32> to vector<2x4x32xf32>
    %cst_41 = arith.constant 0.000000e+00 : f32
    %63 = vector.broadcast %cst_41 : f32 to vector<2x4x32xf32>
    %64 = arith.maximumf %62, %63 : vector<2x4x32xf32>
    %65 = vector.broadcast %61 : vector<2x4x1xf32> to vector<2x4x32xf32>
    %66 = arith.mulf %64, %65 : vector<2x4x32xf32>
    %cst_42 = arith.constant dense<0.000000e+00> : vector<2x32xf32>
    %67 = vector.multi_reduction <add>, %66, %cst_42 [1] : vector<2x4x32xf32> to vector<2x32xf32>
    %68 = vector.shape_cast %48 : vector<8x32xf32> to vector<2x4x32xf32>
    %cst_43 = arith.constant 0.000000e+00 : f32
    %69 = vector.broadcast %cst_43 : f32 to vector<2x4x32xf32>
    %70 = arith.maximumf %68, %69 : vector<2x4x32xf32>
    %71 = vector.broadcast %61 : vector<2x4x1xf32> to vector<2x4x32xf32>
    %72 = arith.mulf %70, %71 : vector<2x4x32xf32>
    %cst_44 = arith.constant dense<0.000000e+00> : vector<2x32xf32>
    %73 = vector.multi_reduction <add>, %72, %cst_44 [1] : vector<2x4x32xf32> to vector<2x32xf32>
    %74 = tpu.concatenate %67, %73 in 1 : vector<2x32xf32>, vector<2x32xf32> -> vector<2x64xf32>
    %75 = arith.truncf %74 : vector<2x64xf32> to vector<2x64xbf16>
    %c0_45 = arith.constant 0 : index
    %c0_46 = arith.constant 0 : index
    %c0_47 = arith.constant 0 : index
    %76 = vector.load %arg11[%c0_45, %c0_46, %c0_47] : memref<2x64x64xbf16, #tpu.memory_space<vmem>>, vector<1x64x64xbf16>
    %77 = vector.shape_cast %76 : vector<1x64x64xbf16> to vector<64x64xbf16>
    %cst_48 = arith.constant dense<0.000000e+00> : vector<2x64xf32>
    %78 = tpu.matmul %75, %77, %cst_48 {dimension_numbers = #tpu.dot_dimension_numbers<[1], [0], [0], [1], [0, 0, 1, 1], [], []>} : vector<2x64xbf16>, vector<64x64xbf16>, vector<2x64xf32> -> vector<2x64xf32>
    %c0_49 = arith.constant 0 : index
    %c0_50 = arith.constant 0 : index
    %c0_51 = arith.constant 0 : index
    %79 = vector.load %arg12[%c0_49, %c0_50, %c0_51] : memref<2x1x64xf32, #tpu.memory_space<vmem>>, vector<1x1x64xf32>
    %80 = vector.shape_cast %79 : vector<1x1x64xf32> to vector<1x64xf32>
    %81 = vector.broadcast %80 : vector<1x64xf32> to vector<2x64xf32>
    %82 = arith.addf %78, %81 : vector<2x64xf32>
    %83 = arith.truncf %21 : vector<2x32xf32> to vector<2x32xbf16>
    %c0_52 = arith.constant 0 : index
    %c0_53 = arith.constant 0 : index
    %c0_54 = arith.constant 0 : index
    %84 = vector.load %arg13[%c0_52, %c0_53, %c0_54] : memref<2x32x32xbf16, #tpu.memory_space<vmem>>, vector<1x32x32xbf16>
    %85 = vector.shape_cast %84 : vector<1x32x32xbf16> to vector<32x32xbf16>
    %cst_55 = arith.constant dense<0.000000e+00> : vector<2x32xf32>
    %86 = tpu.matmul %83, %85, %cst_55 {dimension_numbers = #tpu.dot_dimension_numbers<[1], [0], [0], [1], [0, 0, 1, 1], [], []>} : vector<2x32xbf16>, vector<32x32xbf16>, vector<2x32xf32> -> vector<2x32xf32>
    %c0_56 = arith.constant 0 : index
    %c0_57 = arith.constant 0 : index
    %c0_58 = arith.constant 0 : index
    %87 = vector.load %arg14[%c0_56, %c0_57, %c0_58] : memref<2x1x32xf32, #tpu.memory_space<vmem>>, vector<1x1x32xf32>
    %88 = vector.shape_cast %87 : vector<1x1x32xf32> to vector<1x32xf32>
    %89 = vector.broadcast %88 : vector<1x32xf32> to vector<2x32xf32>
    %90 = arith.addf %86, %89 : vector<2x32xf32>
    %c0_59 = arith.constant 0 : index
    %c0_60 = arith.constant 0 : index
    %c0_61 = arith.constant 0 : index
    %91 = vector.load %arg2[%c0_59, %c0_60, %c0_61] : memref<2x2x32xf32, #tpu.memory_space<vmem>>, vector<1x2x32xf32>
    %92 = vector.shape_cast %91 : vector<1x2x32xf32> to vector<2x32xf32>
    %93 = tpu.concatenate %92, %90, %82 in 1 : vector<2x32xf32>, vector<2x32xf32>, vector<2x64xf32> -> vector<2x128xf32>
    %c0_62 = arith.constant 0 : index
    %c0_63 = arith.constant 0 : index
    %c0_64 = arith.constant 0 : index
    %94 = vector.load %arg15[%c0_62, %c0_63, %c0_64] : memref<2x2x128xf32, #tpu.memory_space<vmem>>, vector<1x2x128xf32>
    %95 = vector.shape_cast %94 : vector<1x2x128xf32> to vector<2x128xf32>
    %96 = vector.shape_cast %93 : vector<2x128xf32> to vector<1x2x128xf32>
    tpu.vector_store %arg15[%c0_62, %c0_63, %c0_64], %96 {strides = array<i32>} : memref<2x2x128xf32, #tpu.memory_space<vmem>>, vector<1x2x128xf32>,
    %c1 = arith.constant 1 : index
    %c0_65 = arith.constant 0 : index
    %c0_66 = arith.constant 0 : index
    %97 = vector.load %arg1[%c1, %c0_65, %c0_66] : memref<2x160x96xbf16, #tpu.memory_space<vmem>>, vector<1x160x96xbf16>
    %98 = vector.shape_cast %97 : vector<1x160x96xbf16> to vector<160x96xbf16>
    %c1_67 = arith.constant 1 : index
    %c0_68 = arith.constant 0 : index
    %c0_69 = arith.constant 0 : index
    %99 = vector.load %arg5[%c1_67, %c0_68, %c0_69] : memref<2x96x32xbf16, #tpu.memory_space<vmem>>, vector<1x96x32xbf16>
    %100 = vector.shape_cast %99 : vector<1x96x32xbf16> to vector<96x32xbf16>
    %cst_70 = arith.constant dense<0.000000e+00> : vector<160x32xf32>
    %101 = tpu.matmul %98, %100, %cst_70 {dimension_numbers = #tpu.dot_dimension_numbers<[1], [0], [0], [1], [0, 0, 1, 1], [], []>} : vector<160x96xbf16>, vector<96x32xbf16>, vector<160x32xf32> -> vector<160x32xf32>
    %c1_71 = arith.constant 1 : index
    %c0_72 = arith.constant 0 : index
    %c0_73 = arith.constant 0 : index
    %102 = vector.load %arg6[%c1_71, %c0_72, %c0_73] : memref<2x1x32xf32, #tpu.memory_space<vmem>>, vector<1x1x32xf32>
    %103 = vector.shape_cast %102 : vector<1x1x32xf32> to vector<1x32xf32>
    %104 = vector.broadcast %103 : vector<1x32xf32> to vector<160x32xf32>
    %105 = arith.addf %101, %104 : vector<160x32xf32>
    %cst_74 = arith.constant 0.000000e+00 : f32
    %106 = vector.broadcast %cst_74 : f32 to vector<160x32xf32>
    %107 = arith.cmpf ogt, %105, %106 : vector<160x32xf32>
    %cst_75 = arith.constant 0.00999999977 : f32
    %108 = vector.broadcast %cst_75 : f32 to vector<160x32xf32>
    %109 = arith.mulf %108, %105 : vector<160x32xf32>
    %110 = arith.select %107, %105, %109 : vector<160x32xi1>, vector<160x32xf32>
    %111 = vector.extract_strided_slice %110 {offsets = [0, 0], sizes = [112, 32], strides = [1, 1]} : vector<160x32xf32> to vector<112x32xf32>
    %112 = vector.shape_cast %111 : vector<112x32xf32> to vector<8x14x32xf32>
    %cst_76 = arith.constant dense<0.000000e+00> : vector<8x32xf32>
    %113 = vector.multi_reduction <add>, %112, %cst_76 [1] : vector<8x14x32xf32> to vector<8x32xf32>
    %cst_77 = arith.constant 1.400000e+01 : f32
    %114 = vector.broadcast %cst_77 : f32 to vector<8x32xf32>
    %115 = arith.divf %113, %114 : vector<8x32xf32>
    %116 = vector.extract_strided_slice %110 {offsets = [112, 0], sizes = [44, 32], strides = [1, 1]} : vector<160x32xf32> to vector<44x32xf32>
    %117 = vector.shape_cast %116 : vector<44x32xf32> to vector<2x22x32xf32>
    %cst_78 = arith.constant dense<0xFF800000> : vector<2x32xf32>
    %118 = vector.multi_reduction <maximumf>, %117, %cst_78 [1] : vector<2x22x32xf32> to vector<2x32xf32>
    %c1_79 = arith.constant 1 : index
    %c0_80 = arith.constant 0 : index
    %c0_81 = arith.constant 0 : index
    %119 = vector.load %arg3[%c1_79, %c0_80, %c0_81] : memref<2x8x32xbf16, #tpu.memory_space<vmem>>, vector<1x8x32xbf16>
    %120 = vector.shape_cast %119 : vector<1x8x32xbf16> to vector<8x32xbf16>
    %c1_82 = arith.constant 1 : index
    %c0_83 = arith.constant 0 : index
    %c0_84 = arith.constant 0 : index
    %121 = vector.load %arg7[%c1_82, %c0_83, %c0_84] : memref<2x32x1024xbf16, #tpu.memory_space<vmem>>, vector<1x32x1024xbf16>
    %122 = vector.shape_cast %121 : vector<1x32x1024xbf16> to vector<32x1024xbf16>
    %cst_85 = arith.constant dense<0.000000e+00> : vector<8x1024xf32>
    %123 = tpu.matmul %120, %122, %cst_85 {dimension_numbers = #tpu.dot_dimension_numbers<[1], [0], [0], [1], [0, 0, 1, 1], [], []>} : vector<8x32xbf16>, vector<32x1024xbf16>, vector<8x1024xf32> -> vector<8x1024xf32>
    %c1_86 = arith.constant 1 : index
    %c0_87 = arith.constant 0 : index
    %c0_88 = arith.constant 0 : index
    %124 = vector.load %arg8[%c1_86, %c0_87, %c0_88] : memref<2x1x1024xf32, #tpu.memory_space<vmem>>, vector<1x1x1024xf32>
    %125 = vector.shape_cast %124 : vector<1x1x1024xf32> to vector<1x1024xf32>
    %126 = vector.broadcast %125 : vector<1x1024xf32> to vector<8x1024xf32>
    %127 = arith.addf %123, %126 : vector<8x1024xf32>
    %cst_89 = arith.constant 0.000000e+00 : f32
    %128 = vector.broadcast %cst_89 : f32 to vector<8x1024xf32>
    %129 = arith.cmpf ogt, %127, %128 : vector<8x1024xf32>
    %cst_90 = arith.constant 0.00999999977 : f32
    %130 = vector.broadcast %cst_90 : f32 to vector<8x1024xf32>
    %131 = arith.mulf %130, %127 : vector<8x1024xf32>
    %132 = arith.select %129, %127, %131 : vector<8x1024xi1>, vector<8x1024xf32>
    %133 = arith.truncf %132 : vector<8x1024xf32> to vector<8x1024xbf16>
    %c1_91 = arith.constant 1 : index
    %c0_92 = arith.constant 0 : index
    %c0_93 = arith.constant 0 : index
    %134 = vector.load %arg9[%c1_91, %c0_92, %c0_93] : memref<2x1024x32xbf16, #tpu.memory_space<vmem>>, vector<1x1024x32xbf16>
    %135 = vector.shape_cast %134 : vector<1x1024x32xbf16> to vector<1024x32xbf16>
    %cst_94 = arith.constant dense<0.000000e+00> : vector<8x32xf32>
    %136 = tpu.matmul %133, %135, %cst_94 {dimension_numbers = #tpu.dot_dimension_numbers<[1], [0], [0], [1], [0, 0, 1, 1], [], []>} : vector<8x1024xbf16>, vector<1024x32xbf16>, vector<8x32xf32> -> vector<8x32xf32>
    %c1_95 = arith.constant 1 : index
    %c0_96 = arith.constant 0 : index
    %c0_97 = arith.constant 0 : index
    %137 = vector.load %arg10[%c1_95, %c0_96, %c0_97] : memref<2x1x32xf32, #tpu.memory_space<vmem>>, vector<1x1x32xf32>
    %138 = vector.shape_cast %137 : vector<1x1x32xf32> to vector<1x32xf32>
    %139 = vector.broadcast %138 : vector<1x32xf32> to vector<8x32xf32>
    %140 = arith.addf %136, %139 : vector<8x32xf32>
    %cst_98 = arith.constant 0.000000e+00 : f32
    %141 = vector.broadcast %cst_98 : f32 to vector<8x32xf32>
    %142 = arith.cmpf ogt, %140, %141 : vector<8x32xf32>
    %cst_99 = arith.constant 0.00999999977 : f32
    %143 = vector.broadcast %cst_99 : f32 to vector<8x32xf32>
    %144 = arith.mulf %143, %140 : vector<8x32xf32>
    %145 = arith.select %142, %140, %144 : vector<8x32xi1>, vector<8x32xf32>
    %c1_100 = arith.constant 1 : index
    %c0_101 = arith.constant 0 : index
    %c0_102 = arith.constant 0 : index
    %c0_103 = arith.constant 0 : index
    %146 = vector.load %arg4[%c1_100, %c0_101, %c0_102, %c0_103] : memref<2x2x4x1xf32, #tpu.memory_space<vmem>>, vector<1x2x4x1xf32>
    %147 = vector.shape_cast %146 : vector<1x2x4x1xf32> to vector<2x4x1xf32>
    %cst_104 = arith.constant 9.99999974E-5 : f32
    %148 = vector.broadcast %cst_104 : f32 to vector<2x4x1xf32>
    %149 = arith.mulf %147, %148 : vector<2x4x1xf32>
    %cst_105 = arith.constant dense<0xFF800000> : vector<2x1xf32>
    %150 = vector.multi_reduction <maximumf>, %149, %cst_105 [1] : vector<2x4x1xf32> to vector<2x1xf32>
    %151 = vector.shape_cast %150 : vector<2x1xf32> to vector<2x1x1xf32>
    %152 = vector.broadcast %151 : vector<2x1x1xf32> to vector<2x4x1xf32>
    %153 = arith.subf %149, %152 : vector<2x4x1xf32>
    %154 = math.exp %153 : vector<2x4x1xf32>
    %cst_106 = arith.constant dense<0.000000e+00> : vector<2x1xf32>
    %155 = vector.multi_reduction <add>, %154, %cst_106 [1] : vector<2x4x1xf32> to vector<2x1xf32>
    %156 = vector.shape_cast %155 : vector<2x1xf32> to vector<2x1x1xf32>
    %157 = vector.broadcast %156 : vector<2x1x1xf32> to vector<2x4x1xf32>
    %158 = arith.divf %154, %157 : vector<2x4x1xf32>
    %159 = vector.shape_cast %115 : vector<8x32xf32> to vector<2x4x32xf32>
    %cst_107 = arith.constant 0.000000e+00 : f32
    %160 = vector.broadcast %cst_107 : f32 to vector<2x4x32xf32>
    %161 = arith.maximumf %159, %160 : vector<2x4x32xf32>
    %162 = vector.broadcast %158 : vector<2x4x1xf32> to vector<2x4x32xf32>
    %163 = arith.mulf %161, %162 : vector<2x4x32xf32>
    %cst_108 = arith.constant dense<0.000000e+00> : vector<2x32xf32>
    %164 = vector.multi_reduction <add>, %163, %cst_108 [1] : vector<2x4x32xf32> to vector<2x32xf32>
    %165 = vector.shape_cast %145 : vector<8x32xf32> to vector<2x4x32xf32>
    %cst_109 = arith.constant 0.000000e+00 : f32
    %166 = vector.broadcast %cst_109 : f32 to vector<2x4x32xf32>
    %167 = arith.maximumf %165, %166 : vector<2x4x32xf32>
    %168 = vector.broadcast %158 : vector<2x4x1xf32> to vector<2x4x32xf32>
    %169 = arith.mulf %167, %168 : vector<2x4x32xf32>
    %cst_110 = arith.constant dense<0.000000e+00> : vector<2x32xf32>
    %170 = vector.multi_reduction <add>, %169, %cst_110 [1] : vector<2x4x32xf32> to vector<2x32xf32>
    %171 = tpu.concatenate %164, %170 in 1 : vector<2x32xf32>, vector<2x32xf32> -> vector<2x64xf32>
    %172 = arith.truncf %171 : vector<2x64xf32> to vector<2x64xbf16>
    %c1_111 = arith.constant 1 : index
    %c0_112 = arith.constant 0 : index
    %c0_113 = arith.constant 0 : index
    %173 = vector.load %arg11[%c1_111, %c0_112, %c0_113] : memref<2x64x64xbf16, #tpu.memory_space<vmem>>, vector<1x64x64xbf16>
    %174 = vector.shape_cast %173 : vector<1x64x64xbf16> to vector<64x64xbf16>
    %cst_114 = arith.constant dense<0.000000e+00> : vector<2x64xf32>
    %175 = tpu.matmul %172, %174, %cst_114 {dimension_numbers = #tpu.dot_dimension_numbers<[1], [0], [0], [1], [0, 0, 1, 1], [], []>} : vector<2x64xbf16>, vector<64x64xbf16>, vector<2x64xf32> -> vector<2x64xf32>
    %c1_115 = arith.constant 1 : index
    %c0_116 = arith.constant 0 : index
    %c0_117 = arith.constant 0 : index
    %176 = vector.load %arg12[%c1_115, %c0_116, %c0_117] : memref<2x1x64xf32, #tpu.memory_space<vmem>>, vector<1x1x64xf32>
    %177 = vector.shape_cast %176 : vector<1x1x64xf32> to vector<1x64xf32>
    %178 = vector.broadcast %177 : vector<1x64xf32> to vector<2x64xf32>
    %179 = arith.addf %175, %178 : vector<2x64xf32>
    %180 = arith.truncf %118 : vector<2x32xf32> to vector<2x32xbf16>
    %c1_118 = arith.constant 1 : index
    %c0_119 = arith.constant 0 : index
    %c0_120 = arith.constant 0 : index
    %181 = vector.load %arg13[%c1_118, %c0_119, %c0_120] : memref<2x32x32xbf16, #tpu.memory_space<vmem>>, vector<1x32x32xbf16>
    %182 = vector.shape_cast %181 : vector<1x32x32xbf16> to vector<32x32xbf16>
    %cst_121 = arith.constant dense<0.000000e+00> : vector<2x32xf32>
    %183 = tpu.matmul %180, %182, %cst_121 {dimension_numbers = #tpu.dot_dimension_numbers<[1], [0], [0], [1], [0, 0, 1, 1], [], []>} : vector<2x32xbf16>, vector<32x32xbf16>, vector<2x32xf32> -> vector<2x32xf32>
    %c1_122 = arith.constant 1 : index
    %c0_123 = arith.constant 0 : index
    %c0_124 = arith.constant 0 : index
    %184 = vector.load %arg14[%c1_122, %c0_123, %c0_124] : memref<2x1x32xf32, #tpu.memory_space<vmem>>, vector<1x1x32xf32>
    %185 = vector.shape_cast %184 : vector<1x1x32xf32> to vector<1x32xf32>
    %186 = vector.broadcast %185 : vector<1x32xf32> to vector<2x32xf32>
    %187 = arith.addf %183, %186 : vector<2x32xf32>
    %c1_125 = arith.constant 1 : index
    %c0_126 = arith.constant 0 : index
    %c0_127 = arith.constant 0 : index
    %188 = vector.load %arg2[%c1_125, %c0_126, %c0_127] : memref<2x2x32xf32, #tpu.memory_space<vmem>>, vector<1x2x32xf32>
    %189 = vector.shape_cast %188 : vector<1x2x32xf32> to vector<2x32xf32>
    %190 = tpu.concatenate %189, %187, %179 in 1 : vector<2x32xf32>, vector<2x32xf32>, vector<2x64xf32> -> vector<2x128xf32>
    %c1_128 = arith.constant 1 : index
    %c0_129 = arith.constant 0 : index
    %c0_130 = arith.constant 0 : index
    %191 = vector.load %arg15[%c1_128, %c0_129, %c0_130] : memref<2x2x128xf32, #tpu.memory_space<vmem>>, vector<1x2x128xf32>
    %192 = vector.shape_cast %191 : vector<1x2x128xf32> to vector<2x128xf32>
    %193 = vector.shape_cast %190 : vector<2x128xf32> to vector<1x2x128xf32>
    tpu.vector_store %arg15[%c1_128, %c0_129, %c0_130], %193 {strides = array<i32>} : memref<2x2x128xf32, #tpu.memory_space<vmem>>, vector<1x2x128xf32>,
    return
  }
  func.func @transform_0(%arg0: i32) -> (i32, i32, i32) {
    %c0_i32 = arith.constant 0 : i32
    %c0_i32_0 = arith.constant 0 : i32
    %c0_i32_1 = arith.constant 0 : i32
    %c0_i32_2 = arith.constant 0 : i32
    return %c0_i32, %c0_i32_0, %c0_i32_1 : i32, i32, i32
  }
  func.func @transform_1(%arg0: i32) -> (i32, i32, i32) {
    %c0_i32 = arith.constant 0 : i32
    %c0_i32_0 = arith.constant 0 : i32
    %c0_i32_1 = arith.constant 0 : i32
    %c0_i32_2 = arith.constant 0 : i32
    return %c0_i32, %c0_i32_0, %c0_i32_1 : i32, i32, i32
  }
  func.func @transform_2(%arg0: i32) -> (i32, i32, i32) {
    %c0_i32 = arith.constant 0 : i32
    %c0_i32_0 = arith.constant 0 : i32
    %c0_i32_1 = arith.constant 0 : i32
    %c0_i32_2 = arith.constant 0 : i32
    return %c0_i32, %c0_i32_0, %c0_i32_1 : i32, i32, i32
  }
  func.func @transform_3(%arg0: i32) -> (i32, i32, i32, i32) {
    %c0_i32 = arith.constant 0 : i32
    %c0_i32_0 = arith.constant 0 : i32
    %c0_i32_1 = arith.constant 0 : i32
    %c0_i32_2 = arith.constant 0 : i32
    %c0_i32_3 = arith.constant 0 : i32
    return %c0_i32, %c0_i32_0, %c0_i32_1, %c0_i32_2 : i32, i32, i32, i32
  }
  func.func @transform_4(%arg0: i32) -> (i32, i32, i32) {
    %c0_i32 = arith.constant 0 : i32
    %c0_i32_0 = arith.constant 0 : i32
    %c0_i32_1 = arith.constant 0 : i32
    %c0_i32_2 = arith.constant 0 : i32
    return %c0_i32, %c0_i32_0, %c0_i32_1 : i32, i32, i32
  }
  func.func @transform_5(%arg0: i32) -> (i32, i32, i32) {
    %c0_i32 = arith.constant 0 : i32
    %c0_i32_0 = arith.constant 0 : i32
    %c0_i32_1 = arith.constant 0 : i32
    %c0_i32_2 = arith.constant 0 : i32
    return %c0_i32, %c0_i32_0, %c0_i32_1 : i32, i32, i32
  }
  func.func @transform_6(%arg0: i32) -> (i32, i32, i32) {
    %c0_i32 = arith.constant 0 : i32
    %c0_i32_0 = arith.constant 0 : i32
    %c0_i32_1 = arith.constant 0 : i32
    %c0_i32_2 = arith.constant 0 : i32
    return %c0_i32, %c0_i32_0, %c0_i32_1 : i32, i32, i32
  }
  func.func @transform_7(%arg0: i32) -> (i32, i32, i32) {
    %c0_i32 = arith.constant 0 : i32
    %c0_i32_0 = arith.constant 0 : i32
    %c0_i32_1 = arith.constant 0 : i32
    %c0_i32_2 = arith.constant 0 : i32
    return %c0_i32, %c0_i32_0, %c0_i32_1 : i32, i32, i32
  }
  func.func @transform_8(%arg0: i32) -> (i32, i32, i32) {
    %c0_i32 = arith.constant 0 : i32
    %c0_i32_0 = arith.constant 0 : i32
    %c0_i32_1 = arith.constant 0 : i32
    %c0_i32_2 = arith.constant 0 : i32
    return %c0_i32, %c0_i32_0, %c0_i32_1 : i32, i32, i32
  }
  func.func @transform_9(%arg0: i32) -> (i32, i32, i32) {
    %c0_i32 = arith.constant 0 : i32
    %c0_i32_0 = arith.constant 0 : i32
    %c0_i32_1 = arith.constant 0 : i32
    %c0_i32_2 = arith.constant 0 : i32
    return %c0_i32, %c0_i32_0, %c0_i32_1 : i32, i32, i32
  }
  func.func @transform_10(%arg0: i32) -> (i32, i32, i32) {
    %c0_i32 = arith.constant 0 : i32
    %c0_i32_0 = arith.constant 0 : i32
    %c0_i32_1 = arith.constant 0 : i32
    %c0_i32_2 = arith.constant 0 : i32
    return %c0_i32, %c0_i32_0, %c0_i32_1 : i32, i32, i32
  }
  func.func @transform_11(%arg0: i32) -> (i32, i32, i32) {
    %c0_i32 = arith.constant 0 : i32
    %c0_i32_0 = arith.constant 0 : i32
    %c0_i32_1 = arith.constant 0 : i32
    %c0_i32_2 = arith.constant 0 : i32
    return %c0_i32, %c0_i32_0, %c0_i32_1 : i32, i32, i32
  }
  func.func @transform_12(%arg0: i32) -> (i32, i32, i32) {
    %c0_i32 = arith.constant 0 : i32
    %c0_i32_0 = arith.constant 0 : i32
    %c0_i32_1 = arith.constant 0 : i32
    %c0_i32_2 = arith.constant 0 : i32
    return %c0_i32, %c0_i32_0, %c0_i32_1 : i32, i32, i32
  }
  func.func @transform_13(%arg0: i32) -> (i32, i32, i32) {
    %c0_i32 = arith.constant 0 : i32
    %c0_i32_0 = arith.constant 0 : i32
    %c0_i32_1 = arith.constant 0 : i32
    %c0_i32_2 = arith.constant 0 : i32
    return %c0_i32, %c0_i32_0, %c0_i32_1 : i32, i32, i32
  }
  func.func @transform_14(%arg0: i32) -> (i32, i32, i32) {
    %c0_i32 = arith.constant 0 : i32
    %c0_i32_0 = arith.constant 0 : i32
    %c0_i32_1 = arith.constant 0 : i32
    %c0_i32_2 = arith.constant 0 : i32
    return %c0_i32, %c0_i32_0, %c0_i32_1 : i32, i32, i32
  }
}

</mosaic_0001>

<bundles_post_ra>
// kernel: tpu_custom_call.1
= control target key start
LH: loop header
LB: loop body
LE: loop exit
PB: predicated region body
PF: predicated region fallthrough
CT: control target
= control target key end

     0   :  { %vm471_vm0 = vcmask 261120   ;;  %s6193_s0 = inlined_call_operand.vmem [shape: bf16[2,160,96], index: 0, kind: input, shape index: {}]   ;;  %s6194_s1 = inlined_call_operand.vmem [shape: f32[2,2,32], index: 1, kind: input, shape index: {}]   ;;  %s6195_s2 = inlined_call_operand.vmem [shape: bf16[2,8,32], index: 2, kind: input, shape index: {}]   ;;  %s6196_s3 = inlined_call_operand.vmem [shape: f32[2,2,4,1], index: 3, kind: input, shape index: {}]   ;;  %s6197_s4 = inlined_call_operand.vmem [shape: bf16[2,96,32], index: 4, kind: input, shape index: {}]   ;;  %s6198_s5 = inlined_call_operand.vmem [shape: f32[2,1,32], index: 5, kind: input, shape index: {}]   ;;  %s6199_s6 = inlined_call_operand.vmem [shape: bf16[2,32,1024], index: 6, kind: input, shape index: {}]   ;;  %s6200_s7 = inlined_call_operand.vmem [shape: f32[2,1,1024], index: 7, kind: input, shape index: {}]   ;;  %s6201_s8 = inlined_call_operand.vmem [shape: bf16[2,1024,32], index: 8, kind: input, shape index: {}]   ;;  %s6202_s9 = inlined_call_operand.vmem [shape: f32[2,1,32], index: 9, kind: input, shape index: {}]   ;;  %s6203_s10 = inlined_call_operand.vmem [shape: bf16[2,64,64], index: 10, kind: input, shape index: {}]   ;;  %s6204_s11 = inlined_call_operand.vmem [shape: f32[2,1,64], index: 11, kind: input, shape index: {}]   ;;  %s6205_s12 = inlined_call_operand.vmem [shape: bf16[2,32,32], index: 12, kind: input, shape index: {}]   ;;  %s6206_s13 = inlined_call_operand.vmem [shape: f32[2,1,32], index: 13, kind: input, shape index: {}]   ;;  %s6207_s14 = inlined_call_operand.hbm [shape: f32[2,2,128], index: 14, kind: output, shape index: {}]  }
   0x1   :  { %v3700_v0 = vld [vmem:[%s6199_s6 + $0x40] sm:$0xf]  ;;  %v4669_v2 = vld [vmem:[%s6199_s6 + $0x44] sm:$0xf]  ;;  %v3708_v5 = vld [vmem:[%s6199_s6 + $0x48] sm:$0xf] }
   0x2   :  { %v4673_v1 = vld [vmem:[%s6199_s6 + $0x5c] sm:$0xf0]  ;;  %v3702_v4 = vld [vmem:[%s6199_s6 + $0x60] sm:$0xf0]  ;;  %v4674_v6 = vld [vmem:[%s6199_s6 + $0x64] sm:$0xf0] }
   0x3   :  { %v3701_v3 = vor.u32 %v4673_v1, %v3700_v0  ;;  %v3705_v7 = vor.u32 %v4669_v2, %v3702_v4  ;;  %v3709_v8 = vor.u32 %v4674_v6, %v3708_v5  ;;  %v4660_v9 = vld [vmem:[%s6197_s4 + $0x28] sm:$0xff]  ;;  %v3668_v10 = vld [vmem:[%s6199_s6] sm:$0xf]  ;;  %v4661_v13 = vld [vmem:[%s6199_s6 + $0x4] sm:$0xf] }
   0x4   :  { %v4665_v11 = vld [vmem:[%s6199_s6 + $0x1c] sm:$0xf0]  ;;  %v3670_v14 = vld [vmem:[%s6199_s6 + $0x20] sm:$0xf0]  ;;  %v3676_v15 = vld [vmem:[%s6199_s6 + $0x8] sm:$0xf]  ;;  %204 = vmatpush.bf16.msra.mxu0 %v4660_v9 }
   0x5   :  { %769 = vmatpush.bf16.msra.mxu1 %v3701_v3  ;;  %v3669_v12 = vor.u32 %v4665_v11, %v3668_v10  ;;  %782 = vmatpush.bf16.msra.mxu2 %v3705_v7  ;;  %v3673_v16 = vor.u32 %v4661_v13, %v3670_v14  ;;  %v4666_v17 = vld [vmem:[%s6199_s6 + $0x24] sm:$0xf0]  ;;  %v4659_v18 = vld [vmem:[%s6197_s4 + $0x20] sm:$0xff]  ;;  %v4670_v20 = vld [vmem:[%s6199_s6 + $0x4c] sm:$0xf] }
   0x6   :  { %795 = vmatpush.bf16.msra.mxu3 %v3709_v8  ;;  %v3677_v19 = vor.u32 %v4666_v17, %v3676_v15  ;;  %v3710_v21 = vld [vmem:[%s6199_s6 + $0x68] sm:$0xf0]  ;;  %v3716_v22 = vld [vmem:[%s6199_s6 + $0x50] sm:$0xf]  ;;  %v645_v23 = vld [vmem:[%s6195_s2] sm:$0xf] }
   0x7   :  { %v3713_v24 = vor.u32 %v4670_v20, %v3710_v21  ;;  %v4675_v25 = vld [vmem:[%s6199_s6 + $0x6c] sm:$0xf0]  ;;  %v4662_v27 = vld [vmem:[%s6199_s6 + $0xc] sm:$0xf]  ;;  %v4671_v29 = vld [vmem:[%s6199_s6 + $0x54] sm:$0xf] }
   0x8   :  { %v3717_v26 = vor.u32 %v4675_v25, %v3716_v22  ;;  %v3678_v28 = vld [vmem:[%s6199_s6 + $0x28] sm:$0xf0]  ;;  %v3718_v30 = vld [vmem:[%s6199_s6 + $0x70] sm:$0xf0]  ;;  %v3684_v31 = vld [vmem:[%s6199_s6 + $0x10] sm:$0xf]  ;;  %205 = vmatpush.bf16.msra.mxu0 %v4659_v18 }
   0x9   :  { %770 = vmatpush.bf16.msra.mxu1 %v3669_v12  ;;  %783 = vmatpush.bf16.msra.mxu2 %v3673_v16  ;;  %v4667_v32 = vld [vmem:[%s6199_s6 + $0x2c] sm:$0xf0]  ;;  %v4658_v33 = vld [vmem:[%s6197_s4 + $0x18] sm:$0xff]  ;;  %v3681_v34 = vor.u32 %v4662_v27, %v3678_v28  ;;  %v3721_v35 = vor.u32 %v4671_v29, %v3718_v30  ;;  %v4663_v36 = vld [vmem:[%s6199_s6 + $0x14] sm:$0xf] }
   0xa   :  { %796 = vmatpush.bf16.msra.mxu3 %v3677_v19  ;;  %v3686_v37 = vld [vmem:[%s6199_s6 + $0x30] sm:$0xf0]  ;;  %v3685_v38 = vor.u32 %v4667_v32, %v3684_v31  ;;  %v3724_v39 = vld [vmem:[%s6199_s6 + $0x58] sm:$0xf]  ;;  %v4672_v42 = vld [vmem:[%s6199_s6 + $0x5c] sm:$0xf] }
   0xb   :  { %v4676_v40 = vld [vmem:[%s6199_s6 + $0x74] sm:$0xf0]  ;;  %v3726_v43 = vld [vmem:[%s6199_s6 + $0x78] sm:$0xf0]  ;;  %v3689_v44 = vor.u32 %v4663_v36, %v3686_v37  ;;  %v4657_v49 = vld [vmem:[%s6197_s4 + $0x10] sm:$0xff] }
   0xc   :  { %3730 = vmatmul.msk.bf16.vlgmr.msra.gmra.mxu1 %vm471_vm0, %v645_v23  ;;  %3731 = vmatmul.msk.bf16.vlgmr.msra.gmra.mxu2 %vm471_vm0, %v645_v23  ;;  %v3725_v41 = vor.u32 %v4676_v40, %v3724_v39  ;;  %v3729_v45 = vor.u32 %v4672_v42, %v3726_v43  ;;  %v3692_v46 = vld [vmem:[%s6199_s6 + $0x18] sm:$0xf]  ;;  %v4664_v48 = vld [vmem:[%s6199_s6 + $0x1c] sm:$0xf] }
   0xd   :  { %808 = vmatpush.bf16.msrb.mxu1 %v3713_v24  ;;  %821 = vmatpush.bf16.msrb.mxu2 %v3717_v26  ;;  %v4668_v47 = vld [vmem:[%s6199_s6 + $0x34] sm:$0xf0]  ;;  %v3694_v50 = vld [vmem:[%s6199_s6 + $0x38] sm:$0xf0] }
   0xe   :  { %3732 = vmatmul.msk.bf16.vlgmr.msra.gmra.mxu3 %vm471_vm0, %v645_v23  ;;  %206 = vmatpush.bf16.msra.mxu0 %v4658_v33  ;;  %v3693_v51 = vor.u32 %v4668_v47, %v3692_v46  ;;  %v3697_v52 = vor.u32 %v4664_v48, %v3694_v50 }
   0xf   :  { %834 = vmatpush.bf16.msrb.mxu3 %v3721_v35 }
  0x11   :  { %809 = vmatpush.bf16.msrb.mxu1 %v3681_v34  ;;  %822 = vmatpush.bf16.msrb.mxu2 %v3685_v38 }
  0x13   :  { %835 = vmatpush.bf16.msrb.mxu3 %v3689_v44 }
  0x15   :  { %847 = vmatpush.bf16.msra.mxu1 %v3725_v41  ;;  %860 = vmatpush.bf16.msra.mxu2 %v3729_v45 }
  0x16   :  { %19 = vsyncpa [#allocation3], 0  ;;  %207 = vmatpush.bf16.msra.mxu0 %v4657_v49  ;;  %v4656_v53 = vld [vmem:[%s6197_s4 + $0x8] sm:$0xff]  ;;  %v4655_v54 = vld [vmem:[%s6197_s4] sm:$0xff]  ;;  %vm171_vm1 = vcmask 785408   ;;  %vm1526_vm2 = vcmask 3072  }
  0x17   :  { %v4645_v55 = vld [vmem:[%s6193_s0] sm:$0xff]  ;;  %v4646_v56 = vld [vmem:[%s6193_s0 + $0x8] sm:$0xff]  ;;  %v4684_v57 = vld [vmem:[%s6201_s8 + $0x38] sm:$0xff]  ;;  %s4912_s26 = smov 32   ;;  %s3580_s15 = sshll.u32 %s6207_s14, 4  ;;  %s3581_s15 = int_to_ptr.hbm [resolvable:$true] %s3580_s15 }
  0x18   :  { %v4692_v58 = vld [vmem:[%s6201_s8 + $0x78] sm:$0xff]  ;;  %1415 = vmatpush.bf16.msra.mxu3 %v4684_v57  ;;  %v4683_v59 = vld [vmem:[%s6201_s8 + $0x30] sm:$0xff]  ;;  %v4682_v61 = vld [vmem:[%s6201_s8 + $0x28] sm:$0xff]  ;;  %s4915_s16 = smov [#allocation2]  }
  0x19   :  { %848 = vmatpush.bf16.msra.mxu1 %v3693_v51  ;;  %861 = vmatpush.bf16.msra.mxu2 %v3697_v52  ;;  %v4647_v60 = vld [vmem:[%s6193_s0 + $0x10] sm:$0xff]  ;;  %v4681_v63 = vld [vmem:[%s6201_s8 + $0x20] sm:$0xff]  ;;  %v4690_v0 = vld [vmem:[%s6201_s8 + $0x68] sm:$0xff] }
  0x1a   :  { %208 = vmatpush.bf16.msra.mxu0 %v4656_v53  ;;  %v4691_v62 = vld [vmem:[%s6201_s8 + $0x70] sm:$0xff]  ;;  %v4700_v1 = vld [vmem:[%s6201_s8 + $0xb8] sm:$0xff]  ;;  %v4689_v3 = vld [vmem:[%s6201_s8 + $0x60] sm:$0xff] }
  0x1b   :  { %v4680_v2 = vld [vmem:[%s6201_s8 + $0x18] sm:$0xff]  ;;  %v4679_v4 = vld [vmem:[%s6201_s8 + $0x10] sm:$0xff]  ;;  %v4678_v7 = vld [vmem:[%s6201_s8 + $0x8] sm:$0xff] }
  0x1c   :  { %3733 = vmatmul.msk.bf16.vlgmr.msrb.gmra.mxu1 %vm471_vm0, %v645_v23  ;;  %3734 = vmatmul.msk.bf16.vlgmr.msrb.gmra.mxu2 %vm471_vm0, %v645_v23  ;;  %v4688_v5 = vld [vmem:[%s6201_s8 + $0x58] sm:$0xff]  ;;  %v4699_v8 = vld [vmem:[%s6201_s8 + $0xb0] sm:$0xff]  ;;  %v4677_v10 = vld [vmem:[%s6201_s8] sm:$0xff] }
  0x1d   :  { %1428 = vmatpush.bf16.msrb.mxu1 %v4692_v58  ;;  %1416 = vmatpush.bf16.msra.mxu3 %v4683_v59  ;;  %v4648_v6 = vld [vmem:[%s6193_s0 + $0x18] sm:$0xff]  ;;  %v4687_v9 = vld [vmem:[%s6201_s8 + $0x50] sm:$0xff]  ;;  %v4698_v11 = vld [vmem:[%s6201_s8 + $0xa8] sm:$0xff] }
  0x1e   :  { %209 = vmatpush.bf16.msra.mxu0 %v4655_v54  ;;  %3735 = vmatmul.msk.bf16.vlgmr.msrb.gmra.mxu3 %vm471_vm0, %v645_v23  ;;  %v4708_v12 = vld [vmem:[%s6201_s8 + $0xf8] sm:$0xff]  ;;  %v4686_v13 = vld [vmem:[%s6201_s8 + $0x48] sm:$0xff]  ;;  %v1522_v14 = vld [vmem:[%s6196_s3] sm:$0xf] }
  0x1f   :  { %1441 = vmatpush.bf16.msrb.mxu2 %v4700_v1  ;;  %v1524_v15 = vmul.f32 0.0001, %v1522_v14  ;;  %v4697_v16 = vld [vmem:[%s6201_s8 + $0xa0] sm:$0xff]  ;;  %v4707_v17 = vld [vmem:[%s6201_s8 + $0xf0] sm:$0xff]  ;;  %v4716_v20 = vld [vmem:[%s6201_s8 + $0x138] sm:$0xff] }
  0x20   :  { %v4685_v18 = vld [vmem:[%s6201_s8 + $0x40] sm:$0xff]  ;;  %v4706_v26 = vld [vmem:[%s6201_s8 + $0xe8] sm:$0xff]  ;;  %v4695_v33 = vld [vmem:[%s6201_s8 + $0x90] sm:$0xff] }
  0x21   :  { %3656 = vmatmul.msk.bf16.vlgmr.msra.gmra.mxu0 %vm171_vm1, %v4645_v55  ;;  %1417 = vmatpush.bf16.msra.mxu3 %v4682_v61  ;;  %v1527_v19 = vsel %vm1526_vm2, %v1524_v15, -inf  ;;  %v1523_v22 = vld [vmem:[%s6196_s3 + $0x4] sm:$0xf]  ;;  %v4715_v34 = vld [vmem:[%s6201_s8 + $0x130] sm:$0xff]  ;;  %v4694_v38 = vld [vmem:[%s6201_s8 + $0x88] sm:$0xff] }
  0x22   :  { %1429 = vmatpush.bf16.msrb.mxu1 %v4691_v62  ;;  %v1528_v21 = vrot.slane %v1527_v19, 4  ;;  %v1525_v25 = vmul.f32 0.0001, %v1523_v22  ;;  %v4649_v27 = vld [vmem:[%s6193_s0 + $0x20] sm:$0xff]  ;;  %v4714_v39 = vld [vmem:[%s6201_s8 + $0x128] sm:$0xff]  ;;  %v4704_v41 = vld [vmem:[%s6201_s8 + $0xd8] sm:$0xff] }
  0x23   :  { %1442 = vmatpush.bf16.msrb.mxu2 %v4699_v8  ;;  %v4705_v35 = vld [vmem:[%s6201_s8 + $0xe0] sm:$0xff]  ;;  %v4703_v48 = vld [vmem:[%s6201_s8 + $0xd0] sm:$0xff]  ;;  %v4724_v49 = vld [vmem:[%s6201_s8 + $0x178] sm:$0xff] }
  0x24   :  { %v1529_v24 = vmax.f32 %v1527_v19, %v1528_v21  ;;  %v1534_v29 = vsel %vm1526_vm2, %v1525_v25, -inf  ;;  %v4693_v45 = vld [vmem:[%s6201_s8 + $0x80] sm:$0xff]  ;;  %v4650_v53 = vld [vmem:[%s6193_s0 + $0x28] sm:$0xff]  ;;  %v4712_v54 = vld [vmem:[%s6201_s8 + $0x118] sm:$0xff] }
  0x25   :  { %1418 = vmatpush.bf16.msra.mxu3 %v4681_v63  ;;  %v1535_v30 = vrot.slane %v1534_v29, 4  ;;  %v4713_v46 = vld [vmem:[%s6201_s8 + $0x120] sm:$0xff]  ;;  %v4702_v55 = vld [vmem:[%s6201_s8 + $0xc8] sm:$0xff]  ;;  %v4711_v59 = vld [vmem:[%s6201_s8 + $0x110] sm:$0xff] }
  0x26   :  { %1430 = vmatpush.bf16.msrb.mxu1 %v4690_v0  ;;  %v1530_v28 = vrot.slane %v1529_v24, 2  ;;  %v4701_v61 = vld [vmem:[%s6201_s8 + $0xc0] sm:$0xff]  ;;  %v4722_v62 = vld [vmem:[%s6201_s8 + $0x168] sm:$0xff]  ;;  %v4651_v14 = vld [vmem:[%s6193_s0 + $0x30] sm:$0xff] }
  0x27   :  { %1443 = vmatpush.bf16.msrb.mxu2 %v4698_v11  ;;  %v1536_v32 = vmax.f32 %v1534_v29, %v1535_v30  ;;  %v4710_v1 = vld [vmem:[%s6201_s8 + $0x108] sm:$0xff]  ;;  %v4709_v8 = vld [vmem:[%s6201_s8 + $0x100] sm:$0xff] }
  0x28   :  { %v1531_v31 = vmax.f32 %v1529_v24, %v1530_v28  ;;  %v4718_v19 = vld [vmem:[%s6201_s8 + $0x148] sm:$0xff]  ;;  %v5305_v21 = vld [vmem:[%s6200_s7] sm:$0xff] }
  0x29   :  { %1419 = vmatpush.bf16.msra.mxu3 %v4680_v2  ;;  %v1537_v37 = vrot.slane %v1536_v32, 2  ;;  %v4717_v24 = vld [vmem:[%s6201_s8 + $0x140] sm:$0xff]  ;;  %v664_v28 = vperm.slane %v5305_v21, 0 }
  0x2a   :  { %1431 = vmatpush.bf16.msrb.mxu1 %v4689_v3  ;;  %v1532_v36 = vrot.slane %v1531_v31, 1 }
  0x2b   :  { %1444 = vmatpush.bf16.msrb.mxu2 %v4697_v16  ;;  %v1538_v42 = vmax.f32 %v1536_v32, %v1537_v37 }
  0x2c   :  { %3736 = vmatmul.msk.bf16.vlgmr.msra.gmra.mxu1 %vm471_vm0, %v645_v23  ;;  %3737 = vmatmul.msk.bf16.vlgmr.msra.gmra.mxu2 %vm471_vm0, %v645_v23  ;;  %v4696_v23 = vld [vmem:[%s6201_s8 + $0x98] sm:$0xff]  ;;  %v1533_v40 = vmax.f32 %v1531_v31, %v1532_v36 }
  0x2d   :  { %1420 = vmatpush.bf16.msra.mxu3 %v4679_v4  ;;  %v1539_v44 = vrot.slane %v1538_v42, 1  ;;  %v4721_v4 = vld [vmem:[%s6201_s8 + $0x160] sm:$0xff] }
  0x2e   :  { %1432 = vmatpush.bf16.msrb.mxu1 %v4688_v5  ;;  %v1541_v43 = vsub.f32 %v1524_v15, %v1533_v40  ;;  %v4719_v15 = vld [vmem:[%s6201_s8 + $0x150] sm:$0xff] }
  0x2f   :  { %1445 = vmatpush.bf16.msrb.mxu2 %v4696_v23  ;;  %v1540_v50 = vmax.f32 %v1538_v42, %v1539_v44  ;;  %v666_v44 = vperm.slane %v5305_v21, 2 }
  0x30   :  { %v1543_v47 = vmul.f32 1.442695, %v1541_v43 }
  0x31   :  { %3657 = vmatmul.msk.bf16.gmra.mxu0 %vm171_vm1, %v4646_v56  ;;  %1421 = vmatpush.bf16.msra.mxu3 %v4678_v7  ;;  %v1542_v51 = vsub.f32 %v1525_v25, %v1540_v50  ;;  %v4723_v56 = vld [vmem:[%s6201_s8 + $0x170] sm:$0xff] }
  0x32   :  { %1433 = vmatpush.bf16.msrb.mxu1 %v4687_v9  ;;  %4866 = vpow2.f32 %v1543_v47 }
  0x33   :  { %1446 = vmatpush.bf16.msrb.mxu2 %v4695_v33  ;;  %v1545_v52 = vmul.f32 1.442695, %v1542_v51 }
  0x35   :  { %1422 = vmatpush.bf16.msra.mxu3 %v4677_v10  ;;  %4868 = vpow2.f32 %v1545_v52  ;;  %v4720_v10 = vld [vmem:[%s6201_s8 + $0x158] sm:$0xff] }
  0x36   :  { %1434 = vmatpush.bf16.msrb.mxu1 %v4686_v13 }
  0x37   :  { %1447 = vmatpush.bf16.msrb.mxu2 %v4694_v38 }
  0x38   :  { %v5262_v57 = vpop.eup %4866 }
  0x39   :  { %1454 = vmatpush.bf16.msrb.mxu3 %v4708_v12  ;;  %v1547_v58 = vsel %vm1526_vm2, %v5262_v57, 0.0 }
  0x3a   :  { %1435 = vmatpush.bf16.msrb.mxu1 %v4685_v18 }
  0x3b   :  { %1448 = vmatpush.bf16.msrb.mxu2 %v4693_v45  ;;  %v5276_v0 = vpop.eup %4868 }
  0x3c   :  { %v1554_v3 = vsel %vm1526_vm2, %v5276_v0, 0.0 }
  0x3d   :  { %1455 = vmatpush.bf16.msrb.mxu3 %v4707_v17  ;;  %v1555_v5 = vrot.slane %v1554_v3, 4 }
  0x3e   :  { %1467 = vmatpush.bf16.msra.mxu1 %v4716_v20 }
  0x3f   :  { %1480 = vmatpush.bf16.msra.mxu2 %v4724_v49  ;;  %v1556_v7 = vadd.f32 %v1555_v5, %v1554_v3  ;;  %v4730_v3 = vld [vmem:[%s6201_s8 + $0x1a8] sm:$0xff] }
  0x41   :  { %3658 = vmatmul.msk.bf16.gmra.mxu0 %vm171_vm1, %v4647_v60  ;;  %1456 = vmatpush.bf16.msrb.mxu3 %v4706_v26  ;;  %v1548_v60 = vrot.slane %v1547_v58, 4  ;;  %v1557_v11 = vrot.slane %v1556_v7, 2 }
  0x42   :  { %1468 = vmatpush.bf16.msra.mxu1 %v4715_v34  ;;  %v4911_v34 = vmov 0  }
  0x43   :  { %1481 = vmatpush.bf16.msra.mxu2 %v4723_v56  ;;  %v1549_v63 = vadd.f32 %v1548_v60, %v1547_v58  ;;  %v1558_v13 = vadd.f32 %v1557_v11, %v1556_v7  ;;  %4855 = vset.pattern.permute.xlu0 %v4911_v34  ;;  %v4731_v58 = vld [vmem:[%s6201_s8 + $0x1b0] sm:$0xff] }
  0x44   :  { %4857 = vset.pattern.permute.xlu2 %v4911_v34  ;;  %4856 = vset.pattern.permute.xlu1 %v4911_v34 }
  0x45   :  { %1457 = vmatpush.bf16.msrb.mxu3 %v4705_v35  ;;  %v1550_v2 = vrot.slane %v1549_v63, 2  ;;  %v1559_v16 = vrot.slane %v1558_v13, 1 }
  0x46   :  { %1469 = vmatpush.bf16.msra.mxu1 %v4714_v39  ;;  %v665_v39 = vperm.slane %v5305_v21, 1 }
  0x47   :  { %1482 = vmatpush.bf16.msra.mxu2 %v4722_v62  ;;  %v1560_v17 = vadd.f32 %v1559_v16, %v1558_v13 }
  0x49   :  { %1458 = vmatpush.bf16.msrb.mxu3 %v4704_v41  ;;  %v1587_v41 = vand.u32 2147483648, %v1560_v17  ;;  %vm1581_vm8 = vweird.f32 %v1560_v17  ;;  %v1585_v45 = vand.u32 2147483647, %v1560_v17 }
  0x4a   :  { %1470 = vmatpush.bf16.msra.mxu1 %v4713_v46 }
  0x4b   :  { %1483 = vmatpush.bf16.msra.mxu2 %v4721_v4  ;;  %v1588_v46 = vor.u32 1.1754944e-38, %v1587_v41  ;;  %vm1586_vm11 = vcmp.eq.f32.partialorder %v1585_v45, 8.507059e+37 }
  0x4d   :  { %1459 = vmatpush.bf16.msrb.mxu3 %v4703_v48  ;;  %v4732_v48 = vld [vmem:[%s6201_s8 + $0x1b8] sm:$0xff] }
  0x4e   :  { %1471 = vmatpush.bf16.msra.mxu1 %v4712_v54 }
  0x4f   :  { %1484 = vmatpush.bf16.msra.mxu2 %v4720_v10  ;;  %v4729_v10 = vld [vmem:[%s6201_s8 + $0x1a0] sm:$0xff] }
  0x51   :  { %3659 = vmatmul.msk.bf16.gmra.mxu0 %vm171_vm1, %v4648_v6  ;;  %1460 = vmatpush.bf16.msrb.mxu3 %v4702_v55  ;;  %v1551_v6 = vadd.f32 %v1550_v2, %v1549_v63  ;;  %v4740_v63 = vld [vmem:[%s6201_s8 + $0x1f8] sm:$0xff] }
  0x52   :  { %1472 = vmatpush.bf16.msra.mxu1 %v4711_v59 }
  0x53   :  { %v1552_v9 = vrot.slane %v1551_v6, 1  ;;  %1485 = vmatpush.bf16.msra.mxu2 %v4719_v15  ;;  %v4738_v15 = vld [vmem:[%s6201_s8 + $0x1e8] sm:$0xff] }
  0x55   :  { %1461 = vmatpush.bf16.msrb.mxu3 %v4701_v61  ;;  %v1553_v12 = vadd.f32 %v1552_v9, %v1551_v6  ;;  %v5331_v6 = vld [vmem:[%s6198_s5] ss:$0 sm:$0xff] }
  0x56   :  { %1473 = vmatpush.bf16.msra.mxu1 %v4710_v1 }
  0x57   :  { %4870 = vrcp.f32 %v1553_v12  ;;  %1486 = vmatpush.bf16.msra.mxu2 %v4718_v19  ;;  %v1572_v23 = vand.u32 2147483648, %v1553_v12  ;;  %vm1566_vm3 = vweird.f32 %v1553_v12  ;;  %v1570_v25 = vand.u32 2147483647, %v1553_v12  ;;  %v4728_v19 = vld [vmem:[%s6201_s8 + $0x198] sm:$0xff] }
  0x58   :  { %4872 = vrcp.f32 %v1560_v17 }
  0x59   :  { %v1573_v29 = vor.u32 1.1754944e-38, %v1572_v23  ;;  %vm1571_vm6 = vcmp.eq.f32.partialorder %v1570_v25, 8.507059e+37  ;;  %v4737_v25 = vld [vmem:[%s6201_s8 + $0x1e0] sm:$0xff] }
  0x5a   :  { %1474 = vmatpush.bf16.msra.mxu1 %v4709_v8  ;;  %v4739_v8 = vld [vmem:[%s6201_s8 + $0x1f0] sm:$0xff] }
  0x5b   :  { %1487 = vmatpush.bf16.msra.mxu2 %v4717_v24 }
  0x5d   :  { %v4871_v18 = vpop.eup %4870 }
  0x5e   :  { %v1562_v20 = vmul.f32 %v4871_v18, %v1553_v12  ;;  %vm1567_vm4 = vweird.f32 %v4871_v18  ;;  %v4873_v26 = vpop.eup %4872 }
  0x5f   :  { %vm1568_vm5 = vmor %vm1566_vm3, %vm1567_vm4  ;;  %v1577_v30 = vmul.f32 %v4873_v26, %v1560_v17  ;;  %vm1582_vm9 = vweird.f32 %v4873_v26 }
  0x60   :  { %v1563_v22 = vsub.f32 1.0, %v1562_v20  ;;  %vm1583_vm10 = vmor %vm1581_vm8, %vm1582_vm9 }
  0x61   :  { %3660 = vmatmul.msk.bf16.gmra.mxu0 %vm171_vm1, %v4649_v27  ;;  %v1578_v32 = vsub.f32 1.0, %v1577_v30 }
  0x62   :  { %v1564_v27 = vmul.f32 %v4871_v18, %v1563_v22 }
  0x63   :  { %v1579_v38 = vmul.f32 %v4873_v26, %v1578_v32 }
  0x64   :  { %v1565_v31 = vadd.f32 %v4871_v18, %v1564_v27 }
  0x65   :  { %v1580_v43 = vadd.f32 %v4873_v26, %v1579_v38 }
  0x66   :  { %v1569_v35 = vsel %vm1568_vm5, %v4871_v18, %v1565_v31  ;;  %v669_v18 = vperm.slane %v5305_v21, 5  ;;  %v4652_v31 = vld [vmem:[%s6193_s0 + $0x38] sm:$0xff] }
  0x67   :  { %v1574_v37 = vsel %vm1571_vm6, %v1573_v29, %v1569_v35  ;;  %v1584_v50 = vsel %vm1583_vm10, %v4873_v26, %v1580_v43 }
  0x68   :  { %v1575_v40 = vmul.f32 %v5262_v57, %v1574_v37 }
  0x6a   :  { %1601 = vperm.xlu0 %4855, %v1575_v40   ;;  %v670_v40 = vperm.slane %v5305_v21, 6 }
  0x71   :  { %3661 = vmatmul.msk.bf16.gmra.mxu0 %vm171_vm1, %v4650_v53  ;;  %v1589_v53 = vsel %vm1586_vm11, %v1588_v46, %v1584_v50 }
  0x72   :  { %v1590_v57 = vmul.f32 %v5276_v0, %v1589_v53  ;;  %v667_v0 = vperm.slane %v5305_v21, 3  ;;  %v4735_v53 = vld [vmem:[%s6201_s8 + $0x1d0] sm:$0xff] }
  0x74   :  { %1606 = vperm.xlu0 %4855, %v1590_v57   ;;  %v4762_v57 = vld [vmem:[%s6197_s4 + $0x58] sm:$0xff] }
  0x81   :  { %3662 = vmatmul.msk.bf16.gmra.mxu0 %vm171_vm1, %v4651_v14  ;;  %v668_v14 = vperm.slane %v5305_v21, 4 }
  0x89   :  { %v772_v33 = vpop.f32.mrf.mxu1 }
  0x8a   :  { %v773_v36 = vadd.f32 %v772_v33, %v664_v28  ;;  %v4727_v33 = vld [vmem:[%s6201_s8 + $0x190] sm:$0xff] }
  0x8c   :  { %vm867_vm7 = vcmp.gt.f32.partialorder %v773_v36, 0.0  ;;  %v875_v42 = vmul.f32 0.01, %v773_v36 }
  0x8e   :  { %v883_v47 = vsel %vm867_vm7, %v773_v36, %v875_v42 }
  0x8f   :  { %v891_v49 = vpack.c.bf16 %v883_v47, %v883_v47  ;;  %v785_v51 = vpop.f32.mrf.mxu2 }
  0x90   :  { %v786_v54 = vadd.f32 %v785_v51, %v665_v39  ;;  %v4736_v39 = vld [vmem:[%s6201_s8 + $0x1d8] sm:$0xff] }
  0x91   :  { %v798_v52 = vpop.f32.mrf.mxu3  ;;  %v774_v56 = vpop.f32.mrf.mxu1  ;;  %1423 = vmatmul.bf16.vlgmr.msra.gmra.mxu3 %v891_v49  ;;  %3663 = vmatmul.msk.bf16.gmra.mxu0 %vm171_vm1, %v4652_v31 }
  0x92   :  { %v799_v55 = vadd.f32 %v798_v52, %v666_v44  ;;  %1493 = vmatpush.bf16.msra.mxu3 %v4732_v48  ;;  %vm868_vm12 = vcmp.gt.f32.partialorder %v786_v54, 0.0  ;;  %v876_v59 = vmul.f32 0.01, %v786_v54  ;;  %v4726_v44 = vld [vmem:[%s6201_s8 + $0x188] sm:$0xff] }
  0x94   :  { %vm869_vm13 = vcmp.gt.f32.partialorder %v799_v55, 0.0  ;;  %v877_v60 = vmul.f32 0.01, %v799_v55  ;;  %v884_v61 = vsel %vm868_vm12, %v786_v54, %v876_v59 }
  0x95   :  { %v892_v1 = vpack.c.bf16 %v884_v61, %v884_v61  ;;  %v671_v61 = vperm.slane %v5305_v21, 7  ;;  %v4733_v21 = vld [vmem:[%s6201_s8 + $0x1c0] sm:$0xff] }
  0x96   :  { %v885_v62 = vsel %vm869_vm13, %v799_v55, %v877_v60  ;;  %1494 = vmatpush.bf16.msra.mxu3 %v4731_v58  ;;  %v4725_v55 = vld [vmem:[%s6201_s8 + $0x180] sm:$0xff] }
  0x97   :  { %v893_v2 = vpack.c.bf16 %v885_v62, %v885_v62  ;;  %v787_v4 = vpop.f32.mrf.mxu2  ;;  %1436 = vmatmul.bf16.vlgmr.msrb.gmra.mxu1 %v892_v1  ;;  %v4734_v62 = vld [vmem:[%s6201_s8 + $0x1c8] sm:$0xff] }
  0x98   :  { %1506 = vmatpush.bf16.msrb.mxu1 %v4740_v63 }
  0x99   :  { %v800_v5 = vpop.f32.mrf.mxu3  ;;  %1449 = vmatmul.bf16.vlgmr.msrb.gmra.mxu2 %v893_v2  ;;  %v811_v7 = vpop.f32.mrf.mxu1  ;;  %v4761_v2 = vld [vmem:[%s6197_s4 + $0x50] sm:$0xff] }
  0x9a   :  { %v812_v9 = vadd.f32 %v811_v7, %v667_v0  ;;  %1495 = vmatpush.bf16.msra.mxu3 %v4730_v3 }
  0x9c   :  { %vm870_vm14 = vcmp.gt.f32.partialorder %v812_v9, 0.0  ;;  %v878_v12 = vmul.f32 0.01, %v812_v9  ;;  %1507 = vmatpush.bf16.msrb.mxu1 %v4739_v8 }
  0x9e   :  { %v211_v11 = vpop.f32.mrf.mxu0  ;;  %v886_v16 = vsel %vm870_vm14, %v812_v9, %v878_v12  ;;  %1496 = vmatpush.bf16.msra.mxu3 %v4729_v10  ;;  %v4760_v12 = vld [vmem:[%s6197_s4 + $0x48] sm:$0xff] }
  0x9f   :  { %v212_v13 = vadd.f32 %v5331_v6, %v211_v11  ;;  %v894_v20 = vpack.c.bf16 %v886_v16, %v886_v16  ;;  %v824_v23 = vpop.f32.mrf.mxu2  ;;  %v4653_v11 = vld [vmem:[%s6193_s0 + $0x40] sm:$0xff] }
  0xa0   :  { %v825_v29 = vadd.f32 %v824_v23, %v668_v14  ;;  %1508 = vmatpush.bf16.msrb.mxu1 %v4738_v15 }
  0xa1   :  { %vm261_vm15 = vcmp.gt.f32.partialorder %v212_v13, 0.0  ;;  %v281_v17 = vmul.f32 0.01, %v212_v13  ;;  %v837_v24 = vpop.f32.mrf.mxu3  ;;  %v813_v30 = vpop.f32.mrf.mxu1  ;;  %1462 = vmatmul.bf16.vlgmr.msrb.gmra.mxu3 %v894_v20  ;;  %3664 = vmatmul.msk.bf16.gmra.mxu0 %vm171_vm1, %v4653_v11  ;;  %v4759_v20 = vld [vmem:[%s6197_s4 + $0x40] sm:$0xff] }
  0xa2   :  { %v838_v32 = vadd.f32 %v837_v24, %v669_v18  ;;  %1497 = vmatpush.bf16.msra.mxu3 %v4728_v19  ;;  %vm871_vm3 = vcmp.gt.f32.partialorder %v825_v29, 0.0  ;;  %v879_v34 = vmul.f32 0.01, %v825_v29 }
  0xa3   :  { %v301_v22 = vsel %vm261_vm15, %v212_v13, %v281_v17 }
  0xa4   :  { %v335_v26 = vrot.slane %v301_v22, 2  ;;  %v336_v27 = vrot.slane %v301_v22, 4  ;;  %v337_v28 = vrot.slane %v301_v22, 6  ;;  %377 = vst [vmem:[#allocation1] ss:$4 sm:$0xff] %v301_v22  ;;  %vm872_vm4 = vcmp.gt.f32.partialorder %v838_v32, 0.0  ;;  %1509 = vmatpush.bf16.msrb.mxu1 %v4737_v25 }
  0xa5   :  { %v880_v36 = vmul.f32 0.01, %v838_v32  ;;  %v887_v38 = vsel %vm871_vm3, %v825_v29, %v879_v34 }
  0xa6   :  { %379 = vst [vmem:[#allocation1 + $0x1] ss:$4 sm:$0xff] %v335_v26  ;;  %v213_v35 = vpop.f32.mrf.mxu0  ;;  %v895_v41 = vpack.c.bf16 %v887_v38, %v887_v38  ;;  %1498 = vmatpush.bf16.msra.mxu3 %v4727_v33 }
  0xa7   :  { %381 = vst [vmem:[#allocation1 + $0x2] ss:$4 sm:$0xff] %v336_v27  ;;  %v214_v37 = vadd.f32 %v5331_v6, %v213_v35  ;;  %v888_v42 = vsel %vm872_vm4, %v838_v32, %v880_v36  ;;  %v826_v47 = vpop.f32.mrf.mxu2  ;;  %v4757_v32 = vld [vmem:[%s6197_s4 + $0x30] sm:$0xff] }
  0xa8   :  { %383 = vst [vmem:[#allocation1 + $0x3] ss:$4 sm:$0xff] %v337_v28  ;;  %v896_v45 = vpack.c.bf16 %v888_v42, %v888_v42  ;;  %1475 = vmatmul.bf16.vlgmr.msra.gmra.mxu1 %v895_v41  ;;  %v4758_v28 = vld [vmem:[%s6197_s4 + $0x38] sm:$0xff]  ;;  %s4914_s4 = smov 64  }
  0xa9   :  { %vm262_vm5 = vcmp.gt.f32.partialorder %v214_v37, 0.0  ;;  %v282_v43 = vmul.f32 0.01, %v214_v37  ;;  %v839_v48 = vpop.f32.mrf.mxu3  ;;  %1510 = vmatpush.bf16.msrb.mxu1 %v4736_v39  ;;  %v850_v52 = vpop.f32.mrf.mxu1  ;;  %v4747_v39 = vld [vmem:[%s6193_s0 + $0x50] sm:$0xff] }
  0xaa   :  { %1488 = vmatmul.bf16.vlgmr.msra.gmra.mxu2 %v896_v45  ;;  %v851_v54 = vadd.f32 %v850_v52, %v670_v40  ;;  %1499 = vmatpush.bf16.msra.mxu3 %v4726_v44 }
  0xab   :  { %v302_v46 = vsel %vm262_vm5, %v214_v37, %v282_v43  ;;  %v4654_v37 = vld [vmem:[%s6193_s0 + $0x48] sm:$0xff] }
  0xac   :  { %v338_v49 = vrot.slane %v302_v46, 2  ;;  %v339_v50 = vrot.slane %v302_v46, 4  ;;  %v340_v51 = vrot.slane %v302_v46, 6  ;;  %385 = vst [vmem:[#allocation1 + $0x20] ss:$4 sm:$0xff] %v302_v46  ;;  %vm873_vm6 = vcmp.gt.f32.partialorder %v851_v54, 0.0 }
  0xad   :  { %v881_v60 = vmul.f32 0.01, %v851_v54  ;;  %1511 = vmatpush.bf16.msrb.mxu1 %v4735_v53 }
  0xae   :  { %387 = vst [vmem:[#allocation1 + $0x21] ss:$4 sm:$0xff] %v338_v49  ;;  %v216_v56 = vpop.f32.mrf.mxu0  ;;  %1500 = vmatpush.bf16.msra.mxu3 %v4725_v55 }
  0xaf   :  { %v5375_v58 = vld.sshfl [vmem:[#allocation1] sm:$0xff pattern:$0x73625140]  ;;  %389 = vst [vmem:[#allocation1 + $0x22] ss:$4 sm:$0xff] %v339_v50  ;;  %v217_v59 = vadd.f32 %v5331_v6, %v216_v56  ;;  %v889_v1 = vsel %vm873_vm6, %v851_v54, %v881_v60  ;;  %v863_v4 = vpop.f32.mrf.mxu2  ;;  %v4748_v56 = vld [vmem:[%s6193_s0 + $0x58] sm:$0xff] }
  0xb0   :  { %392 = vst [vmem:[#allocation1] ss:$4 sm:$0xff] %v340_v51  ;;  %v897_v0 = vpack.c.bf16 %v889_v1, %v889_v1  ;;  %v864_v9 = vadd.f32 %v863_v4, %v671_v61 }
  0xb1   :  { %vm263_vm7 = vcmp.gt.f32.partialorder %v217_v59, 0.0  ;;  %v283_v63 = vmul.f32 0.01, %v217_v59  ;;  %1512 = vmatpush.bf16.msrb.mxu1 %v4734_v62  ;;  %v852_v10 = vpop.f32.mrf.mxu1  ;;  %3665 = vmatmul.msk.bf16.gmra.mxu0 %vm171_vm1, %v4654_v37 }
  0xb2   :  { %1969 = vmatpush.bf16.msrb.mxu3 %v4762_v57  ;;  %vm874_vm8 = vcmp.gt.f32.partialorder %v864_v9, 0.0  ;;  %v882_v15 = vmul.f32 0.01, %v864_v9  ;;  %v4749_v10 = vld [vmem:[%s6193_s0 + $0x60] sm:$0xff] }
  0xb3   :  { %v303_v3 = vsel %vm263_vm7, %v217_v59, %v283_v63  ;;  %1501 = vmatmul.bf16.vlgmr.msra.gmra.mxu3 %v897_v0 }
  0xb4   :  { %v341_v5 = vrot.slane %v303_v3, 2  ;;  %v342_v7 = vrot.slane %v303_v3, 4  ;;  %v343_v8 = vrot.slane %v303_v3, 6  ;;  %393 = vst [vmem:[#allocation1 + $0x1] ss:$4 sm:$0xff] %v303_v3  ;;  %v890_v17 = vsel %vm874_vm8, %v864_v9, %v882_v15 }
  0xb5   :  { %1513 = vmatpush.bf16.msrb.mxu1 %v4733_v21  ;;  %v898_v19 = vpack.c.bf16 %v890_v17, %v890_v17 }
  0xb6   :  { %v5394_v13 = vld.sshfl [vmem:[#allocation1 + $0x20] sm:$0xff pattern:$0x73625140]  ;;  %395 = vst [vmem:[#allocation1 + $0x3] ss:$4 sm:$0xff] %v342_v7  ;;  %1970 = vmatpush.bf16.msrb.mxu3 %v4761_v2  ;;  %v218_v14 = vpop.f32.mrf.mxu0 }
  0xb7   :  { %396 = vst [vmem:[#allocation1 + $0x20] ss:$4 sm:$0xff] %v343_v8  ;;  %v219_v16 = vadd.f32 %v5331_v6, %v218_v14  ;;  %v865_v23 = vpop.f32.mrf.mxu2 }
  0xb8   :  { %394 = vst [vmem:[#allocation1 + $0x2] ss:$4 sm:$0xff] %v341_v5  ;;  %1514 = vmatmul.bf16.vlgmr.msrb.gmra.mxu1 %v898_v19 }
  0xb9   :  { %vm264_vm9 = vcmp.gt.f32.partialorder %v219_v16, 0.0  ;;  %v284_v18 = vmul.f32 0.01, %v219_v16 }
  0xba   :  { %1971 = vmatpush.bf16.msrb.mxu3 %v4760_v12 }
  0xbb   :  { %v304_v22 = vsel %vm264_vm9, %v219_v16, %v284_v18 }
  0xbc   :  { %v344_v24 = vrot.slane %v304_v22, 2  ;;  %v345_v25 = vrot.slane %v304_v22, 4  ;;  %397 = vst [vmem:[#allocation1 + $0x21] ss:$4 sm:$0xff] %v304_v22  ;;  %v346_v26 = vrot.slane %v304_v22, 6 }
  0xbe   :  { %398 = vst [vmem:[#allocation1 + $0x22] ss:$4 sm:$0xff] %v344_v24  ;;  %1972 = vmatpush.bf16.msrb.mxu3 %v4759_v20  ;;  %v221_v27 = vpop.f32.mrf.mxu0 }
  0xbf   :  { %v5404_v29 = vld.sshfl [vmem:[#allocation1] sm:$0xff pattern:$0x73625140]  ;;  %v222_v30 = vadd.f32 %v5331_v6, %v221_v27 }
  0xc0   :  { %401 = vst [vmem:[#allocation1] ss:$4 sm:$0xff] %v345_v25 }
  0xc1   :  { %402 = vst [vmem:[#allocation1 + $0x1] ss:$4 sm:$0xff] %v346_v26  ;;  %vm265_vm10 = vcmp.gt.f32.partialorder %v222_v30, 0.0  ;;  %v285_v31 = vmul.f32 0.01, %v222_v30 }
  0xc2   :  { %1973 = vmatpush.bf16.msrb.mxu3 %v4758_v28 }
  0xc3   :  { %v305_v33 = vsel %vm265_vm10, %v222_v30, %v285_v31  ;;  %v4750_v30 = vld [vmem:[%s6193_s0 + $0x68] sm:$0xff] }
  0xc4   :  { %v347_v34 = vrot.slane %v305_v33, 2  ;;  %v348_v35 = vrot.slane %v305_v33, 4  ;;  %v349_v36 = vrot.slane %v305_v33, 6  ;;  %403 = vst [vmem:[#allocation1 + $0x2] ss:$4 sm:$0xff] %v305_v33 }
  0xc5   :  { %v5413_v38 = vld.sshfl [vmem:[#allocation1 + $0x20] sm:$0xff pattern:$0x73625140] }
  0xc6   :  { %404 = vst [vmem:[#allocation1 + $0x3] ss:$4 sm:$0xff] %v347_v34  ;;  %1974 = vmatpush.bf16.msrb.mxu3 %v4757_v32  ;;  %v223_v40 = vpop.f32.mrf.mxu0 }
  0xc7   :  { %405 = vst [vmem:[#allocation1 + $0x20] ss:$4 sm:$0xff] %v348_v35  ;;  %v224_v41 = vadd.f32 %v5331_v6, %v223_v40 }
  0xc8   :  { %406 = vst [vmem:[#allocation1 + $0x21] ss:$4 sm:$0xff] %v349_v36 }
  0xc9   :  { %vm266_vm11 = vcmp.gt.f32.partialorder %v224_v41, 0.0  ;;  %v286_v42 = vmul.f32 0.01, %v224_v41  ;;  %4117 = vmatmul.msk.bf16.vlgmr.msrb.gmra.mxu3 %vm171_vm1, %v4747_v39 }
  0xcb   :  { %v306_v43 = vsel %vm266_vm11, %v224_v41, %v286_v42  ;;  %vm1654_vm11 = vcmask 257024  }
  0xcc   :  { %v350_v44 = vrot.slane %v306_v43, 2  ;;  %v351_v45 = vrot.slane %v306_v43, 4  ;;  %v352_v46 = vrot.slane %v306_v43, 6  ;;  %407 = vst [vmem:[#allocation1 + $0x22] ss:$4 sm:$0xff] %v306_v43 }
  0xcd   :  { %v5421_v47 = vld.sshfl [vmem:[#allocation1] sm:$0xff pattern:$0x73625140] }
  0xce   :  { %410 = vst [vmem:[#allocation1] ss:$4 sm:$0xff] %v350_v44  ;;  %v226_v48 = vpop.f32.mrf.mxu0 }
  0xcf   :  { %411 = vst [vmem:[#allocation1 + $0x1] ss:$4 sm:$0xff] %v351_v45  ;;  %v227_v49 = vadd.f32 %v5331_v6, %v226_v48 }
  0xd0   :  { %412 = vst [vmem:[#allocation1 + $0x2] ss:$4 sm:$0xff] %v352_v46 }
  0xd1   :  { %vm267_vm12 = vcmp.gt.f32.partialorder %v227_v49, 0.0  ;;  %v287_v50 = vmul.f32 0.01, %v227_v49 }
  0xd3   :  { %v5424_v51 = vld.sshfl [vmem:[#allocation1 + $0x20] sm:$0xff pattern:$0x73625140]  ;;  %v307_v52 = vsel %vm267_vm12, %v227_v49, %v287_v50  ;;  %v4751_v50 = vld [vmem:[%s6193_s0 + $0x70] sm:$0xff] }
  0xd4   :  { %v353_v53 = vrot.slane %v307_v52, 2  ;;  %v354_v54 = vrot.slane %v307_v52, 4  ;;  %v355_v55 = vrot.slane %v307_v52, 6  ;;  %413 = vst [vmem:[#allocation1 + $0x3] ss:$4 sm:$0xff] %v307_v52 }
  0xd6   :  { %414 = vst [vmem:[#allocation1 + $0x20] ss:$4 sm:$0xff] %v353_v53  ;;  %v228_v57 = vpop.f32.mrf.mxu0 }
  0xd7   :  { %415 = vst [vmem:[#allocation1 + $0x21] ss:$4 sm:$0xff] %v354_v54  ;;  %v229_v59 = vadd.f32 %v5331_v6, %v228_v57 }
  0xd8   :  { %416 = vst [vmem:[#allocation1 + $0x22] ss:$4 sm:$0xff] %v355_v55 }
  0xd9   :  { %vm268_vm13 = vcmp.gt.f32.partialorder %v229_v59, 0.0  ;;  %v288_v60 = vmul.f32 0.01, %v229_v59  ;;  %4118 = vmatmul.msk.bf16.gmra.mxu3 %vm171_vm1, %v4748_v56 }
  0xdb   :  { %v5431_v61 = vld.sshfl [vmem:[#allocation1] sm:$0xff pattern:$0x73625140]  ;;  %v308_v62 = vsel %vm268_vm13, %v229_v59, %v288_v60 }
  0xdc   :  { %v356_v63 = vrot.slane %v308_v62, 2  ;;  %v357_v1 = vrot.slane %v308_v62, 4  ;;  %v358_v2 = vrot.slane %v308_v62, 6  ;;  %419 = vst [vmem:[#allocation1] ss:$4 sm:$0xff] %v308_v62 }
  0xdd   :  { %v4603_v62 = vld [vmem:[%s6196_s3 + $0xc] sm:$0xf] }
  0xde   :  { %420 = vst [vmem:[#allocation1 + $0x1] ss:$4 sm:$0xff] %v356_v63  ;;  %v231_v0 = vpop.f32.mrf.mxu0  ;;  %v3287_v63 = vmul.f32 0.0001, %v4603_v62 }
  0xdf   :  { %421 = vst [vmem:[#allocation1 + $0x2] ss:$4 sm:$0xff] %v357_v1  ;;  %v232_v3 = vadd.f32 %v5331_v6, %v231_v0  ;;  %v5434_v4 = vld.sshfl [vmem:[#allocation1 + $0x20] sm:$0xff pattern:$0x73625140]  ;;  %v4752_v0 = vld [vmem:[%s6193_s0 + $0x78] sm:$0xff] }
  0xe0   :  { %422 = vst [vmem:[#allocation1 + $0x3] ss:$4 sm:$0xff] %v358_v2  ;;  %v4602_v1 = vld [vmem:[%s6196_s3 + $0x8] sm:$0xf]  ;;  %v3295_v2 = vsel %vm1526_vm2, %v3287_v63, -inf }
  0xe1   :  { %vm269_vm14 = vcmp.gt.f32.partialorder %v232_v3, 0.0  ;;  %v289_v21 = vmul.f32 0.01, %v232_v3 }
  0xe3   :  { %v309_v5 = vsel %vm269_vm14, %v232_v3, %v289_v21  ;;  %v3296_v3 = vrot.slane %v3295_v2, 4  ;;  %v3286_v21 = vmul.f32 0.0001, %v4602_v1 }
  0xe4   :  { %v359_v7 = vrot.slane %v309_v5, 2  ;;  %v360_v8 = vrot.slane %v309_v5, 4  ;;  %v361_v9 = vrot.slane %v309_v5, 6  ;;  %423 = vst [vmem:[#allocation1 + $0x20] ss:$4 sm:$0xff] %v309_v5 }
  0xe6   :  { %424 = vst [vmem:[#allocation1 + $0x21] ss:$4 sm:$0xff] %v359_v7  ;;  %v233_v11 = vpop.f32.mrf.mxu0  ;;  %v3297_v7 = vmax.f32 %v3295_v2, %v3296_v3 }
  0xe7   :  { %v5439_v12 = vld.sshfl [vmem:[#allocation1] sm:$0xff pattern:$0x73625140]  ;;  %425 = vst [vmem:[#allocation1 + $0x22] ss:$4 sm:$0xff] %v360_v8  ;;  %v234_v14 = vadd.f32 %v5331_v6, %v233_v11 }
  0xe8   :  { %428 = vst [vmem:[#allocation1] ss:$4 sm:$0xff] %v361_v9  ;;  %v3288_v9 = vsel %vm1526_vm2, %v3286_v21, -inf }
  0xe9   :  { %vm270_vm15 = vcmp.gt.f32.partialorder %v234_v14, 0.0  ;;  %v290_v15 = vmul.f32 0.01, %v234_v14  ;;  %4119 = vmatmul.msk.bf16.gmra.mxu3 %vm171_vm1, %v4749_v10  ;;  %v3298_v10 = vrot.slane %v3297_v7, 2  ;;  %v3289_v11 = vrot.slane %v3288_v9, 4 }
  0xeb   :  { %v310_v16 = vsel %vm270_vm15, %v234_v14, %v290_v15  ;;  %v3299_v14 = vmax.f32 %v3297_v7, %v3298_v10  ;;  %v3290_v15 = vmax.f32 %v3288_v9, %v3289_v11 }
  0xec   :  { %v362_v17 = vrot.slane %v310_v16, 2  ;;  %v363_v18 = vrot.slane %v310_v16, 4  ;;  %v364_v19 = vrot.slane %v310_v16, 6  ;;  %429 = vst [vmem:[#allocation1 + $0x1] ss:$4 sm:$0xff] %v310_v16 }
  0xed   :  { %v3300_v16 = vrot.slane %v3299_v14, 1 }
  0xee   :  { %v5443_v20 = vld.sshfl [vmem:[#allocation1 + $0x20] sm:$0xff pattern:$0x73625140]  ;;  %430 = vst [vmem:[#allocation1 + $0x2] ss:$4 sm:$0xff] %v362_v17  ;;  %v236_v22 = vpop.f32.mrf.mxu0  ;;  %v3291_v17 = vrot.slane %v3290_v15, 2 }
  0xef   :  { %431 = vst [vmem:[#allocation1 + $0x3] ss:$4 sm:$0xff] %v363_v18  ;;  %v237_v23 = vadd.f32 %v5331_v6, %v236_v22  ;;  %v3301_v22 = vmax.f32 %v3299_v14, %v3300_v16 }
  0xf0   :  { %432 = vst [vmem:[#allocation1 + $0x20] ss:$4 sm:$0xff] %v364_v19 }
  0xf1   :  { %vm271_vm3 = vcmp.gt.f32.partialorder %v237_v23, 0.0  ;;  %v291_v24 = vmul.f32 0.01, %v237_v23 }
  0xf3   :  { %v311_v25 = vsel %vm271_vm3, %v237_v23, %v291_v24  ;;  %v3292_v24 = vmax.f32 %v3290_v15, %v3291_v17 }
  0xf4   :  { %v365_v26 = vrot.slane %v311_v25, 2  ;;  %v366_v27 = vrot.slane %v311_v25, 4  ;;  %v367_v28 = vrot.slane %v311_v25, 6  ;;  %433 = vst [vmem:[#allocation1 + $0x21] ss:$4 sm:$0xff] %v311_v25  ;;  %v3303_v25 = vsub.f32 %v3287_v63, %v3301_v22 }
  0xf6   :  { %v5449_v31 = vld.sshfl [vmem:[#allocation1] sm:$0xff pattern:$0x73625140]  ;;  %434 = vst [vmem:[#allocation1 + $0x22] ss:$4 sm:$0xff] %v365_v26  ;;  %v238_v32 = vpop.f32.mrf.mxu0  ;;  %v3293_v26 = vrot.slane %v3292_v24, 1 }
  0xf7   :  { %437 = vst [vmem:[#allocation1] ss:$4 sm:$0xff] %v366_v27  ;;  %v239_v33 = vadd.f32 %v5331_v6, %v238_v32 }
  0xf8   :  { %438 = vst [vmem:[#allocation1 + $0x1] ss:$4 sm:$0xff] %v367_v28  ;;  %v3306_v28 = vmul.f32 1.442695, %v3303_v25 }
  0xf9   :  { %vm272_vm4 = vcmp.gt.f32.partialorder %v239_v33, 0.0  ;;  %v292_v34 = vmul.f32 0.01, %v239_v33  ;;  %4120 = vmatmul.msk.bf16.gmra.mxu3 %vm171_vm1, %v4750_v30  ;;  %v4859_v30 = vld [vmem:[%s6202_s9] ss:$0 sm:$0xff] }
  0xfa   :  { %4874 = vpow2.f32 %v3306_v28 }
  0xfb   :  { %v312_v35 = vsel %vm272_vm4, %v239_v33, %v292_v34  ;;  %v3294_v33 = vmax.f32 %v3292_v24, %v3293_v26  ;;  %v4753_v34 = vld [vmem:[%s6193_s0 + $0x80] sm:$0xff] }
  0xfc   :  { %v368_v36 = vrot.slane %v312_v35, 2  ;;  %v369_v37 = vrot.slane %v312_v35, 4  ;;  %v370_v39 = vrot.slane %v312_v35, 6  ;;  %439 = vst [vmem:[#allocation1 + $0x2] ss:$4 sm:$0xff] %v312_v35 }
  0xfd   :  { %v5453_v40 = vld.sshfl [vmem:[#allocation1 + $0x20] sm:$0xff pattern:$0x73625140] }
  0xfe   :  { %440 = vst [vmem:[#allocation1 + $0x3] ss:$4 sm:$0xff] %v368_v36  ;;  %v241_v41 = vpop.f32.mrf.mxu0 }
  0xff   :  { %441 = vst [vmem:[#allocation1 + $0x20] ss:$4 sm:$0xff] %v369_v37  ;;  %v242_v42 = vadd.f32 %v5331_v6, %v241_v41  ;;  %v3302_v37 = vsub.f32 %v3286_v21, %v3294_v33 }
 0x100   :  { %442 = vst [vmem:[#allocation1 + $0x21] ss:$4 sm:$0xff] %v370_v39 }
 0x101   :  { %vm273_vm5 = vcmp.gt.f32.partialorder %v242_v42, 0.0  ;;  %v293_v43 = vmul.f32 0.01, %v242_v42 }
 0x103   :  { %v313_v44 = vsel %vm273_vm5, %v242_v42, %v293_v43 }
 0x104   :  { %v371_v45 = vrot.slane %v313_v44, 2  ;;  %v372_v46 = vrot.slane %v313_v44, 4  ;;  %v373_v48 = vrot.slane %v313_v44, 6  ;;  %443 = vst [vmem:[#allocation1 + $0x22] ss:$4 sm:$0xff] %v313_v44 }
 0x105   :  { %v5456_v49 = vld.sshfl [vmem:[#allocation1] sm:$0xff pattern:$0x73625140] }
 0x106   :  { %446 = vst [vmem:[#allocation1] ss:$4 sm:$0xff] %v371_v45  ;;  %v243_v52 = vpop.f32.mrf.mxu0  ;;  %v3304_v45 = vmul.f32 1.442695, %v3302_v37 }
 0x107   :  { %447 = vst [vmem:[#allocation1 + $0x1] ss:$4 sm:$0xff] %v372_v46  ;;  %v244_v53 = vadd.f32 %v5331_v6, %v243_v52  ;;  %v5487_v52 = vpop.eup %4874 }
 0x108   :  { %448 = vst [vmem:[#allocation1 + $0x2] ss:$4 sm:$0xff] %v373_v48  ;;  %4876 = vpow2.f32 %v3304_v45 }
 0x109   :  { %vm274_vm6 = vcmp.gt.f32.partialorder %v244_v53, 0.0  ;;  %v294_v54 = vmul.f32 0.01, %v244_v53  ;;  %4121 = vmatmul.msk.bf16.gmra.mxu3 %vm171_vm1, %v4751_v50 }
 0x10b   :  { %v5463_v55 = vld.sshfl [vmem:[#allocation1 + $0x20] sm:$0xff pattern:$0x73625140]  ;;  %v314_v56 = vsel %vm274_vm6, %v244_v53, %v294_v54 }
 0x10c   :  { %v374_v57 = vrot.slane %v314_v56, 2  ;;  %v375_v59 = vrot.slane %v314_v56, 4  ;;  %v376_v60 = vrot.slane %v314_v56, 6  ;;  %449 = vst [vmem:[#allocation1 + $0x3] ss:$4 sm:$0xff] %v314_v56 }
 0x10e   :  { %450 = vst [vmem:[#allocation1 + $0x20] ss:$4 sm:$0xff] %v374_v57  ;;  %v246_v27 = vpop.f32.mrf.mxu0  ;;  %v3315_v57 = vsel %vm1526_vm2, %v5487_v52, 0.0 }
 0x10f   :  { %451 = vst [vmem:[#allocation1 + $0x21] ss:$4 sm:$0xff] %v375_v59  ;;  %v247_v32 = vadd.f32 %v5331_v6, %v246_v27  ;;  %v3316_v59 = vrot.slane %v3315_v57, 4 }
 0x110   :  { %452 = vst [vmem:[#allocation1 + $0x22] ss:$4 sm:$0xff] %v376_v60 }
 0x111   :  { %vm275_vm7 = vcmp.gt.f32.partialorder %v247_v32, 0.0  ;;  %v295_v36 = vmul.f32 0.01, %v247_v32  ;;  %v3317_v2 = vadd.f32 %v3316_v59, %v3315_v57 }
 0x113   :  { %v5484_v41 = vld.sshfl [vmem:[#allocation1] sm:$0xff pattern:$0x73625140]  ;;  %v315_v44 = vsel %vm275_vm7, %v247_v32, %v295_v36  ;;  %v3318_v11 = vrot.slane %v3317_v2, 2 }
 0x114   :  { %v1424_v5 = vpop.f32.mrf.mxu3  ;;  %v1437_v8 = vpop.f32.mrf.mxu1  ;;  %v566_v46 = vrot.slane %v315_v44, 2  ;;  %v567_v48 = vrot.slane %v315_v44, 4  ;;  %v568_v50 = vrot.slane %v315_v44, 6  ;;  %582 = vst [vmem:[#allocation1] ss:$4 sm:$0xff] %v315_v44 }
 0x115   :  { %v1425_v42 = vadd.f32 %v4859_v30, %v1424_v5  ;;  %v3319_v16 = vadd.f32 %v3318_v11, %v3317_v2 }
 0x116   :  { %584 = vst [vmem:[#allocation1 + $0x1] ss:$4 sm:$0xff] %v566_v46  ;;  %v248_v53 = vpop.f32.mrf.mxu0 }
 0x117   :  { %v1438_v54 = vadd.f32 %v1437_v8, %v1425_v42  ;;  %586 = vst [vmem:[#allocation1 + $0x2] ss:$4 sm:$0xff] %v567_v48  ;;  %v249_v56 = vadd.f32 %v5331_v6, %v248_v53  ;;  %v5494_v3 = vld.sshfl [vmem:[#allocation1 + $0x20] sm:$0xff pattern:$0x73625140]  ;;  %v3320_v22 = vrot.slane %v3319_v16, 1 }
 0x118   :  { %588 = vst [vmem:[#allocation1 + $0x3] ss:$4 sm:$0xff] %v568_v50 }
 0x119   :  { %4122 = vmatmul.msk.bf16.gmra.mxu3 %vm171_vm1, %v4752_v0  ;;  %vm276_vm8 = vcmp.gt.f32.partialorder %v249_v56, 0.0  ;;  %v296_v62 = vmul.f32 0.01, %v249_v56  ;;  %v5492_v0 = vpop.eup %4876  ;;  %v5501_v28 = vadd.f32 %v3320_v22, %v3319_v16  ;;  %v4777_v16 = vld [vmem:[%s6199_s6 + $0xec] sm:$0xf0] }
 0x11a   :  { %v3308_v14 = vsel %vm1526_vm2, %v5492_v0, 0.0 }
 0x11b   :  { %v316_v7 = vsel %vm276_vm8, %v249_v56, %v296_v62  ;;  %v3309_v17 = vrot.slane %v3308_v14, 4  ;;  %4878 = vrcp.f32 %v5501_v28  ;;  %v3346_v57 = vand.u32 2147483647, %v5501_v28 }
 0x11c   :  { %v1450_v18 = vpop.f32.mrf.mxu2  ;;  %v1426_v19 = vpop.f32.mrf.mxu3  ;;  %v569_v8 = vrot.slane %v316_v7, 2  ;;  %v570_v9 = vrot.slane %v316_v7, 4  ;;  %v571_v10 = vrot.slane %v316_v7, 6  ;;  %590 = vst [vmem:[#allocation1 + $0x20] ss:$4 sm:$0xff] %v316_v7  ;;  %v3348_v7 = vand.u32 2147483648, %v5501_v28 }
 0x11d   :  { %v1439_v23 = vpop.f32.mrf.mxu1  ;;  %v1451_v60 = vadd.f32 %v1450_v18, %v1438_v54  ;;  %vm3342_vm12 = vweird.f32 %v5501_v28  ;;  %vm3347_vm15 = vcmp.eq.f32.partialorder %v3346_v57, 8.507059e+37 }
 0x11e   :  { %592 = vst [vmem:[#allocation1 + $0x21] ss:$4 sm:$0xff] %v569_v8  ;;  %v251_v15 = vpop.f32.mrf.mxu0  ;;  %v3310_v23 = vadd.f32 %v3309_v17, %v3308_v14 }
 0x11f   :  { %594 = vst [vmem:[#allocation1 + $0x22] ss:$4 sm:$0xff] %v570_v9  ;;  %v252_v18 = vadd.f32 %v5331_v6, %v251_v15  ;;  %v5499_v24 = vld.sshfl [vmem:[#allocation1] sm:$0xff pattern:$0x73625140] }
 0x120   :  { %596 = vst [vmem:[#allocation1 + $0x23] ss:$4 sm:$0xff] %v571_v10  ;;  %v3311_v30 = vrot.slane %v3310_v23, 2  ;;  %v4195_v15 = vld [vmem:[%s6199_s6 + $0xd0] sm:$0xf] }
 0x121   :  { %vm277_vm9 = vcmp.gt.f32.partialorder %v252_v18, 0.0  ;;  %v297_v25 = vmul.f32 0.01, %v252_v18  ;;  %v4879_v59 = vpop.eup %4878  ;;  %v4196_v22 = vor.u32 %v4777_v16, %v4195_v15 }
 0x122   :  { %v3312_v45 = vadd.f32 %v3311_v30, %v3310_v23  ;;  %vm3343_vm13 = vweird.f32 %v4879_v59 }
 0x123   :  { %v317_v33 = vsel %vm277_vm9, %v252_v18, %v297_v25  ;;  %2580 = vmatpush.bf16.msrb.mxu0 %v4196_v22  ;;  %vm5531_vm14 = vmor %vm3342_vm12, %vm3343_vm13  ;;  %vm1638_vm9 = vcmask 1041409  }
 0x124   :  { %v1452_v35 = vpop.f32.mrf.mxu2  ;;  %v1463_v39 = vpop.f32.mrf.mxu3  ;;  %v572_v37 = vrot.slane %v317_v33, 2  ;;  %v574_v42 = vrot.slane %v317_v33, 6  ;;  %599 = vst [vmem:[#allocation1] ss:$4 sm:$0xff] %v317_v33  ;;  %v3313_v54 = vrot.slane %v3312_v45, 1 }
 0x125   :  { %v1476_v43 = vpop.f32.mrf.mxu1  ;;  %v1464_v21 = vadd.f32 %v1463_v39, %v1451_v60  ;;  %v573_v39 = vrot.slane %v317_v33, 4 }
 0x126   :  { %600 = vst [vmem:[#allocation1 + $0x1] ss:$4 sm:$0xff] %v572_v37  ;;  %v253_v44 = vpop.f32.mrf.mxu0  ;;  %v5510_v2 = vadd.f32 %v3313_v54, %v3312_v45  ;;  %v5540_v45 = vld [vmem:[%s6198_s5 + $0x1] ss:$0 sm:$0xff] }
 0x127   :  { %v1477_v19 = vadd.f32 %v1476_v43, %v1464_v21  ;;  %v5506_v46 = vld.sshfl [vmem:[#allocation1 + $0x20] sm:$0xff pattern:$0x73625140]  ;;  %601 = vst [vmem:[#allocation1 + $0x2] ss:$4 sm:$0xff] %v573_v39  ;;  %v254_v48 = vadd.f32 %v5331_v6, %v253_v44 }
 0x128   :  { %603 = vst [vmem:[#allocation1 + $0x20] ss:$4 sm:$0xff] %v574_v42  ;;  %4880 = vrcp.f32 %v5510_v2  ;;  %vm3327_vm4 = vweird.f32 %v5510_v2  ;;  %v3333_v57 = vand.u32 2147483648, %v5510_v2 }
 0x129   :  { %4123 = vmatmul.msk.bf16.gmra.mxu3 %vm171_vm1, %v4753_v34  ;;  %v5503_v34 = vpop.permute.xlu0 %1601  ;;  %vm278_vm10 = vcmp.gt.f32.partialorder %v254_v48, 0.0  ;;  %v298_v53 = vmul.f32 0.01, %v254_v48 }
 0x12c   :  { %v1465_v1 = vpop.f32.mrf.mxu3 }
 0x12d   :  { %v1489_v63 = vpop.f32.mrf.mxu2  ;;  %v1478_v5 = vpop.f32.mrf.mxu1  ;;  %v318_v1 = vsel %vm278_vm10, %v254_v48, %v298_v53 }
 0x12e   :  { %v1490_v26 = vadd.f32 %v1489_v63, %v1477_v19  ;;  %v3338_v5 = vmul.f32 %v4879_v59, %v5501_v28  ;;  %v575_v8 = vrot.slane %v318_v1, 2  ;;  %v576_v9 = vrot.slane %v318_v1, 4  ;;  %604 = vst [vmem:[#allocation1 + $0x21] ss:$4 sm:$0xff] %v318_v1  ;;  %v256_v23 = vpop.f32.mrf.mxu0  ;;  %v4881_v42 = vpop.eup %4880 }
 0x12f   :  { %v577_v14 = vrot.slane %v318_v1, 6  ;;  %v5524_v18 = vld.sshfl [vmem:[#allocation1] sm:$0xff pattern:$0x73625140]  ;;  %v3349_v28 = vor.u32 1.1754944e-38, %v3348_v7  ;;  %v3323_v54 = vmul.f32 %v4881_v42, %v5510_v2  ;;  %vm3328_vm5 = vweird.f32 %v4881_v42 }
 0x130   :  { %v3339_v19 = vsub.f32 1.0, %v3338_v5  ;;  %605 = vst [vmem:[#allocation1 + $0x22] ss:$4 sm:$0xff] %v575_v8  ;;  %vm5554_vm8 = vmor %vm3327_vm4, %vm3328_vm5 }
 0x131   :  { %v5522_v17 = vpop.permute.xlu0 %1606  ;;  %606 = vst [vmem:[#allocation1 + $0x23] ss:$4 sm:$0xff] %v576_v9 }
 0x132   :  { %v3340_v30 = vmul.f32 %v4879_v59, %v3339_v19  ;;  %608 = vst [vmem:[#allocation1] ss:$4 sm:$0xff] %v577_v14 }
 0x134   :  { %v3341_v39 = vadd.f32 %v4879_v59, %v3340_v30 }
 0x135   :  { %v1491_v27 = vpop.f32.mrf.mxu2  ;;  %v1515_v36 = vpop.f32.mrf.mxu1 }
 0x136   :  { %v1502_v32 = vpop.f32.mrf.mxu3  ;;  %v3345_v53 = vsel %vm5531_vm14, %v4879_v59, %v3341_v39  ;;  %v258_v5 = vpop.f32.mrf.mxu0  ;;  %vm473_vm14 = vcmask 259072  }
 0x137   :  { %v1503_v35 = vadd.f32 %v1502_v32, %v1490_v26  ;;  %v257_v32 = vadd.f32 %v5331_v6, %v256_v23  ;;  %v259_v59 = vadd.f32 %v5331_v6, %v258_v5 }
 0x138   :  { %v5549_v16 = vld.sshfl [vmem:[#allocation1 + $0x20] sm:$0xff pattern:$0x73625140] }
 0x139   :  { %v1516_v43 = vadd.f32 %v1515_v36, %v1503_v35  ;;  %vm279_vm3 = vcmp.gt.f32.partialorder %v257_v32, 0.0  ;;  %v299_v44 = vmul.f32 0.01, %v257_v32  ;;  %vm280_vm6 = vcmp.gt.f32.partialorder %v259_v59, 0.0 }
 0x13b   :  { %vm1519_vm2 = vcmp.gt.f32.partialorder %v1516_v43, 0.0  ;;  %v1520_v50 = vmul.f32 0.01, %v1516_v43 }
 0x13d   :  { %v1521_v56 = vsel %vm1519_vm2, %v1516_v43, %v1520_v50  ;;  %v1517_v21 = vpop.f32.mrf.mxu1  ;;  %v3331_v43 = vand.u32 2147483647, %v5510_v2 }
 0x13e   :  { %v1670_v60 = vrot.slane %v1521_v56, 4  ;;  %v1672_v62 = vmax.f32 %v1521_v56, 0.0  ;;  %v1504_v63 = vpop.f32.mrf.mxu3  ;;  %v3350_v56 = vsel %vm3347_vm15, %v3349_v28, %v3345_v53  ;;  %v3324_v21 = vsub.f32 1.0, %v3323_v54 }
 0x13f   :  { %v3351_v1 = vmul.f32 %v5487_v52, %v3350_v56  ;;  %v300_v52 = vmul.f32 0.01, %v259_v59  ;;  %vm3332_vm2 = vcmp.eq.f32.partialorder %v3331_v43, 8.507059e+37 }
 0x140   :  { %v1673_v10 = vmax.f32 %v1670_v60, 0.0  ;;  %v1674_v11 = vmul.f32 %v1672_v62, %v5503_v34  ;;  %v319_v60 = vsel %vm279_vm3, %v257_v32, %v299_v44  ;;  %v3325_v19 = vmul.f32 %v4881_v42, %v3324_v21 }
 0x141   :  { %v578_v8 = vrot.slane %v319_v60, 2  ;;  %v579_v9 = vrot.slane %v319_v60, 4  ;;  %609 = vst [vmem:[#allocation1 + $0x1] ss:$4 sm:$0xff] %v319_v60  ;;  %3367 = vperm.xlu2 %4857, %v3351_v1  }
 0x142   :  { %v1675_v25 = vmul.f32 %v1673_v10, %v5522_v17  ;;  %v1676_v26 = vsel %vm1654_vm11, %v1674_v11, 0.0  ;;  %v580_v10 = vrot.slane %v319_v60, 6  ;;  %v3326_v6 = vadd.f32 %v4881_v42, %v3325_v19 }
 0x143   :  { %v1677_v27 = vrot.slane %v1676_v26, 4  ;;  %610 = vst [vmem:[#allocation1 + $0x2] ss:$4 sm:$0xff] %v578_v8 }
 0x144   :  { %v1683_v33 = vsel %vm1654_vm11, %v1675_v25, 0.0  ;;  %611 = vst [vmem:[#allocation1 + $0x3] ss:$4 sm:$0xff] %v579_v9  ;;  %v3330_v28 = vsel %vm5554_vm8, %v4881_v42, %v3326_v6 }
 0x145   :  { %v1678_v36 = vadd.f32 %v1677_v27, %v1676_v26  ;;  %v1684_v37 = vrot.slane %v1683_v33, 4  ;;  %v3334_v26 = vor.u32 1.1754944e-38, %v3333_v57  ;;  %612 = vst [vmem:[#allocation1 + $0x20] ss:$4 sm:$0xff] %v580_v10  ;;  %v320_v27 = vsel %vm280_vm6, %v259_v59, %v300_v52 }
 0x146   :  { %v581_v35 = vrot.slane %v320_v27, 2  ;;  %613 = vst [vmem:[#allocation1 + $0x21] ss:$4 sm:$0xff] %v320_v27  ;;  %v483_v27 = vsel %vm473_vm14, %v5413_v38, 0.0  ;;  %v527_v38 = vsel %vm471_vm0, %v5456_v49, 0.0 }
 0x147   :  { %v1679_v48 = vrot.slane %v1678_v36, 2  ;;  %v1685_v50 = vadd.f32 %v1684_v37, %v1683_v33 }
 0x148   :  { %614 = vst [vmem:[#allocation1 + $0x22] ss:$4 sm:$0xff] %v581_v35  ;;  %v474_v35 = vsel %vm473_vm14, %v5394_v13, 0.0 }
 0x149   :  { %v1680_v62 = vadd.f32 %v1679_v48, %v1678_v36  ;;  %v1686_v63 = vrot.slane %v1685_v50, 2  ;;  %v3335_v48 = vsel %vm3332_vm2, %v3334_v26, %v3330_v28  ;;  %v482_v26 = vsel %vm471_vm0, %v5404_v29, 0.0 }
 0x14a   :  { %v3336_v42 = vmul.f32 %v5492_v0, %v3335_v48  ;;  %v484_v28 = vadd.f32 %v483_v27, %v482_v26  ;;  %vm1641_vm2 = vcmask 1042434  }
 0x14b   :  { %v1681_v14 = vrot.slane %v1680_v62, 1  ;;  %v1687_v15 = vadd.f32 %v1686_v63, %v1685_v50  ;;  %v5563_v53 = vld.sshfl [vmem:[#allocation1] sm:$0xff pattern:$0x73625140] }
 0x14c   :  { %v1976_v7 = vpop.f32.mrf.mxu3 }
 0x14d   :  { %v1977_v11 = vadd.f32 %v5540_v45, %v1976_v7  ;;  %v1688_v23 = vrot.slane %v1687_v15, 1  ;;  %v1682_v32 = vadd.f32 %v1681_v14, %v1680_v62 }
 0x14f   :  { %vm2026_vm7 = vcmp.gt.f32.partialorder %v1977_v11, 0.0  ;;  %v2046_v22 = vmul.f32 0.01, %v1977_v11  ;;  %v1689_v33 = vadd.f32 %v1688_v23, %v1687_v15  ;;  %v5566_v60 = vld.sshfl [vmem:[#allocation1 + $0x20] sm:$0xff pattern:$0x73625140] }
 0x150   :  { %v518_v23 = vsel %vm471_vm0, %v5449_v31, 0.0  ;;  %v472_v31 = vsel %vm471_vm0, %v5375_v58, 0.0  ;;  %v510_v58 = vsel %vm473_vm14, %v5443_v20, 0.0 }
 0x151   :  { %v2066_v30 = vsel %vm2026_vm7, %v1977_v11, %v2046_v22  ;;  %v1697_v2 = vsel %vm1638_vm9, %v1689_v33, %v1682_v32  ;;  %v4913_v33 = vmov 14.0   ;;  %v475_v20 = vadd.f32 %v474_v35, %v472_v31 }
 0x152   :  { %v2100_v36 = vrot.slane %v2066_v30, 2  ;;  %1698 = vrot.lane.b32.xlu1 %v1697_v2, %s4912_s26  ;;  %v2101_v39 = vrot.slane %v2066_v30, 4  ;;  %v2102_v50 = vrot.slane %v2066_v30, 6  ;;  %2142 = vst [vmem:[#allocation1] ss:$4 sm:$0xff] %v2066_v30  ;;  %v519_v30 = vsel %vm473_vm14, %v5453_v40, 0.0 }
 0x153   :  { %4882 = vrcp.f32 %v4913_v33  ;;  %v520_v2 = vadd.f32 %v519_v30, %v518_v23  ;;  %v528_v40 = vsel %vm473_vm14, %v5463_v55, 0.0  ;;  %v536_v55 = vsel %vm471_vm0, %v5484_v41, 0.0 }
 0x154   :  { %v1978_v37 = vpop.f32.mrf.mxu3  ;;  %2144 = vst [vmem:[#allocation1 + $0x1] ss:$4 sm:$0xff] %v2100_v36  ;;  %v491_v36 = vsel %vm471_vm0, %v5421_v47, 0.0  ;;  %v529_v49 = vadd.f32 %v528_v40, %v527_v38  ;;  %v537_v47 = vsel %vm473_vm14, %v5494_v3, 0.0  ;;  %v500_v41 = vsel %vm471_vm0, %v5431_v61, 0.0 }
 0x155   :  { %v1979_v44 = vadd.f32 %v5540_v45, %v1978_v37  ;;  %2146 = vst [vmem:[#allocation1 + $0x2] ss:$4 sm:$0xff] %v2101_v39  ;;  %v509_v37 = vsel %vm471_vm0, %v5439_v12, 0.0  ;;  %v492_v39 = vsel %vm473_vm14, %v5424_v51, 0.0  ;;  %v501_v3 = vsel %vm473_vm14, %v5434_v4, 0.0 }
 0x156   :  { %2148 = vst [vmem:[#allocation1 + $0x3] ss:$4 sm:$0xff] %v2102_v50 }
 0x157   :  { %vm2027_vm10 = vcmp.gt.f32.partialorder %v1979_v44, 0.0  ;;  %v2047_v54 = vmul.f32 0.01, %v1979_v44 }
 0x159   :  { %v2067_v43 = vsel %vm2027_vm10, %v1979_v44, %v2047_v54  ;;  %v5607_v12 = vpop.eup %4882 }
 0x15a   :  { %v2103_v56 = vrot.slane %v2067_v43, 2  ;;  %v2104_v57 = vrot.slane %v2067_v43, 4  ;;  %3362 = vperm.xlu1 %4856, %v3336_v42   ;;  %2150 = vst [vmem:[#allocation1 + $0x20] ss:$4 sm:$0xff] %v2067_v43  ;;  %v2105_v1 = vrot.slane %v2067_v43, 6  ;;  %v485_v42 = vrot.slane %v484_v28, 4 }
 0x15b   :  { %v511_v43 = vadd.f32 %v510_v58, %v509_v37  ;;  %vm550_vm5 = vweird.f32 %v5607_v12 }
 0x15c   :  { %v1981_v62 = vpop.f32.mrf.mxu3  ;;  %2152 = vst [vmem:[#allocation1 + $0x21] ss:$4 sm:$0xff] %v2103_v56  ;;  %v521_v56 = vrot.slane %v520_v2, 4 }
 0x15d   :  { %v1982_v63 = vadd.f32 %v5540_v45, %v1981_v62  ;;  %2154 = vst [vmem:[#allocation1 + $0x22] ss:$4 sm:$0xff] %v2104_v57  ;;  %v5569_v0 = vld.sshfl [vmem:[#allocation1] sm:$0xff pattern:$0x73625140]  ;;  %v493_v57 = vadd.f32 %v492_v39, %v491_v36 }
 0x15e   :  { %2157 = vst [vmem:[#allocation1] ss:$4 sm:$0xff] %v2105_v1  ;;  %v530_v1 = vrot.slane %v529_v49, 4 }
 0x15f   :  { %vm2028_vm12 = vcmp.gt.f32.partialorder %v1982_v63, 0.0  ;;  %v2048_v21 = vmul.f32 0.01, %v1982_v63 }
 0x160   :  { %v531_v4 = vadd.f32 %v530_v1, %v529_v49 }
 0x161   :  { %v2068_v5 = vsel %vm2028_vm12, %v1982_v63, %v2048_v21  ;;  %v538_v63 = vadd.f32 %v537_v47, %v536_v55  ;;  %vm1644_vm12 = vcmask 1043459  }
 0x162   :  { %v2106_v7 = vrot.slane %v2068_v5, 2  ;;  %v2107_v8 = vrot.slane %v2068_v5, 4  ;;  %v2108_v9 = vrot.slane %v2068_v5, 6  ;;  %2158 = vst [vmem:[#allocation1 + $0x1] ss:$4 sm:$0xff] %v2068_v5  ;;  %v476_v5 = vrot.slane %v475_v20, 4 }
 0x164   :  { %2160 = vst [vmem:[#allocation1 + $0x3] ss:$4 sm:$0xff] %v2107_v8  ;;  %v1983_v10 = vpop.f32.mrf.mxu3  ;;  %v5572_v11 = vld.sshfl [vmem:[#allocation1 + $0x20] sm:$0xff pattern:$0x73625140]  ;;  %v512_v8 = vrot.slane %v511_v43, 4 }
 0x165   :  { %2159 = vst [vmem:[#allocation1 + $0x2] ss:$4 sm:$0xff] %v2106_v7  ;;  %v1984_v59 = vadd.f32 %v5540_v45, %v1983_v10  ;;  %v486_v7 = vadd.f32 %v485_v42, %v484_v28  ;;  %v494_v10 = vrot.slane %v493_v57, 4 }
 0x166   :  { %2161 = vst [vmem:[#allocation1 + $0x20] ss:$4 sm:$0xff] %v2108_v9  ;;  %v522_v9 = vadd.f32 %v521_v56, %v520_v2  ;;  %v513_v27 = vadd.f32 %v512_v8, %v511_v43  ;;  %v532_v2 = vrot.slane %v531_v4, 2 }
 0x167   :  { %vm2029_vm13 = vcmp.gt.f32.partialorder %v1984_v59, 0.0  ;;  %v2049_v14 = vmul.f32 0.01, %v1984_v59  ;;  %v487_v26 = vrot.slane %v486_v7, 2  ;;  %v495_v33 = vadd.f32 %v494_v10, %v493_v57 }
 0x168   :  { %v523_v30 = vrot.slane %v522_v9, 2  ;;  %v514_v37 = vrot.slane %v513_v27, 2  ;;  %v533_v42 = vadd.f32 %v532_v2, %v531_v4  ;;  %v1609_v2 = vrot.slane %v5503_v34, 1 }
 0x169   :  { %v2069_v15 = vsel %vm2029_vm13, %v1984_v59, %v2049_v14  ;;  %v502_v59 = vadd.f32 %v501_v3, %v500_v41  ;;  %v546_v14 = vmul.f32 14.0, %v5607_v12  ;;  %v488_v36 = vadd.f32 %v487_v26, %v486_v7 }
 0x16a   :  { %v2109_v19 = vrot.slane %v2069_v15, 2  ;;  %v2110_v52 = vrot.slane %v2069_v15, 4  ;;  %v2111_v22 = vrot.slane %v2069_v15, 6  ;;  %2162 = vst [vmem:[#allocation1 + $0x21] ss:$4 sm:$0xff] %v2069_v15  ;;  %v524_v58 = vadd.f32 %v523_v30, %v522_v9 }
 0x16b   :  { %v503_v31 = vrot.slane %v502_v59, 4  ;;  %v547_v35 = vsub.f32 1.0, %v546_v14  ;;  %v489_v56 = vrot.slane %v488_v36, 1 }
 0x16c   :  { %v5576_v25 = vld.sshfl [vmem:[#allocation1] sm:$0xff pattern:$0x73625140]  ;;  %2163 = vst [vmem:[#allocation1 + $0x22] ss:$4 sm:$0xff] %v2109_v19  ;;  %v1986_v6 = vpop.f32.mrf.mxu3  ;;  %v539_v19 = vrot.slane %v538_v63, 4 }
 0x16d   :  { %2166 = vst [vmem:[#allocation1] ss:$4 sm:$0xff] %v2110_v52  ;;  %v1987_v32 = vadd.f32 %v5540_v45, %v1986_v6  ;;  %v477_v6 = vadd.f32 %v476_v5, %v475_v20  ;;  %v504_v39 = vadd.f32 %v503_v31, %v502_v59  ;;  %v525_v57 = vrot.slane %v524_v58, 1 }
 0x16e   :  { %2167 = vst [vmem:[#allocation1 + $0x1] ss:$4 sm:$0xff] %v2111_v22  ;;  %v540_v28 = vadd.f32 %v539_v19, %v538_v63  ;;  %v534_v5 = vrot.slane %v533_v42, 1  ;;  %v490_v9 = vadd.f32 %v489_v56, %v488_v36 }
 0x16f   :  { %vm2030_vm15 = vcmp.gt.f32.partialorder %v1987_v32, 0.0  ;;  %v2050_v29 = vmul.f32 0.01, %v1987_v32  ;;  %v478_v40 = vrot.slane %v477_v6, 2  ;;  %v505_v3 = vrot.slane %v504_v39, 2 }
 0x170   :  { %v541_v49 = vrot.slane %v540_v28, 2  ;;  %v526_v59 = vadd.f32 %v525_v57, %v524_v58 }
 0x171   :  { %v2070_v13 = vsel %vm2030_vm15, %v1987_v32, %v2050_v29  ;;  %v479_v43 = vadd.f32 %v478_v40, %v477_v6 }
 0x172   :  { %v2112_v44 = vrot.slane %v2070_v13, 2  ;;  %v2113_v48 = vrot.slane %v2070_v13, 4  ;;  %v2114_v50 = vrot.slane %v2070_v13, 6  ;;  %2168 = vst [vmem:[#allocation1 + $0x2] ss:$4 sm:$0xff] %v2070_v13  ;;  %v496_v13 = vrot.slane %v495_v33, 2 }
 0x173   :  { %v5605_v54 = vld.sshfl [vmem:[#allocation1 + $0x20] sm:$0xff pattern:$0x73625140]  ;;  %v480_v8 = vrot.slane %v479_v43, 1 }
 0x174   :  { %2169 = vst [vmem:[#allocation1 + $0x3] ss:$4 sm:$0xff] %v2112_v44  ;;  %v1988_v51 = vpop.f32.mrf.mxu3  ;;  %v548_v44 = vmul.f32 %v5607_v12, %v547_v35  ;;  %v497_v41 = vadd.f32 %v496_v13, %v495_v33 }
 0x175   :  { %2170 = vst [vmem:[#allocation1 + $0x20] ss:$4 sm:$0xff] %v2113_v48  ;;  %v1989_v62 = vadd.f32 %v5540_v45, %v1988_v51  ;;  %v515_v51 = vadd.f32 %v514_v37, %v513_v27  ;;  %v535_v27 = vadd.f32 %v534_v5, %v533_v42  ;;  %v481_v30 = vadd.f32 %v480_v8, %v479_v43 }
 0x176   :  { %2171 = vst [vmem:[#allocation1 + $0x21] ss:$4 sm:$0xff] %v2114_v50  ;;  %v549_v63 = vadd.f32 %v5607_v12, %v548_v44  ;;  %v498_v14 = vrot.slane %v497_v41, 1 }
 0x177   :  { %vm2031_vm3 = vcmp.gt.f32.partialorder %v1989_v62, 0.0  ;;  %v2051_v21 = vmul.f32 0.01, %v1989_v62  ;;  %v516_v10 = vrot.slane %v515_v51, 1 }
 0x178   :  { %v5625_v19 = vsel %vm550_vm5, %v5607_v12, %v549_v63  ;;  %v499_v35 = vadd.f32 %v498_v14, %v497_v41  ;;  %v4163_v41 = vld [vmem:[%s6199_s6 + $0x90] sm:$0xf] }
 0x179   :  { %v2071_v15 = vsel %vm2031_vm3, %v1989_v62, %v2051_v21  ;;  %v542_v21 = vadd.f32 %v541_v49, %v540_v28  ;;  %v557_v33 = vmul.f32 %v5625_v19, %v526_v59  ;;  %v553_v12 = vmul.f32 %v5625_v19, %v490_v9 }
 0x17a   :  { %v2115_v52 = vrot.slane %v2071_v15, 2  ;;  %v2116_v61 = vrot.slane %v2071_v15, 4  ;;  %v2117_v22 = vrot.slane %v2071_v15, 6  ;;  %2172 = vst [vmem:[#allocation1 + $0x22] ss:$4 sm:$0xff] %v2071_v15  ;;  %v506_v15 = vadd.f32 %v505_v3, %v504_v39 }
 0x17b   :  { %v5615_v23 = vld.sshfl [vmem:[#allocation1] sm:$0xff pattern:$0x73625140]  ;;  %v558_v36 = vmul.f32 %v5625_v19, %v535_v27  ;;  %v552_v13 = vmul.f32 %v5625_v19, %v481_v30  ;;  %v1596_v44 = vmax.f32 %v557_v33, 0.0  ;;  %v4769_v3 = vld [vmem:[%s6199_s6 + $0xac] sm:$0xf0] }
 0x17c   :  { %2175 = vst [vmem:[#allocation1] ss:$4 sm:$0xff] %v2115_v52  ;;  %v1991_v32 = vpop.f32.mrf.mxu3 }
 0x17d   :  { %2176 = vst [vmem:[#allocation1 + $0x1] ss:$4 sm:$0xff] %v2116_v61  ;;  %v1992_v29 = vadd.f32 %v5540_v45, %v1991_v32  ;;  %v517_v32 = vadd.f32 %v516_v10, %v515_v51  ;;  %v1597_v57 = vmax.f32 %v558_v36, 0.0  ;;  %v1591_v63 = vmax.f32 %v552_v13, 0.0  ;;  %v4744_v36 = vld [vmem:[%s6203_s10 + $0x18] sm:$0xff] }
 0x17e   :  { %2177 = vst [vmem:[#allocation1 + $0x2] ss:$4 sm:$0xff] %v2117_v22  ;;  %v543_v22 = vrot.slane %v542_v21, 1  ;;  %1747 = vmatpush.bf16.msrb.mxu2 %v4744_v36 }
 0x17f   :  { %vm2032_vm4 = vcmp.gt.f32.partialorder %v1992_v29, 0.0  ;;  %v2052_v38 = vmul.f32 0.01, %v1992_v29  ;;  %v556_v39 = vmul.f32 %v5625_v19, %v517_v32 }
 0x180   :  { %v544_v40 = vadd.f32 %v543_v22, %v542_v21 }
 0x181   :  { %v5619_v48 = vld.sshfl [vmem:[#allocation1 + $0x20] sm:$0xff pattern:$0x73625140]  ;;  %v2072_v50 = vsel %vm2032_vm4, %v1992_v29, %v2052_v38  ;;  %v507_v29 = vrot.slane %v506_v15, 1  ;;  %v1610_v38 = vrot.slane %v5503_v34, 2  ;;  %vm1739_vm4 = vcmask 523264  }
 0x182   :  { %v2118_v55 = vrot.slane %v2072_v50, 2  ;;  %v2119_v47 = vrot.slane %v2072_v50, 4  ;;  %v2120_v20 = vrot.slane %v2072_v50, 6  ;;  %2178 = vst [vmem:[#allocation1 + $0x3] ss:$4 sm:$0xff] %v2072_v50  ;;  %v1612_v50 = vrot.slane %v5522_v17, 1 }
 0x183   :  { %v508_v49 = vadd.f32 %v507_v29, %v506_v15  ;;  %v559_v42 = vmul.f32 %v5625_v19, %v544_v40 }
 0x184   :  { %2179 = vst [vmem:[#allocation1 + $0x20] ss:$4 sm:$0xff] %v2118_v55  ;;  %v1993_v62 = vpop.f32.mrf.mxu3  ;;  %v554_v55 = vmul.f32 %v5625_v19, %v499_v35  ;;  %v1626_v21 = vmul.f32 %v1612_v50, %v1596_v44 }
 0x185   :  { %2180 = vst [vmem:[#allocation1 + $0x21] ss:$4 sm:$0xff] %v2119_v47  ;;  %v1994_v1 = vadd.f32 %v5540_v45, %v1993_v62  ;;  %v1592_v47 = vmax.f32 %v553_v12, 0.0  ;;  %v1613_v62 = vrot.slane %v5522_v17, 2  ;;  %v555_v8 = vmul.f32 %v5625_v19, %v508_v49 }
 0x186   :  { %2181 = vst [vmem:[#allocation1 + $0x22] ss:$4 sm:$0xff] %v2120_v20  ;;  %v1593_v9 = vmax.f32 %v554_v55, 0.0  ;;  %v1598_v15 = vmax.f32 %v559_v42, 0.0  ;;  %v1646_v30 = vrot.slane %v1626_v21, 7 }
 0x187   :  { %vm2033_vm6 = vcmp.gt.f32.partialorder %v1994_v1, 0.0  ;;  %v2053_v7 = vmul.f32 0.01, %v1994_v1  ;;  %v1622_v10 = vmul.f32 %v1609_v2, %v1592_v47  ;;  %v1627_v22 = vmul.f32 %v1613_v62, %v1597_v57  ;;  %v4743_v47 = vld [vmem:[%s6203_s10 + $0x10] sm:$0xff] }
 0x188   :  { %v1594_v32 = vmax.f32 %v555_v8, 0.0  ;;  %v1623_v33 = vmul.f32 %v1610_v38, %v1593_v9  ;;  %1748 = vmatpush.bf16.msrb.mxu2 %v4743_v47  ;;  %v4741_v8 = vld [vmem:[%s6203_s10] sm:$0xff] }
 0x189   :  { %v5627_v52 = vld.sshfl [vmem:[#allocation1] sm:$0xff pattern:$0x73625140]  ;;  %v2073_v61 = vsel %vm2033_vm6, %v1994_v1, %v2053_v7  ;;  %v1595_v1 = vmax.f32 %v556_v39, 0.0  ;;  %v4164_v7 = vor.u32 %v4769_v3, %v4163_v41  ;;  %v1648_v40 = vrot.slane %v1627_v22, 6  ;;  %v4742_v41 = vld [vmem:[%s6203_s10 + $0x8] sm:$0xff] }
 0x18a   :  { %v2121_v4 = vrot.slane %v2073_v61, 2  ;;  %v2122_v6 = vrot.slane %v2073_v61, 4  ;;  %v2123_v26 = vrot.slane %v2073_v61, 6  ;;  %2184 = vst [vmem:[#allocation1] ss:$4 sm:$0xff] %v2073_v61  ;;  %v1614_v61 = vrot.slane %v5522_v17, 3 }
 0x18b   :  { %2581 = vmatpush.bf16.msrb.mxu0 %v4164_v7  ;;  %v1625_v27 = vmul.f32 %v5522_v17, %v1595_v1  ;;  %v1640_v13 = vrot.slane %v1623_v33, 6  ;;  %v634_v22 = vsel %vm471_vm0, %v5549_v16, -inf  ;;  %v624_v16 = vsel %vm471_vm0, %v5506_v46, -inf  ;;  %v4745_v47 = vld [vmem:[%s6205_s12] sm:$0xff] }
 0x18c   :  { %2185 = vst [vmem:[#allocation1 + $0x1] ss:$4 sm:$0xff] %v2121_v4  ;;  %v1996_v31 = vpop.f32.mrf.mxu3  ;;  %v1628_v29 = vmul.f32 %v1614_v61, %v1598_v15  ;;  %1749 = vmatpush.bf16.msrb.mxu2 %v4742_v41  ;;  %v623_v15 = vsel %vm471_vm0, %v5499_v24, -inf  ;;  %v625_v61 = vsel %vm473_vm14, %v5524_v18, -inf }
 0x18d   :  { %2186 = vst [vmem:[#allocation1 + $0x2] ss:$4 sm:$0xff] %v2122_v6  ;;  %v1997_v28 = vadd.f32 %v5540_v45, %v1996_v31  ;;  %v5635_v37 = vld.sshfl [vmem:[#allocation1 + $0x20] sm:$0xff pattern:$0x73625140]  ;;  %v1611_v6 = vrot.slane %v5503_v34, 3 }
 0x18e   :  { %2187 = vst [vmem:[#allocation1 + $0x3] ss:$4 sm:$0xff] %v2123_v26  ;;  %v1621_v26 = vmul.f32 %v5503_v34, %v1591_v63  ;;  %v1637_v31 = vrot.slane %v1622_v10, 7  ;;  %v1647_v34 = vsel %vm1638_vm9, %v1646_v30, %v1625_v27  ;;  %v1650_v50 = vrot.slane %v1628_v29, 5 }
 0x18f   :  { %vm2034_vm7 = vcmp.gt.f32.partialorder %v1997_v28, 0.0  ;;  %v2054_v58 = vmul.f32 0.01, %v1997_v28  ;;  %v1649_v49 = vsel %vm1641_vm2, %v1648_v40, %v1647_v34  ;;  %v636_v27 = vsel %vm473_vm14, %v5566_v60, -inf }
 0x190   :  { %v1639_v44 = vsel %vm1638_vm9, %v1637_v31, %v1621_v26  ;;  %v1651_v62 = vsel %vm1644_vm12, %v1650_v50, %v1649_v49  ;;  %1750 = vmatpush.bf16.msrb.mxu2 %v4741_v8  ;;  %v626_v31 = vmax.f32 %v623_v15, %v625_v61  ;;  %v637_v18 = vmax.f32 %v634_v22, %v636_v27  ;;  %v4767_v15 = vld [vmem:[%s6199_s6 + $0x9c] sm:$0xf0]  ;;  %v5724_v22 = vld [vmem:[%s6195_s2 + $0x4] sm:$0xf] }
 0x191   :  { %v2074_v20 = vsel %vm2034_vm7, %v1997_v28, %v2054_v58  ;;  %v1624_v58 = vmul.f32 %v1611_v6, %v1594_v32  ;;  %v635_v29 = vsel %vm471_vm0, %v5563_v53, -inf  ;;  %4213 = vmatmul.msk.bf16.vlgmr.msrb.gmra.mxu0 %vm471_vm0, %v5724_v22 }
 0x192   :  { %v2124_v43 = vrot.slane %v2074_v20, 2  ;;  %v2125_v56 = vrot.slane %v2074_v20, 4  ;;  %v2126_v51 = vrot.slane %v2074_v20, 6  ;;  %2188 = vst [vmem:[#allocation1 + $0x20] ss:$4 sm:$0xff] %v2074_v20  ;;  %v1642_v20 = vsel %vm1641_vm2, %v1640_v13, %v1639_v44 }
 0x193   :  { %v1643_v42 = vrot.slane %v1624_v58, 5  ;;  %v627_v40 = vmax.f32 %v626_v31, %v624_v16  ;;  %v638_v36 = vmax.f32 %v637_v18, %v635_v29 }
 0x194   :  { %2189 = vst [vmem:[#allocation1 + $0x21] ss:$4 sm:$0xff] %v2124_v43  ;;  %v1998_v5 = vpop.f32.mrf.mxu3 }
 0x195   :  { %v5650_v59 = vld.sshfl [vmem:[#allocation1] sm:$0xff pattern:$0x73625140]  ;;  %2190 = vst [vmem:[#allocation1 + $0x22] ss:$4 sm:$0xff] %v2125_v56  ;;  %v1999_v14 = vadd.f32 %v5540_v45, %v1998_v5  ;;  %v1645_v21 = vsel %vm1644_vm12, %v1643_v42, %v1642_v20  ;;  %v1662_v5 = vsel %vm1654_vm11, %v1651_v62, 0.0 }
 0x196   :  { %2193 = vst [vmem:[#allocation1] ss:$4 sm:$0xff] %v2126_v51  ;;  %v1655_v9 = vsel %vm1654_vm11, %v1645_v21, 0.0  ;;  %v1663_v10 = vrot.slane %v1662_v5, 4  ;;  %v628_v50 = vrot.slane %v627_v40, 4  ;;  %v639_v49 = vrot.slane %v638_v36, 4 }
 0x197   :  { %vm2035_vm8 = vcmp.gt.f32.partialorder %v1999_v14, 0.0  ;;  %v2055_v4 = vmul.f32 0.01, %v1999_v14  ;;  %v1656_v33 = vrot.slane %v1655_v9, 4  ;;  %v4775_v21 = vld [vmem:[%s6199_s6 + $0xdc] sm:$0xf0] }
 0x199   :  { %v2075_v35 = vsel %vm2035_vm8, %v1999_v14, %v2055_v4 }
 0x19a   :  { %v2127_v12 = vrot.slane %v2075_v35, 2  ;;  %v2128_v28 = vrot.slane %v2075_v35, 4  ;;  %v2129_v2 = vrot.slane %v2075_v35, 6  ;;  %2194 = vst [vmem:[#allocation1 + $0x1] ss:$4 sm:$0xff] %v2075_v35  ;;  %v1664_v35 = vadd.f32 %v1663_v10, %v1662_v5 }
 0x19c   :  { %2195 = vst [vmem:[#allocation1 + $0x2] ss:$4 sm:$0xff] %v2127_v12  ;;  %v2001_v17 = vpop.f32.mrf.mxu3  ;;  %v5661_v38 = vld.sshfl [vmem:[#allocation1 + $0x20] sm:$0xff pattern:$0x73625140]  ;;  %v1665_v13 = vrot.slane %v1664_v35, 2 }
 0x19d   :  { %2196 = vst [vmem:[#allocation1 + $0x3] ss:$4 sm:$0xff] %v2128_v28  ;;  %v2002_v39 = vadd.f32 %v5540_v45, %v2001_v17  ;;  %v1657_v28 = vadd.f32 %v1656_v33, %v1655_v9 }
 0x19e   :  { %2197 = vst [vmem:[#allocation1 + $0x20] ss:$4 sm:$0xff] %v2129_v2  ;;  %v4746_v2 = vld [vmem:[%s6205_s12 + $0x8] sm:$0xff] }
 0x19f   :  { %vm2036_vm10 = vcmp.gt.f32.partialorder %v2002_v39, 0.0  ;;  %v2056_v55 = vmul.f32 0.01, %v2002_v39  ;;  %1793 = vmatpush.bf16.msra.mxu2 %v4746_v2  ;;  %v1658_v44 = vrot.slane %v1657_v28, 2 }
 0x1a1   :  { %v2076_v43 = vsel %vm2036_vm10, %v2002_v39, %v2056_v55  ;;  %v1666_v55 = vadd.f32 %v1665_v13, %v1664_v35 }
 0x1a2   :  { %v2130_v56 = vrot.slane %v2076_v43, 2  ;;  %v2131_v51 = vrot.slane %v2076_v43, 4  ;;  %v2132_v57 = vrot.slane %v2076_v43, 6  ;;  %2198 = vst [vmem:[#allocation1 + $0x21] ss:$4 sm:$0xff] %v2076_v43  ;;  %v1659_v43 = vadd.f32 %v1658_v44, %v1657_v28 }
 0x1a3   :  { %1794 = vmatpush.bf16.msra.mxu2 %v4745_v47  ;;  %v4149_v28 = vld [vmem:[%s6199_s6 + $0xa0] sm:$0xf0]  ;;  %v4772_v47 = vld [vmem:[%s6199_s6 + $0xcc] sm:$0xf] }
 0x1a4   :  { %v5674_v3 = vld.sshfl [vmem:[#allocation1] sm:$0xff pattern:$0x73625140]  ;;  %2199 = vst [vmem:[#allocation1 + $0x22] ss:$4 sm:$0xff] %v2130_v56  ;;  %v2003_v63 = vpop.f32.mrf.mxu3  ;;  %v629_v56 = vmax.f32 %v627_v40, %v628_v50  ;;  %v1660_v5 = vrot.slane %v1659_v43, 1 }
 0x1a5   :  { %2202 = vst [vmem:[#allocation1] ss:$4 sm:$0xff] %v2131_v51  ;;  %v2004_v1 = vadd.f32 %v5540_v45, %v2003_v63  ;;  %v640_v51 = vmax.f32 %v638_v36, %v639_v49  ;;  %v4187_v36 = vld [vmem:[%s6199_s6 + $0xc8] sm:$0xf] }
 0x1a6   :  { %2203 = vst [vmem:[#allocation1 + $0x1] ss:$4 sm:$0xff] %v2132_v57 }
 0x1a7   :  { %vm2037_vm13 = vcmp.gt.f32.partialorder %v2004_v1, 0.0  ;;  %v2057_v7 = vmul.f32 0.01, %v2004_v1  ;;  %v641_v8 = vrot.slane %v640_v51, 2 }
 0x1a9   :  { %v2077_v14 = vsel %vm2037_vm13, %v2004_v1, %v2057_v7  ;;  %v4179_v1 = vld [vmem:[%s6199_s6 + $0xc0] sm:$0xf]  ;;  %v630_v7 = vrot.slane %v629_v56, 2 }
 0x1aa   :  { %v2133_v4 = vrot.slane %v2077_v14, 2  ;;  %v2134_v6 = vrot.slane %v2077_v14, 4  ;;  %v2135_v26 = vrot.slane %v2077_v14, 6  ;;  %2204 = vst [vmem:[#allocation1 + $0x2] ss:$4 sm:$0xff] %v2077_v14  ;;  %v4180_v9 = vor.u32 %v4775_v21, %v4179_v1 }
 0x1ab   :  { %v5691_v30 = vld.sshfl [vmem:[#allocation1 + $0x20] sm:$0xff pattern:$0x73625140]  ;;  %v4773_v1 = vld [vmem:[%s6199_s6 + $0xd4] sm:$0xf] }
 0x1ac   :  { %2205 = vst [vmem:[#allocation1 + $0x3] ss:$4 sm:$0xff] %v2133_v4  ;;  %v2006_v32 = vpop.f32.mrf.mxu3  ;;  %v4147_v14 = vld [vmem:[%s6199_s6 + $0x80] sm:$0xf]  ;;  %2528 = vmatpush.bf16.msra.mxu1 %v4180_v9  ;;  %v631_v4 = vmax.f32 %v629_v56, %v630_v7  ;;  %v4197_v21 = vld [vmem:[%s6199_s6 + $0xf0] sm:$0xf0] }
 0x1ad   :  { %2206 = vst [vmem:[#allocation1 + $0x20] ss:$4 sm:$0xff] %v2134_v6  ;;  %v2007_v24 = vadd.f32 %v5540_v45, %v2006_v32  ;;  %v4148_v61 = vor.u32 %v4767_v15, %v4147_v14  ;;  %v642_v6 = vmax.f32 %v640_v51, %v641_v8  ;;  %v4771_v32 = vld [vmem:[%s6199_s6 + $0xc4] sm:$0xf]  ;;  %v4764_v51 = vld [vmem:[%s6199_s6 + $0x8c] sm:$0xf]  ;;  %v4200_v7 = vor.u32 %v4773_v1, %v4197_v21 }
 0x1ae   :  { %2207 = vst [vmem:[#allocation1 + $0x21] ss:$4 sm:$0xff] %v2135_v26  ;;  %v1661_v26 = vadd.f32 %v1660_v5, %v1659_v43  ;;  %v632_v33 = vrot.slane %v631_v4, 1  ;;  %v4765_v8 = vld [vmem:[%s6199_s6 + $0x94] sm:$0xf]  ;;  %v4796_v21 = vld [vmem:[%s6201_s8 + $0x288] sm:$0xff] }
 0x1af   :  { %vm2038_vm15 = vcmp.gt.f32.partialorder %v2007_v24, 0.0  ;;  %v2058_v60 = vmul.f32 0.01, %v2007_v24  ;;  %v643_v31 = vrot.slane %v642_v6, 1  ;;  %v4165_v9 = vld [vmem:[%s6199_s6 + $0xb0] sm:$0xf0] }
 0x1b0   :  { %2529 = vmatpush.bf16.msra.mxu1 %v4148_v61  ;;  %v633_v2 = vmax.f32 %v631_v4, %v632_v33  ;;  %v4173_v14 = vld [vmem:[%s6199_s6 + $0xb8] sm:$0xf0]  ;;  %v4168_v15 = vor.u32 %v4765_v8, %v4165_v9  ;;  %v4203_v4 = vld [vmem:[%s6199_s6 + $0xd8] sm:$0xf] }
 0x1b1   :  { %v2078_v12 = vsel %vm2038_vm15, %v2007_v24, %v2058_v60  ;;  %v4181_v24 = vld [vmem:[%s6199_s6 + $0xe0] sm:$0xf0]  ;;  %v644_v40 = vmax.f32 %v642_v6, %v643_v31  ;;  %v4778_v6 = vld [vmem:[%s6199_s6 + $0xf4] sm:$0xf0]  ;;  %v4785_v31 = vld [vmem:[%s6201_s8 + $0x230] sm:$0xff] }
 0x1b2   :  { %v2136_v34 = vrot.slane %v2078_v12, 2  ;;  %v2137_v17 = vrot.slane %v2078_v12, 4  ;;  %v2138_v58 = vrot.slane %v2078_v12, 6  ;;  %2208 = vst [vmem:[#allocation1 + $0x22] ss:$4 sm:$0xff] %v2078_v12  ;;  %v4184_v29 = vor.u32 %v4771_v32, %v4181_v24  ;;  %v4786_v24 = vld [vmem:[%s6201_s8 + $0x238] sm:$0xff] }
 0x1b3   :  { %v5701_v39 = vld.sshfl [vmem:[#allocation1] sm:$0xff pattern:$0x73625140]  ;;  %4209 = vmatmul.msk.bf16.vlgmr.msra.gmra.mxu1 %vm471_vm0, %v5724_v22  ;;  %v1757_v44 = vpack.c.bf16 %v644_v40, %v644_v40  ;;  %v4770_v32 = vld [vmem:[%s6199_s6 + $0xb4] sm:$0xf0]  ;;  %v4781_v40 = vld [vmem:[%s6201_s8 + $0x210] sm:$0xff] }
 0x1b4   :  { %2211 = vst [vmem:[#allocation1] ss:$4 sm:$0xff] %v2136_v34  ;;  %v2008_v46 = vpop.f32.mrf.mxu3  ;;  %v4763_v12 = vld [vmem:[%s6199_s6 + $0x84] sm:$0xf] }
 0x1b5   :  { %2212 = vst [vmem:[#allocation1 + $0x1] ss:$4 sm:$0xff] %v2137_v17  ;;  %v2009_v53 = vadd.f32 %v5540_v45, %v2008_v46  ;;  %v1667_v45 = vrot.slane %v1666_v55, 1  ;;  %v4152_v34 = vor.u32 %v4763_v12, %v4149_v28  ;;  %v4776_v17 = vld [vmem:[%s6199_s6 + $0xe4] sm:$0xf0]  ;;  %v4791_v28 = vld [vmem:[%s6201_s8 + $0x260] sm:$0xff] }
 0x1b6   :  { %2213 = vst [vmem:[#allocation1 + $0x2] ss:$4 sm:$0xff] %v2138_v58  ;;  %v4155_v58 = vld [vmem:[%s6199_s6 + $0x88] sm:$0xf]  ;;  %v4188_v13 = vor.u32 %v4776_v17, %v4187_v36  ;;  %v4789_v36 = vld [vmem:[%s6201_s8 + $0x250] sm:$0xff] }
 0x1b7   :  { %vm2039_vm3 = vcmp.gt.f32.partialorder %v2009_v53, 0.0  ;;  %v2059_v20 = vmul.f32 0.01, %v2009_v53  ;;  %v1668_v10 = vadd.f32 %v1667_v45, %v1666_v55  ;;  %v4768_v46 = vld [vmem:[%s6199_s6 + $0xa4] sm:$0xf0]  ;;  %v1769_v55 = vunpack.c.l.b16 %v1757_v44  ;;  %v4818_v44 = vld [vmem:[%s6201_s8 + $0x338] sm:$0xff] }
 0x1b8   :  { %2554 = vmatpush.bf16.msrb.mxu1 %v4188_v13  ;;  %v4156_v50 = vor.u32 %v4768_v46, %v4155_v58  ;;  %v4205_v45 = vld [vmem:[%s6199_s6 + $0xf8] sm:$0xf0]  ;;  %v4792_v12 = vld [vmem:[%s6201_s8 + $0x268] sm:$0xff]  ;;  %v4801_v58 = vld [vmem:[%s6201_s8 + $0x2b0] sm:$0xff] }
 0x1b9   :  { %v2079_v42 = vsel %vm2039_vm3, %v2009_v53, %v2059_v20  ;;  %v5707_v63 = vld.sshfl [vmem:[#allocation1 + $0x20] sm:$0xff pattern:$0x73625140]  ;;  %v1692_v27 = vrot.slane %v1668_v10, 7  ;;  %v1756_v53 = vpack.c.bf16 %v633_v2, %v633_v2  ;;  %v4189_v20 = vld [vmem:[%s6199_s6 + $0xe8] sm:$0xf0] }
 0x1ba   :  { %v2139_v57 = vrot.slane %v2079_v42, 2  ;;  %v2140_v62 = vrot.slane %v2079_v42, 4  ;;  %v2141_v41 = vrot.slane %v2079_v42, 6  ;;  %2214 = vst [vmem:[#allocation1 + $0x3] ss:$4 sm:$0xff] %v2079_v42  ;;  %v4192_v43 = vor.u32 %v4772_v47, %v4189_v20  ;;  %v4790_v2 = vld [vmem:[%s6201_s8 + $0x258] sm:$0xff] }
 0x1bb   :  { %v1693_v35 = vsel %vm1638_vm9, %v1692_v27, %v1661_v26  ;;  %v1768_v49 = vunpack.c.l.b16 %v1756_v53  ;;  %v4766_v10 = vld [vmem:[%s6199_s6 + $0x9c] sm:$0xf]  ;;  %v4204_v26 = vor.u32 %v4778_v6, %v4203_v4  ;;  %v4171_v27 = vld [vmem:[%s6199_s6 + $0x98] sm:$0xf]  ;;  %v4780_v17 = vld [vmem:[%s6201_s8 + $0x208] sm:$0xff] }
 0x1bc   :  { %2215 = vst [vmem:[#allocation1 + $0x20] ss:$4 sm:$0xff] %v2139_v57  ;;  %2555 = vmatpush.bf16.msrb.mxu1 %v4156_v50  ;;  %v4157_v57 = vld [vmem:[%s6199_s6 + $0xa8] sm:$0xf0]  ;;  %v4176_v61 = vor.u32 %v4766_v10, %v4173_v14  ;;  %v4172_v33 = vor.u32 %v4770_v32, %v4171_v27  ;;  %v4779_v13 = vld [vmem:[%s6201_s8 + $0x200] sm:$0xff]  ;;  %v4810_v53 = vld [vmem:[%s6201_s8 + $0x2f8] sm:$0xff] }
 0x1bd   :  { %2216 = vst [vmem:[#allocation1 + $0x21] ss:$4 sm:$0xff] %v2140_v62  ;;  %v1770_v42 = vsel %vm1638_vm9, %v1769_v55, %v1768_v49  ;;  %v4774_v62 = vld [vmem:[%s6199_s6 + $0xdc] sm:$0xf]  ;;  %v4787_v46 = vld [vmem:[%s6201_s8 + $0x240] sm:$0xff]  ;;  %v4800_v50 = vld [vmem:[%s6201_s8 + $0x2a8] sm:$0xff] }
 0x1be   :  { %2217 = vst [vmem:[#allocation1 + $0x22] ss:$4 sm:$0xff] %v2141_v41  ;;  %v1771_v56 = vpack.c.b16 %v1770_v42, %v1770_v42  ;;  %v4160_v41 = vor.u32 %v4764_v51, %v4157_v57  ;;  %v4208_v5 = vor.u32 %v4774_v62, %v4205_v45  ;;  %v4799_v49 = vld [vmem:[%s6201_s8 + $0x2a0] sm:$0xff]  ;;  %v4809_v55 = vld [vmem:[%s6201_s8 + $0x2f0] sm:$0xff]  ;;  %v4798_v20 = vld [vmem:[%s6201_s8 + $0x298] sm:$0xff] }
 0x1bf   :  { %v4817_v47 = vld [vmem:[%s6201_s8 + $0x330] sm:$0xff]  ;;  %v4808_v42 = vld [vmem:[%s6201_s8 + $0x2e8] sm:$0xff]  ;;  %v4807_v62 = vld [vmem:[%s6201_s8 + $0x2e0] sm:$0xff] }
 0x1c0   :  { %2619 = vmatpush.bf16.msra.mxu0 %v4208_v5  ;;  %2593 = vmatpush.bf16.msra.mxu1 %v4200_v7  ;;  %v4797_v57 = vld [vmem:[%s6201_s8 + $0x290] sm:$0xff]  ;;  %v4815_v45 = vld [vmem:[%s6201_s8 + $0x320] sm:$0xff]  ;;  %v4806_v5 = vld [vmem:[%s6201_s8 + $0x2d8] sm:$0xff] }
 0x1c1   :  { %v4814_v7 = vld [vmem:[%s6201_s8 + $0x318] sm:$0xff]  ;;  %v4805_v4 = vld [vmem:[%s6201_s8 + $0x2d0] sm:$0xff]  ;;  %v4804_v27 = vld [vmem:[%s6201_s8 + $0x2c8] sm:$0xff] }
 0x1c2   :  { %v4813_v6 = vld [vmem:[%s6201_s8 + $0x310] sm:$0xff]  ;;  %v4812_v32 = vld [vmem:[%s6201_s8 + $0x308] sm:$0xff] }
 0x1c3   :  { %4211 = vmatmul.msk.bf16.vlgmr.msrb.gmra.mxu1 %vm471_vm0, %v5724_v22 }
 0x1c4   :  { %v1699_v18 = vpop.permute.xlu1 %1698  ;;  %2594 = vmatpush.bf16.msra.mxu1 %v4168_v15  ;;  %2620 = vmatpush.bf16.msra.mxu0 %v4176_v61  ;;  %v4795_v61 = vld [vmem:[%s6201_s8 + $0x280] sm:$0xff] }
 0x1c5   :  { %v1701_v16 = vsel %vm471_vm0, %v1693_v35, %v1699_v18  ;;  %v4784_v18 = vld [vmem:[%s6201_s8 + $0x228] sm:$0xff]  ;;  %v4783_v35 = vld [vmem:[%s6201_s8 + $0x220] sm:$0xff] }
 0x1c6   :  { %v1702_v60 = vpack.c.bf16 %v1701_v16, %v1701_v16  ;;  %v4794_v16 = vld [vmem:[%s6201_s8 + $0x278] sm:$0xff] }
 0x1c7   :  { %4216 = vmatmul.msk.bf16.vlgmr.msra.gmra.mxu0 %vm471_vm0, %v5724_v22 }
 0x1c8   :  { %4010 = vmatmul.msk.bf16.vlgmr.msrb.gmra.mxu2 %vm1739_vm4, %v1702_v60  ;;  %3176 = vmatpush.bf16.msrb.mxu1 %v4786_v24  ;;  %v4793_v60 = vld [vmem:[%s6201_s8 + $0x270] sm:$0xff] }
 0x1c9   :  { %2541 = vmatpush.bf16.msrb.mxu2 %v4184_v29  ;;  %v4782_v29 = vld [vmem:[%s6201_s8 + $0x218] sm:$0xff]  ;;  %v4825_v24 = vld [vmem:[%s6201_s8 + $0x370] sm:$0xff] }
 0x1cc   :  { %3177 = vmatpush.bf16.msrb.mxu1 %v4785_v31 }
 0x1cd   :  { %2542 = vmatpush.bf16.msrb.mxu2 %v4152_v34  ;;  %v4802_v34 = vld [vmem:[%s6201_s8 + $0x2b8] sm:$0xff] }
 0x1ce   :  { %3202 = vmatpush.bf16.msrb.mxu0 %v4802_v34 }
 0x1d0   :  { %3178 = vmatpush.bf16.msrb.mxu1 %v4784_v18 }
 0x1d2   :  { %3203 = vmatpush.bf16.msrb.mxu0 %v4801_v58 }
 0x1d3   :  { %4214 = vmatmul.msk.bf16.vlgmr.msra.gmra.mxu1 %vm471_vm0, %v5724_v22 }
 0x1d4   :  { %3179 = vmatpush.bf16.msrb.mxu1 %v4783_v35  ;;  %v4803_v35 = vld [vmem:[%s6201_s8 + $0x2c0] sm:$0xff] }
 0x1d6   :  { %3204 = vmatpush.bf16.msrb.mxu0 %v4800_v50  ;;  %v4832_v50 = vld [vmem:[%s6201_s8 + $0x3a8] sm:$0xff] }
 0x1d8   :  { %4019 = vmatmul.msk.bf16.vlgmr.msra.gmra.mxu2 %vm471_vm0, %v1771_v56  ;;  %3180 = vmatpush.bf16.msrb.mxu1 %v4782_v29  ;;  %v5903_v56 = vld [vmem:[%s6200_s7 + $0x8] sm:$0xff]  ;;  %v4811_v29 = vld [vmem:[%s6201_s8 + $0x300] sm:$0xff] }
 0x1d9   :  { %2567 = vmatpush.bf16.msra.mxu2 %v4192_v43  ;;  %v4816_v43 = vld [vmem:[%s6201_s8 + $0x328] sm:$0xff]  ;;  %v2425_v31 = vperm.slane %v5903_v56, 2 }
 0x1da   :  { %3205 = vmatpush.bf16.msrb.mxu0 %v4799_v49  ;;  %v4821_v49 = vld [vmem:[%s6201_s8 + $0x350] sm:$0xff] }
 0x1dc   :  { %3181 = vmatpush.bf16.msrb.mxu1 %v4781_v40  ;;  %v4862_v40 = vld [vmem:[%s6206_s13] ss:$0 sm:$0xff] }
 0x1dd   :  { %2568 = vmatpush.bf16.msra.mxu2 %v4160_v41  ;;  %v2423_v41 = vperm.slane %v5903_v56, 0 }
 0x1de   :  { %3206 = vmatpush.bf16.msrb.mxu0 %v4798_v20  ;;  %v2428_v20 = vperm.slane %v5903_v56, 5 }
 0x1e0   :  { %3182 = vmatpush.bf16.msrb.mxu1 %v4780_v17  ;;  %v4833_v17 = vld [vmem:[%s6201_s8 + $0x3b0] sm:$0xff] }
 0x1e2   :  { %3207 = vmatpush.bf16.msrb.mxu0 %v4797_v57 }
 0x1e4   :  { %3183 = vmatpush.bf16.msrb.mxu1 %v4779_v13 }
 0x1e6   :  { %3208 = vmatpush.bf16.msrb.mxu0 %v4796_v21 }
 0x1e8   :  { %4210 = vmatmul.msk.bf16.vlgmr.msrb.gmra.mxu2 %vm471_vm0, %v5724_v22  ;;  %3215 = vmatpush.bf16.msra.mxu1 %v4810_v53 }
 0x1e9   :  { %2606 = vmatpush.bf16.msrb.mxu2 %v4204_v26  ;;  %v4826_v26 = vld [vmem:[%s6201_s8 + $0x378] sm:$0xff] }
 0x1ea   :  { %3209 = vmatpush.bf16.msrb.mxu0 %v4795_v61 }
 0x1ec   :  { %3216 = vmatpush.bf16.msra.mxu1 %v4809_v55  ;;  %v4831_v55 = vld [vmem:[%s6201_s8 + $0x3a0] sm:$0xff] }
 0x1ed   :  { %2607 = vmatpush.bf16.msrb.mxu2 %v4172_v33 }
 0x1ee   :  { %3241 = vmatpush.bf16.msra.mxu0 %v4826_v26  ;;  %v4842_v26 = vld [vmem:[%s6201_s8 + $0x3f8] sm:$0xff] }
 0x1f0   :  { %3217 = vmatpush.bf16.msra.mxu1 %v4808_v42 }
 0x1f2   :  { %3242 = vmatpush.bf16.msra.mxu0 %v4825_v24  ;;  %v2427_v24 = vperm.slane %v5903_v56, 4 }
 0x1f4   :  { %3218 = vmatpush.bf16.msra.mxu1 %v4807_v62  ;;  %v4830_v62 = vld [vmem:[%s6201_s8 + $0x398] sm:$0xff] }
 0x1f8   :  { %4212 = vmatmul.msk.bf16.vlgmr.msra.gmra.mxu2 %vm471_vm0, %v5724_v22  ;;  %3219 = vmatpush.bf16.msra.mxu1 %v4806_v5  ;;  %v4829_v5 = vld [vmem:[%s6201_s8 + $0x390] sm:$0xff] }
 0x1f9   :  { %3189 = vmatpush.bf16.msra.mxu2 %v4794_v16 }
 0x1fc   :  { %3220 = vmatpush.bf16.msra.mxu1 %v4805_v4  ;;  %v4828_v4 = vld [vmem:[%s6201_s8 + $0x388] sm:$0xff] }
 0x1fd   :  { %3190 = vmatpush.bf16.msra.mxu2 %v4793_v60  ;;  %v4824_v60 = vld [vmem:[%s6201_s8 + $0x368] sm:$0xff] }
 0x1fe   :  { %3243 = vmatpush.bf16.msra.mxu0 %v4824_v60  ;;  %v4840_v60 = vld [vmem:[%s6201_s8 + $0x3e8] sm:$0xff] }
 0x200   :  { %3221 = vmatpush.bf16.msra.mxu1 %v4804_v27 }
 0x201   :  { %3191 = vmatpush.bf16.msra.mxu2 %v4792_v12 }
 0x204   :  { %3222 = vmatpush.bf16.msra.mxu1 %v4803_v35 }
 0x205   :  { %3192 = vmatpush.bf16.msra.mxu2 %v4791_v28  ;;  %v4834_v28 = vld [vmem:[%s6201_s8 + $0x3b8] sm:$0xff] }
 0x208   :  { %4215 = vmatmul.msk.bf16.vlgmr.msrb.gmra.mxu2 %vm471_vm0, %v5724_v22  ;;  %v4788_v22 = vld [vmem:[%s6201_s8 + $0x248] sm:$0xff] }
 0x209   :  { %3193 = vmatpush.bf16.msra.mxu2 %v4790_v2 }
 0x20d   :  { %3194 = vmatpush.bf16.msra.mxu2 %v4789_v36  ;;  %v4823_v36 = vld [vmem:[%s6201_s8 + $0x360] sm:$0xff] }
 0x20e   :  { %v5951_v16 = vpop.f32.mrf.mxu0  ;;  %3244 = vmatpush.bf16.msra.mxu0 %v4823_v36 }
 0x20f   :  { %v2584_v35 = vadd.f32 %v5951_v16, %v2427_v24 }
 0x211   :  { %3195 = vmatpush.bf16.msra.mxu2 %v4788_v22  ;;  %vm2630_vm10 = vcmp.gt.f32.partialorder %v2584_v35, 0.0 }
 0x215   :  { %3196 = vmatpush.bf16.msra.mxu2 %v4787_v46 }
 0x216   :  { %v2585_v53 = vpop.f32.mrf.mxu0 }
 0x219   :  { %3228 = vmatpush.bf16.msrb.mxu2 %v4818_v44  ;;  %v4822_v44 = vld [vmem:[%s6201_s8 + $0x358] sm:$0xff] }
 0x21a   :  { %3245 = vmatpush.bf16.msra.mxu0 %v4822_v44  ;;  %v4837_v44 = vld [vmem:[%s6201_s8 + $0x3d0] sm:$0xff] }
 0x21d   :  { %3229 = vmatpush.bf16.msrb.mxu2 %v4817_v47 }
 0x21e   :  { %3246 = vmatpush.bf16.msra.mxu0 %v4821_v49  ;;  %v2429_v49 = vperm.slane %v5903_v56, 6 }
 0x221   :  { %3230 = vmatpush.bf16.msrb.mxu2 %v4816_v43 }
 0x225   :  { %3231 = vmatpush.bf16.msrb.mxu2 %v4815_v45  ;;  %v2424_v45 = vperm.slane %v5903_v56, 1 }
 0x229   :  { %3232 = vmatpush.bf16.msrb.mxu2 %v4814_v7 }
 0x22d   :  { %3233 = vmatpush.bf16.msrb.mxu2 %v4813_v6 }
 0x230   :  { %v2531_v51 = vpop.f32.mrf.mxu1 }
 0x231   :  { %v2532_v1 = vadd.f32 %v2531_v51, %v2423_v41  ;;  %3234 = vmatpush.bf16.msrb.mxu2 %v4812_v32  ;;  %v4820_v51 = vld [vmem:[%s6201_s8 + $0x348] sm:$0xff]  ;;  %v4827_v32 = vld [vmem:[%s6201_s8 + $0x380] sm:$0xff] }
 0x232   :  { %3247 = vmatpush.bf16.msra.mxu0 %v4820_v51  ;;  %v4835_v51 = vld [vmem:[%s6201_s8 + $0x3c0] sm:$0xff] }
 0x233   :  { %vm2626_vm5 = vcmp.gt.f32.partialorder %v2532_v1, 0.0  ;;  %v2634_v8 = vmul.f32 0.01, %v2532_v1 }
 0x235   :  { %v2642_v9 = vsel %vm2626_vm5, %v2532_v1, %v2634_v8  ;;  %3235 = vmatpush.bf16.msrb.mxu2 %v4811_v29  ;;  %v4819_v1 = vld [vmem:[%s6201_s8 + $0x340] sm:$0xff]  ;;  %v2426_v29 = vperm.slane %v5903_v56, 3 }
 0x236   :  { %v2650_v14 = vpack.c.bf16 %v2642_v9, %v2642_v9  ;;  %3248 = vmatpush.bf16.msra.mxu0 %v4819_v1 }
 0x238   :  { %v2533_v15 = vpop.f32.mrf.mxu1  ;;  %3184 = vmatmul.bf16.vlgmr.msrb.gmra.mxu1 %v2650_v14 }
 0x239   :  { %3254 = vmatpush.bf16.msrb.mxu1 %v4834_v28 }
 0x23d   :  { %3255 = vmatpush.bf16.msrb.mxu1 %v4833_v17  ;;  %v4838_v17 = vld [vmem:[%s6201_s8 + $0x3d8] sm:$0xff] }
 0x240   :  { %v2557_v18 = vpop.f32.mrf.mxu1 }
 0x241   :  { %v2558_v12 = vadd.f32 %v2557_v18, %v2425_v31  ;;  %3256 = vmatpush.bf16.msrb.mxu1 %v4832_v50  ;;  %v4754_v31 = vld [vmem:[%s6193_s0 + $0x88] sm:$0xff]  ;;  %v4841_v18 = vld [vmem:[%s6201_s8 + $0x3f0] sm:$0xff] }
 0x242   :  { %4124 = vmatmul.msk.bf16.gmra.mxu3 %vm171_vm1, %v4754_v31 }
 0x243   :  { %vm2628_vm6 = vcmp.gt.f32.partialorder %v2558_v12, 0.0  ;;  %v2636_v2 = vmul.f32 0.01, %v2558_v12 }
 0x244   :  { %v5985_v43 = vpop.f32.mrf.mxu0 }
 0x245   :  { %v2644_v34 = vsel %vm2628_vm6, %v2558_v12, %v2636_v2  ;;  %3257 = vmatpush.bf16.msrb.mxu1 %v4831_v55  ;;  %v2638_v12 = vmul.f32 0.01, %v2584_v35  ;;  %v4836_v55 = vld [vmem:[%s6201_s8 + $0x3c8] sm:$0xff] }
 0x246   :  { %v2652_v22 = vpack.c.bf16 %v2644_v34, %v2644_v34 }
 0x247   :  { %v2646_v36 = vsel %vm2630_vm10, %v2584_v35, %v2638_v12  ;;  %v6058_v12 = vld.sshfl [vmem:[#allocation1] sm:$0xff pattern:$0x73625140] }
 0x248   :  { %v2559_v13 = vpop.f32.mrf.mxu1  ;;  %3210 = vmatmul.bf16.vlgmr.msrb.gmra.mxu0 %v2652_v22  ;;  %v2654_v22 = vpack.c.bf16 %v2646_v36, %v2646_v36 }
 0x249   :  { %3258 = vmatpush.bf16.msrb.mxu1 %v4830_v62  ;;  %v4755_v13 = vld [vmem:[%s6193_s0 + $0x90] sm:$0xff] }
 0x24b   :  { %v5924_v10 = vpop.f32.mrf.mxu2 }
 0x24c   :  { %v2624_v15 = vpop.f32.mrf.mxu0 }
 0x24d   :  { %3259 = vmatpush.bf16.msrb.mxu1 %v4829_v5 }
 0x250   :  { %v2596_v42 = vpop.f32.mrf.mxu1 }
 0x251   :  { %v2597_v57 = vadd.f32 %v2596_v42, %v2428_v20  ;;  %3260 = vmatpush.bf16.msrb.mxu1 %v4828_v4 }
 0x252   :  { %4125 = vmatmul.msk.bf16.gmra.mxu3 %vm171_vm1, %v4755_v13 }
 0x253   :  { %v1754_v33 = vpop.f32.mrf.mxu2  ;;  %vm2631_vm7 = vcmp.gt.f32.partialorder %v2597_v57, 0.0  ;;  %v2639_v41 = vmul.f32 0.01, %v2597_v57 }
 0x255   :  { %v2647_v21 = vsel %vm2631_vm7, %v2597_v57, %v2639_v41  ;;  %3261 = vmatpush.bf16.msrb.mxu1 %v4827_v32 }
 0x256   :  { %v2655_v8 = vpack.c.bf16 %v2647_v21, %v2647_v21 }
 0x258   :  { %v2598_v9 = vpop.f32.mrf.mxu1  ;;  %3249 = vmatmul.bf16.vlgmr.msra.gmra.mxu0 %v2655_v8 }
 0x25b   :  { %v1796_v58 = vpop.f32.mrf.mxu2 }
 0x25c   :  { %v1797_v46 = vadd.f32 %v4862_v40, %v1796_v58  ;;  %v4839_v40 = vld [vmem:[%s6201_s8 + $0x3e0] sm:$0xff] }
 0x25e   :  { %1802 = vrot.lane.b32.xlu0 %v1797_v46, %s4912_s26  ;;  %v2430_v46 = vperm.slane %v5903_v56, 7 }
 0x260   :  { %v2623_v50 = vadd.f32 %v5985_v43, %v2430_v46 }
 0x262   :  { %vm2633_vm15 = vcmp.gt.f32.partialorder %v2623_v50, 0.0 }
 0x263   :  { %v1798_v47 = vpop.f32.mrf.mxu2 }
 0x264   :  { %v2641_v47 = vmul.f32 0.01, %v2623_v50 }
 0x266   :  { %v2649_v57 = vsel %vm2633_vm15, %v2623_v50, %v2641_v47 }
 0x267   :  { %v2657_v41 = vpack.c.bf16 %v2649_v57, %v2649_v57 }
 0x26b   :  { %v2544_v7 = vpop.f32.mrf.mxu2 }
 0x26c   :  { %v2545_v14 = vadd.f32 %v2544_v7, %v2424_v45  ;;  %v4756_v45 = vld [vmem:[%s6193_s0 + $0x98] sm:$0xff] }
 0x26d   :  { %4126 = vmatmul.msk.bf16.gmra.mxu3 %vm171_vm1, %v4756_v45  ;;  %v4845_v45 = vld [vmem:[%s6203_s10 + $0x30] sm:$0xff] }
 0x26e   :  { %vm2627_vm8 = vcmp.gt.f32.partialorder %v2545_v14, 0.0  ;;  %v2635_v61 = vmul.f32 0.01, %v2545_v14 }
 0x270   :  { %v2643_v6 = vsel %vm2627_vm8, %v2545_v14, %v2635_v61 }
 0x271   :  { %v2651_v27 = vpack.c.bf16 %v2643_v6, %v2643_v6 }
 0x273   :  { %v2546_v33 = vpop.f32.mrf.mxu2  ;;  %3197 = vmatmul.bf16.vlgmr.msra.gmra.mxu2 %v2651_v27  ;;  %v6054_v27 = vld [vmem:[%s6198_s5 + $0x1] ss:$0 sm:$0xff]  ;;  %s3578_s5 = sshll.u32 %s4915_s16, 4  ;;  %s3579_s5 = int_to_ptr.vmem [resolvable:$true] %s3578_s5 }
 0x274   :  { %3267 = vmatpush.bf16.msra.mxu2 %v4842_v26  ;;  %v4863_v26 = vld [vmem:[%s6202_s9 + $0x1] ss:$0 sm:$0xff] }
 0x278   :  { %3268 = vmatpush.bf16.msra.mxu2 %v4841_v18 }
 0x27b   :  { %v2570_v28 = vpop.f32.mrf.mxu2 }
 0x27c   :  { %v2571_v2 = vadd.f32 %v2570_v28, %v2426_v29  ;;  %3269 = vmatpush.bf16.msra.mxu2 %v4840_v60 }
 0x27e   :  { %vm2629_vm13 = vcmp.gt.f32.partialorder %v2571_v2, 0.0  ;;  %v2637_v34 = vmul.f32 0.01, %v2571_v2 }
 0x280   :  { %v2645_v16 = vsel %vm2629_vm13, %v2571_v2, %v2637_v34  ;;  %3270 = vmatpush.bf16.msra.mxu2 %v4839_v40 }
 0x281   :  { %v2653_v58 = vpack.c.bf16 %v2645_v16, %v2645_v16 }
 0x283   :  { %v2572_v53 = vpop.f32.mrf.mxu2  ;;  %3223 = vmatmul.bf16.vlgmr.msra.gmra.mxu1 %v2653_v58  ;;  %3236 = vmatmul.bf16.vlgmr.msrb.gmra.mxu2 %v2654_v22  ;;  %v6060_v22 = vld.sshfl [vmem:[#allocation1 + $0x20] sm:$0xff pattern:$0x73625140] }
 0x284   :  { %3271 = vmatpush.bf16.msra.mxu2 %v4838_v17 }
 0x288   :  { %3272 = vmatpush.bf16.msra.mxu2 %v4837_v44 }
 0x28b   :  { %v2609_v20 = vpop.f32.mrf.mxu2 }
 0x28c   :  { %v2610_v42 = vadd.f32 %v2609_v20, %v2429_v49  ;;  %3273 = vmatpush.bf16.msra.mxu2 %v4836_v55 }
 0x28e   :  { %vm2632_vm3 = vcmp.gt.f32.partialorder %v2610_v42, 0.0  ;;  %v2640_v62 = vmul.f32 0.01, %v2610_v42 }
 0x290   :  { %v2648_v43 = vsel %vm2632_vm3, %v2610_v42, %v2640_v62  ;;  %3274 = vmatpush.bf16.msra.mxu2 %v4835_v51 }
 0x291   :  { %v2656_v56 = vpack.c.bf16 %v2648_v43, %v2648_v43 }
 0x293   :  { %v2611_v1 = vpop.f32.mrf.mxu2  ;;  %3262 = vmatmul.bf16.vlgmr.msrb.gmra.mxu1 %v2656_v56  ;;  %3275 = vmatmul.bf16.vlgmr.msra.gmra.mxu2 %v2657_v41  ;;  %v4846_v41 = vld [vmem:[%s6203_s10 + $0x38] sm:$0xff] }
 0x294   :  { %3505 = vmatpush.bf16.msrb.mxu0 %v4846_v41 }
 0x298   :  { %3506 = vmatpush.bf16.msrb.mxu0 %v4845_v45 }
 0x2b5   :  { %v3185_v21 = vpop.f32.mrf.mxu1 }
 0x2b6   :  { %v3186_v24 = vadd.f32 %v4863_v26, %v3185_v21  ;;  %v6076_v26 = vpop.permute.xlu2 %3367 }
 0x2bd   :  { %v3187_v5 = vpop.f32.mrf.mxu1 }
 0x2c5   :  { %v3211_v7 = vpop.f32.mrf.mxu0  ;;  %v2011_v4 = vpop.f32.mrf.mxu3 }
 0x2c6   :  { %v2012_v32 = vadd.f32 %v6054_v27, %v2011_v4 }
 0x2c8   :  { %vm2040_vm1 = vcmp.gt.f32.partialorder %v2012_v32, 0.0  ;;  %v2060_v33 = vmul.f32 0.01, %v2012_v32 }
 0x2ca   :  { %v2080_v29 = vsel %vm2040_vm1, %v2012_v32, %v2060_v33 }
 0x2cb   :  { %v2322_v2 = vrot.slane %v2080_v29, 2  ;;  %v2323_v40 = vrot.slane %v2080_v29, 4  ;;  %v2324_v36 = vrot.slane %v2080_v29, 6  ;;  %2338 = vst [vmem:[#allocation1] ss:$4 sm:$0xff] %v2080_v29  ;;  %v4843_v29 = vld [vmem:[%s6203_s10 + $0x20] sm:$0xff] }
 0x2cd   :  { %v3213_v8 = vpop.f32.mrf.mxu0  ;;  %v2013_v18 = vpop.f32.mrf.mxu3  ;;  %2340 = vst [vmem:[#allocation1 + $0x1] ss:$4 sm:$0xff] %v2322_v2 }
 0x2ce   :  { %v2014_v60 = vadd.f32 %v6054_v27, %v2013_v18  ;;  %2342 = vst [vmem:[#allocation1 + $0x2] ss:$4 sm:$0xff] %v2323_v40  ;;  %v6069_v8 = vpop.permute.xlu1 %3362 }
 0x2cf   :  { %2344 = vst [vmem:[#allocation1 + $0x3] ss:$4 sm:$0xff] %v2324_v36 }
 0x2d0   :  { %vm2041_vm5 = vcmp.gt.f32.partialorder %v2014_v60, 0.0  ;;  %v2061_v34 = vmul.f32 0.01, %v2014_v60 }
 0x2d2   :  { %v2081_v17 = vsel %vm2041_vm5, %v2014_v60, %v2061_v34 }
 0x2d3   :  { %v2325_v58 = vrot.slane %v2081_v17, 2  ;;  %v2326_v13 = vrot.slane %v2081_v17, 4  ;;  %v2327_v46 = vrot.slane %v2081_v17, 6  ;;  %2346 = vst [vmem:[#allocation1 + $0x20] ss:$4 sm:$0xff] %v2081_v17 }
 0x2d5   :  { %v3250_v9 = vpop.f32.mrf.mxu0  ;;  %v2016_v50 = vpop.f32.mrf.mxu3  ;;  %2348 = vst [vmem:[#allocation1 + $0x21] ss:$4 sm:$0xff] %v2325_v58 }
 0x2d6   :  { %2350 = vst [vmem:[#allocation1 + $0x22] ss:$4 sm:$0xff] %v2326_v13  ;;  %v2017_v43 = vadd.f32 %v6054_v27, %v2016_v50 }
 0x2d7   :  { %2352 = vst [vmem:[#allocation1 + $0x23] ss:$4 sm:$0xff] %v2327_v46 }
 0x2d8   :  { %vm2042_vm7 = vcmp.gt.f32.partialorder %v2017_v43, 0.0 }
 0x2dd   :  { %v3252_v14 = vpop.f32.mrf.mxu0  ;;  %v2018_v51 = vpop.f32.mrf.mxu3 }
 0x2de   :  { %v2354_v17 = vld.sshfl [vmem:[#allocation1 + $0x20] sm:$0xff pattern:$0x73625140] }
 0x2f0   :  { %v2021_v4 = vpop.f32.mrf.mxu3 }
 0x2f1   :  { %v2022_v50 = vadd.f32 %v6054_v27, %v2021_v4 }
 0x2f3   :  { %vm2044_vm10 = vcmp.gt.f32.partialorder %v2022_v50, 0.0 }
 0x2f6   :  { %v3198_v15 = vpop.f32.mrf.mxu2 }
 0x2f7   :  { %v3199_v35 = vadd.f32 %v3198_v15, %v3186_v24 }
 0x2f9   :  { %v3212_v16 = vadd.f32 %v3211_v7, %v3199_v35  ;;  %v2062_v7 = vmul.f32 0.01, %v2017_v43 }
 0x2fb   :  { %v2082_v33 = vsel %vm2042_vm7, %v2017_v43, %v2062_v7 }
 0x2fc   :  { %v2329_v58 = vrot.slane %v2082_v33, 4 }
 0x2fe   :  { %v3200_v61 = vpop.f32.mrf.mxu2 }
 0x300   :  { %v3224_v6 = vpop.f32.mrf.mxu1 }
 0x301   :  { %v3225_v53 = vadd.f32 %v3224_v6, %v3212_v16  ;;  %v4844_v6 = vld [vmem:[%s6203_s10 + $0x28] sm:$0xff]  ;;  %v2328_v16 = vrot.slane %v2082_v33, 2 }
 0x302   :  { %3507 = vmatpush.bf16.msrb.mxu0 %v4844_v6  ;;  %v2281_v6 = vsel %vm471_vm0, %v5674_v3, 0.0  ;;  %v2299_v3 = vsel %vm471_vm0, %v6058_v12, 0.0  ;;  %v2272_v12 = vsel %vm471_vm0, %v5650_v59, 0.0 }
 0x306   :  { %v3237_v31 = vpop.f32.mrf.mxu2  ;;  %3508 = vmatpush.bf16.msrb.mxu0 %v4843_v29 }
 0x307   :  { %v3238_v49 = vadd.f32 %v3237_v31, %v3225_v53  ;;  %v2023_v53 = vpop.f32.mrf.mxu3 }
 0x308   :  { %v3226_v28 = vpop.f32.mrf.mxu1 }
 0x309   :  { %v3251_v47 = vadd.f32 %v3250_v9, %v3238_v49  ;;  %v2019_v9 = vadd.f32 %v6054_v27, %v2018_v51  ;;  %v2330_v28 = vrot.slane %v2082_v33, 6  ;;  %v2353_v49 = vld.sshfl [vmem:[#allocation1] sm:$0xff pattern:$0x73625140] }
 0x30a   :  { %2355 = vst [vmem:[#allocation1] ss:$4 sm:$0xff] %v2082_v33 }
 0x30b   :  { %v2063_v18 = vmul.f32 0.01, %v2019_v9  ;;  %vm2043_vm8 = vcmp.gt.f32.partialorder %v2019_v9, 0.0  ;;  %2359 = vst [vmem:[#allocation1 + $0x20] ss:$4 sm:$0xff] %v2330_v28 }
 0x30c   :  { %2356 = vst [vmem:[#allocation1 + $0x1] ss:$4 sm:$0xff] %v2328_v16  ;;  %v2254_v16 = vsel %vm471_vm0, %v5615_v23, 0.0 }
 0x30d   :  { %v2083_v34 = vsel %vm2043_vm8, %v2019_v9, %v2063_v18  ;;  %2357 = vst [vmem:[#allocation1 + $0x2] ss:$4 sm:$0xff] %v2329_v58  ;;  %v2291_v18 = vsel %vm473_vm14, %v5707_v63, 0.0  ;;  %v2246_v63 = vsel %vm473_vm14, %v5605_v54, 0.0 }
 0x30e   :  { %v3239_v44 = vpop.f32.mrf.mxu2  ;;  %2360 = vst [vmem:[#allocation1 + $0x21] ss:$4 sm:$0xff] %v2083_v34  ;;  %v2333_v45 = vrot.slane %v2083_v34, 6 }
 0x30f   :  { %v2331_v44 = vrot.slane %v2083_v34, 2 }
 0x310   :  { %v3263_v55 = vpop.f32.mrf.mxu1 }
 0x311   :  { %v3264_v20 = vadd.f32 %v3263_v55, %v3251_v47  ;;  %2361 = vst [vmem:[#allocation1 + $0x22] ss:$4 sm:$0xff] %v2331_v44 }
 0x314   :  { %v2358_v9 = vld.sshfl [vmem:[#allocation1] sm:$0xff pattern:$0x73625140] }
 0x315   :  { %2364 = vst [vmem:[#allocation1] ss:$4 sm:$0xff] %v2333_v45  ;;  %v2381_v33 = vsel %vm473_vm14, %v2358_v9, -inf }
 0x316   :  { %v3276_v42 = vpop.f32.mrf.mxu2 }
 0x317   :  { %v3277_v57 = vadd.f32 %v3276_v42, %v3264_v20  ;;  %v2332_v20 = vrot.slane %v2083_v34, 4  ;;  %v2024_v42 = vadd.f32 %v6054_v27, %v2023_v53  ;;  %v4861_v27 = vld [vmem:[%s6204_s11] ss:$0 sm:$0xff] }
 0x318   :  { %v3265_v62 = vpop.f32.mrf.mxu1  ;;  %v1753_v4 = vadd.f32 %v4861_v27, %v5924_v10 }
 0x319   :  { %vm3280_vm6 = vcmp.gt.f32.partialorder %v3277_v57, 0.0  ;;  %v3281_v56 = vmul.f32 0.01, %v3277_v57  ;;  %2362 = vst [vmem:[#allocation1 + $0x23] ss:$4 sm:$0xff] %v2332_v20  ;;  %vm2045_vm13 = vcmp.gt.f32.partialorder %v2024_v42, 0.0 }
 0x31a   :  { %v2065_v41 = vmul.f32 0.01, %v2024_v42 }
 0x31b   :  { %v3282_v1 = vsel %vm3280_vm6, %v3277_v57, %v3281_v56  ;;  %v2064_v57 = vmul.f32 0.01, %v2022_v50 }
 0x31c   :  { %v3427_v21 = vrot.slane %v3282_v1, 4  ;;  %v3429_v5 = vmax.f32 %v3282_v1, 0.0  ;;  %v2085_v7 = vsel %vm2045_vm13, %v2024_v42, %v2065_v41 }
 0x31d   :  { %v2084_v1 = vsel %vm2044_vm10, %v2022_v50, %v2064_v57  ;;  %v2263_v57 = vsel %vm471_vm0, %v5627_v52, 0.0 }
 0x31e   :  { %v3430_v14 = vmax.f32 %v3427_v21, 0.0  ;;  %v3431_v15 = vmul.f32 %v3429_v5, %v6069_v8  ;;  %v3278_v61 = vpop.f32.mrf.mxu2  ;;  %v2334_v21 = vrot.slane %v2084_v1, 2  ;;  %v2335_v5 = vrot.slane %v2084_v1, 4  ;;  %2365 = vst [vmem:[#allocation1 + $0x1] ss:$4 sm:$0xff] %v2084_v1 }
 0x31f   :  { %v2337_v61 = vrot.slane %v2085_v7, 2 }
 0x320   :  { %v3432_v32 = vmul.f32 %v3430_v14, %v6076_v26  ;;  %v3433_v24 = vsel %vm1654_vm11, %v3431_v15, 0.0  ;;  %v2336_v14 = vrot.slane %v2084_v1, 6  ;;  %v2363_v15 = vld.sshfl [vmem:[#allocation1 + $0x20] sm:$0xff pattern:$0x73625140] }
 0x321   :  { %v3434_v31 = vrot.slane %v3433_v24, 4  ;;  %2366 = vst [vmem:[#allocation1 + $0x2] ss:$4 sm:$0xff] %v2334_v21 }
 0x322   :  { %v3440_v35 = vsel %vm1654_vm11, %v3432_v32, 0.0  ;;  %2367 = vst [vmem:[#allocation1 + $0x3] ss:$4 sm:$0xff] %v2335_v5  ;;  %v2282_v32 = vsel %vm473_vm14, %v5691_v30, 0.0  ;;  %v2300_v30 = vsel %vm473_vm14, %v6060_v22, 0.0  ;;  %v2273_v22 = vsel %vm473_vm14, %v5661_v38, 0.0 }
 0x323   :  { %v3441_v60 = vrot.slane %v3440_v35, 4  ;;  %v3435_v2 = vadd.f32 %v3434_v31, %v3433_v24  ;;  %2368 = vst [vmem:[#allocation1 + $0x20] ss:$4 sm:$0xff] %v2336_v14  ;;  %v2379_v24 = vsel %vm471_vm0, %v2353_v49, -inf  ;;  %v2290_v31 = vsel %vm471_vm0, %v5701_v39, 0.0 }
 0x324   :  { %2369 = vst [vmem:[#allocation1 + $0x21] ss:$4 sm:$0xff] %v2085_v7  ;;  %v2382_v10 = vmax.f32 %v2379_v24, %v2381_v33  ;;  %v2283_v29 = vadd.f32 %v2282_v32, %v2281_v6  ;;  %v2245_v39 = vsel %vm471_vm0, %v5576_v25, 0.0  ;;  %v2292_v28 = vadd.f32 %v2291_v18, %v2290_v31 }
 0x325   :  { %v3436_v40 = vrot.slane %v3435_v2, 2  ;;  %v3442_v36 = vadd.f32 %v3441_v60, %v3440_v35  ;;  %2370 = vst [vmem:[#allocation1 + $0x22] ss:$4 sm:$0xff] %v2337_v61  ;;  %v2380_v35 = vsel %vm471_vm0, %v2354_v17, -inf  ;;  %v2255_v25 = vsel %vm473_vm14, %v5619_v48, 0.0 }
 0x326   :  { %v2383_v60 = vmax.f32 %v2382_v10, %v2380_v35  ;;  %v2284_v34 = vrot.slane %v2283_v29, 4  ;;  %v2293_v58 = vrot.slane %v2292_v28, 4  ;;  %v2274_v59 = vadd.f32 %v2273_v22, %v2272_v12 }
 0x327   :  { %v3437_v13 = vadd.f32 %v3436_v40, %v3435_v2  ;;  %v3443_v46 = vrot.slane %v3442_v36, 2  ;;  %v2301_v2 = vadd.f32 %v2300_v30, %v2299_v3  ;;  %v2237_v38 = vsel %vm473_vm14, %v5572_v11, 0.0 }
 0x328   :  { %v2384_v40 = vrot.slane %v2383_v60, 4  ;;  %v2256_v23 = vadd.f32 %v2255_v25, %v2254_v16  ;;  %v2264_v11 = vsel %vm473_vm14, %v5635_v37, 0.0 }
 0x329   :  { %v3438_v55 = vrot.slane %v3437_v13, 1  ;;  %v3444_v47 = vadd.f32 %v3443_v46, %v3442_v36  ;;  %v2247_v36 = vadd.f32 %v2246_v63, %v2245_v39  ;;  %v2371_v17 = vld.sshfl [vmem:[#allocation1] sm:$0xff pattern:$0x73625140]  ;;  %v2390_v46 = vsel %vm471_vm0, %v2363_v15, -inf }
 0x32a   :  { %v2385_v54 = vmax.f32 %v2383_v60, %v2384_v40  ;;  %v2302_v53 = vrot.slane %v2301_v2, 4  ;;  %v2257_v45 = vrot.slane %v2256_v23, 4  ;;  %v2265_v21 = vadd.f32 %v2264_v11, %v2263_v57 }
 0x32b   :  { %v3445_v51 = vrot.slane %v3444_v47, 1  ;;  %v3439_v62 = vadd.f32 %v3438_v55, %v3437_v13  ;;  %v2236_v13 = vsel %vm471_vm0, %v5569_v0, 0.0  ;;  %v2248_v49 = vrot.slane %v2247_v36, 4 }
 0x32c   :  { %v2372_v44 = vld.sshfl [vmem:[#allocation1 + $0x20] sm:$0xff pattern:$0x73625140]  ;;  %v2386_v50 = vrot.slane %v2385_v54, 2  ;;  %v2391_v55 = vsel %vm471_vm0, %v2371_v17, -inf  ;;  %v2238_v0 = vadd.f32 %v2237_v38, %v2236_v13  ;;  %v2258_v6 = vadd.f32 %v2257_v45, %v2256_v23 }
 0x32d   :  { %v3446_v43 = vadd.f32 %v3445_v51, %v3444_v47  ;;  %v2392_v48 = vsel %vm473_vm14, %v2372_v44, -inf  ;;  %v2285_v47 = vadd.f32 %v2284_v34, %v2283_v29  ;;  %v2294_v51 = vadd.f32 %v2293_v58, %v2292_v28 }
 0x32e   :  { %v2387_v20 = vmax.f32 %v2385_v54, %v2386_v50  ;;  %v2393_v42 = vmax.f32 %v2390_v46, %v2392_v48  ;;  %v2239_v9 = vrot.slane %v2238_v0, 4  ;;  %v2266_v32 = vrot.slane %v2265_v21, 4 }
 0x32f   :  { %v3454_v56 = vsel %vm1638_vm9, %v3446_v43, %v3439_v62  ;;  %v2275_v62 = vrot.slane %v2274_v59, 4  ;;  %v2303_v43 = vadd.f32 %v2302_v53, %v2301_v2  ;;  %v2286_v1 = vrot.slane %v2285_v47, 2 }
 0x330   :  { %3455 = vrot.lane.b32.xlu2 %v3454_v56, %s4912_s26  ;;  %v2394_v41 = vmax.f32 %v2393_v42, %v2391_v55  ;;  %v2249_v56 = vadd.f32 %v2248_v49, %v2247_v36  ;;  %v2388_v27 = vrot.slane %v2387_v20, 1  ;;  %v2295_v7 = vrot.slane %v2294_v51, 2 }
 0x331   :  { %v2276_v14 = vadd.f32 %v2275_v62, %v2274_v59  ;;  %v2304_v15 = vrot.slane %v2303_v43, 2  ;;  %v2287_v52 = vadd.f32 %v2286_v1, %v2285_v47  ;;  %v2240_v31 = vadd.f32 %v2239_v9, %v2238_v0 }
 0x332   :  { %v2395_v5 = vrot.slane %v2394_v41, 4  ;;  %v2389_v24 = vmax.f32 %v2387_v20, %v2388_v27  ;;  %v2296_v33 = vadd.f32 %v2295_v7, %v2294_v51  ;;  %v2259_v35 = vrot.slane %v2258_v6, 2 }
 0x333   :  { %v2277_v18 = vrot.slane %v2276_v14, 2  ;;  %v2305_v10 = vadd.f32 %v2304_v15, %v2303_v43  ;;  %v2288_v29 = vrot.slane %v2287_v52, 1  ;;  %v2267_v39 = vadd.f32 %v2266_v32, %v2265_v21 }
 0x334   :  { %v2396_v61 = vmax.f32 %v2394_v41, %v2395_v5  ;;  %v3514_v60 = vpack.c.bf16 %v2389_v24, %v2389_v24  ;;  %v2297_v28 = vrot.slane %v2296_v33, 1  ;;  %v2241_v2 = vrot.slane %v2240_v31, 2 }
 0x335   :  { %v2278_v40 = vadd.f32 %v2277_v18, %v2276_v14  ;;  %v2306_v12 = vrot.slane %v2305_v10, 1  ;;  %v2260_v34 = vadd.f32 %v2259_v35, %v2258_v6  ;;  %v2289_v16 = vadd.f32 %v2288_v29, %v2287_v52 }
 0x336   :  { %v2397_v37 = vrot.slane %v2396_v61, 2  ;;  %v2268_v25 = vrot.slane %v2267_v39, 2  ;;  %v3528_v54 = vunpack.c.l.b16 %v3514_v60  ;;  %v2298_v58 = vadd.f32 %v2297_v28, %v2296_v33 }
 0x337   :  { %v2242_v13 = vadd.f32 %v2241_v2, %v2240_v31  ;;  %v2279_v46 = vrot.slane %v2278_v40, 1  ;;  %v2307_v59 = vadd.f32 %v2306_v12, %v2305_v10  ;;  %v2261_v53 = vrot.slane %v2260_v34, 1 }
 0x338   :  { %1806 = vrot.lane.b32.xlu2 %v1753_v4, %s4914_s4  ;;  %v2250_v4 = vrot.slane %v2249_v56, 2  ;;  %v2398_v3 = vmax.f32 %v2396_v61, %v2397_v37  ;;  %v2313_v44 = vmul.f32 %v2289_v16, %v5625_v19  ;;  %v2269_v49 = vadd.f32 %v2268_v25, %v2267_v39 }
 0x339   :  { %v2314_v55 = vmul.f32 %v2298_v58, %v5625_v19  ;;  %v2243_v48 = vrot.slane %v2242_v13, 1  ;;  %v2280_v47 = vadd.f32 %v2279_v46, %v2278_v40  ;;  %v2315_v20 = vmul.f32 %v2307_v59, %v5625_v19 }
 0x33a   :  { %v2251_v30 = vadd.f32 %v2250_v4, %v2249_v56  ;;  %v2399_v63 = vrot.slane %v2398_v3, 1  ;;  %v2262_v42 = vadd.f32 %v2261_v53, %v2260_v34  ;;  %v3357_v51 = vmax.f32 %v2313_v44, 0.0 }
 0x33b   :  { %v3373_v0 = vrot.slane %v6076_v26, 1  ;;  %v2270_v57 = vrot.slane %v2269_v49, 1  ;;  %v3358_v62 = vmax.f32 %v2314_v55, 0.0  ;;  %v3374_v43 = vrot.slane %v6076_v26, 2 }
 0x33c   :  { %v2400_v22 = vmax.f32 %v2398_v3, %v2399_v63  ;;  %v2252_v36 = vrot.slane %v2251_v30, 1  ;;  %v2244_v41 = vadd.f32 %v2243_v48, %v2242_v13  ;;  %v2312_v56 = vmul.f32 %v2280_v47, %v5625_v19 }
 0x33d   :  { %v3375_v45 = vrot.slane %v6076_v26, 3  ;;  %v3370_v1 = vrot.slane %v6069_v8, 1  ;;  %v3359_v21 = vmax.f32 %v2315_v20, 0.0  ;;  %v2310_v27 = vmul.f32 %v2262_v42, %v5625_v19 }
 0x33e   :  { %v3515_v17 = vpack.c.bf16 %v2400_v22, %v2400_v22  ;;  %v2253_v50 = vadd.f32 %v2252_v36, %v2251_v30  ;;  %v3387_v5 = vmul.f32 %v3373_v0, %v3357_v51  ;;  %v2271_v7 = vadd.f32 %v2270_v57, %v2269_v49  ;;  %v1800_v51 = vld [vmem:[%s6194_s1] sm:$0x3]  ;;  %v1803_v0 = vpop.permute.xlu0 %1802 }
 0x33f   :  { %v3388_v14 = vmul.f32 %v3374_v43, %v3358_v62  ;;  %v2308_v15 = vmul.f32 %v2244_v41, %v5625_v19  ;;  %v3371_v61 = vrot.slane %v6069_v8, 2  ;;  %v3356_v4 = vmax.f32 %v2312_v56, 0.0  ;;  %v4864_v41 = vld [vmem:[%s6204_s11 + $0x1] ss:$0 sm:$0xff] }
 0x340   :  { %v3529_v38 = vunpack.c.l.b16 %v3515_v17  ;;  %v2309_v11 = vmul.f32 %v2253_v50, %v5625_v19  ;;  %v3389_v52 = vmul.f32 %v3375_v45, %v3359_v21  ;;  %v3354_v32 = vmax.f32 %v2310_v27, 0.0  ;;  %v4865_v21 = vld [vmem:[%s6206_s13 + $0x1] ss:$0 sm:$0xff]  ;;  %s4916_s13 = smov 2  }
 0x341   :  { %v3404_v24 = vrot.slane %v3387_v5, 7  ;;  %v2311_v37 = vmul.f32 %v2271_v7, %v5625_v19  ;;  %v3406_v33 = vrot.slane %v3388_v14, 6  ;;  %v3352_v31 = vmax.f32 %v2308_v15, 0.0  ;;  %v4644_v7 = vld [vmem:[%s6194_s1 + $0x2] sm:$0x3] }
 0x342   :  { %v6133_v23 = vsel %vm1638_vm9, %v3529_v38, %v3528_v54  ;;  %v3353_v9 = vmax.f32 %v2309_v11, 0.0  ;;  %v3384_v18 = vmul.f32 %v3371_v61, %v3354_v32  ;;  %v3386_v10 = vmul.f32 %v6076_v26, %v3356_v4  ;;  %v4847_v54 = vld [vmem:[%s6205_s12 + $0x10] sm:$0xff] }
 0x343   :  { %v3372_v3 = vrot.slane %v6069_v8, 3  ;;  %v3408_v35 = vrot.slane %v3389_v52, 5  ;;  %v3355_v39 = vmax.f32 %v2311_v37, 0.0  ;;  %v3382_v63 = vmul.f32 %v6069_v8, %v3352_v31  ;;  %v4848_v8 = vld [vmem:[%s6205_s12 + $0x18] sm:$0xff] }
 0x344   :  { %v3383_v6 = vmul.f32 %v3370_v1, %v3353_v9  ;;  %v3405_v29 = vsel %vm1638_vm9, %v3404_v24, %v3386_v10  ;;  %v3400_v28 = vrot.slane %v3384_v18, 6  ;;  %3553 = vmatpush.bf16.msra.mxu0 %v4848_v8  ;;  %v1809_v57 = vsel %vm471_vm0, %v1800_v51, %v1803_v0 }
 0x345   :  { %v3407_v60 = vsel %vm1641_vm2, %v3406_v33, %v3405_v29  ;;  %v3385_v2 = vmul.f32 %v3372_v3, %v3355_v39  ;;  %v3531_v43 = vpack.c.b16 %v6133_v23, %v6133_v23 }
 0x346   :  { %v3398_v30 = vrot.slane %v3383_v6, 7  ;;  %v3409_v40 = vsel %vm1644_vm12, %v3408_v35, %v3407_v60 }
 0x347   :  { %v3419_v26 = vsel %vm1654_vm11, %v3409_v40, 0.0  ;;  %v3402_v22 = vrot.slane %v3385_v2, 5 }
 0x348   :  { %v3399_v19 = vsel %vm1638_vm9, %v3398_v30, %v3382_v63  ;;  %v3420_v34 = vrot.slane %v3419_v26, 4  ;;  %3554 = vmatpush.bf16.msra.mxu0 %v4847_v54 }
 0x349   :  { %v3401_v12 = vsel %vm1641_vm2, %v3400_v28, %v3399_v19 }
 0x34a   :  { %v3403_v36 = vsel %vm1644_vm12, %v3402_v22, %v3401_v12  ;;  %v3421_v25 = vadd.f32 %v3420_v34, %v3419_v26 }
 0x34b   :  { %v3412_v16 = vsel %vm1654_vm11, %v3403_v36, 0.0 }
 0x34c   :  { %v3413_v17 = vrot.slane %v3412_v16, 4  ;;  %v3422_v58 = vrot.slane %v3421_v25, 2 }
 0x34e   :  { %v3414_v13 = vadd.f32 %v3413_v17, %v3412_v16  ;;  %v3423_v46 = vadd.f32 %v3422_v58, %v3421_v25 }
 0x350   :  { %v3415_v59 = vrot.slane %v3414_v13, 2  ;;  %v3424_v38 = vrot.slane %v3423_v46, 1 }
 0x352   :  { %v3416_v53 = vadd.f32 %v3415_v59, %v3414_v13  ;;  %v3425_v44 = vadd.f32 %v3424_v38, %v3423_v46 }
 0x354   :  { %v3417_v50 = vrot.slane %v3416_v53, 1  ;;  %v3449_v49 = vrot.slane %v3425_v44, 7 }
 0x356   :  { %v3418_v55 = vadd.f32 %v3417_v50, %v3416_v53 }
 0x358   :  { %v3450_v48 = vsel %vm1638_vm9, %v3449_v49, %v3418_v55 }
 0x38a   :  { %v3456_v47 = vpop.permute.xlu2 %3455 }
 0x38b   :  { %v3458_v20 = vsel %vm471_vm0, %v3450_v48, %v3456_v47 }
 0x38c   :  { %v3459_v42 = vpack.c.bf16 %v3458_v20, %v3458_v20 }
 0x38e   :  { %4629 = vmatmul.msk.bf16.vlgmr.msrb.gmra.mxu0 %vm1739_vm4, %v3459_v42 }
 0x392   :  { %v1807_v11 = vpop.permute.xlu2 %1806 }
 0x393   :  { %v1810_v62 = vsel %vm1739_vm4, %v1809_v57, %v1807_v11 }
 0x394   :  { %1811 = vst [vmem:[#allocation2] sm:$0x3] %v1810_v62 }
 0x39e   :  { %4643 = vmatmul.msk.bf16.vlgmr.msra.gmra.mxu0 %vm471_vm0, %v3531_v43 }
 0x40b   :  { %v3510_v56 = vpop.f32.mrf.mxu0 }
 0x40c   :  { %v3511_v45 = vadd.f32 %v4864_v41, %v3510_v56 }
 0x40e   :  { %3567 = vrot.lane.b32.xlu0 %v3511_v45, %s4914_s4 }
 0x413   :  { %v3512_v1 = vpop.f32.mrf.mxu0 }
 0x41b   :  { %v3556_v27 = vpop.f32.mrf.mxu0 }
 0x41c   :  { %v3557_v5 = vadd.f32 %v4865_v21, %v3556_v27 }
 0x41e   :  { %3563 = vrot.lane.b32.xlu1 %v3557_v5, %s4912_s26 }
 0x423   :  { %v3558_v23 = vpop.f32.mrf.mxu0 }
 0x480   :  { %v3568_v14 = vpop.permute.xlu0 %3567 }
 0x490   :  { %v3564_v9 = vpop.permute.xlu1 %3563 }
 0x491   :  { %v3570_v15 = vsel %vm471_vm0, %v4644_v7, %v3564_v9 }
 0x492   :  { %v3571_v61 = vsel %vm1739_vm4, %v3570_v15, %v3568_v14 }
 0x493   :  { %3573 = vst [vmem:[#allocation2 + $0x2] sm:$0x3] %v3571_v61 }
 0x494   :  { %3586 = dma.vmem_to_hbm [thread:$0]  %s3579_s5, 64, %s3581_s15, [#allocation3], %s4912_s26, %s4912_s26, %s4916_s13  }
 0x495   :  { %4909 = dma.done.wait [#allocation3], 64  }
 0x496   :  { %4910 = vsyncadd [#allocation3], 4294967232 }
 0x497   :  { %3591 = vsyncpa [#allocation3], 1 }

</bundles_post_ra>
